<compile_context>
chip_gen: v7x
topology: tpu7x:2x2x1
jax: 0.10.0
libtpu: 0.0.40
codegen_flags: <defaults>
</compile_context>

<pallas_src>
import functools

import jax
import jax.numpy as jnp
from jax.experimental import pallas as pl
from jax.experimental.pallas import tpu as pltpu

LANE = 128  # lane width: channel axis is padded to a multiple of this


# --------------------------------------------------------------------------- #
# Fused kernel: one (image, H-row tile) per grid step.  grid = (N, H // TH)
# --------------------------------------------------------------------------- #
def _residual_block_kernel(x_ref, w1_ref, b1_ref, w2_ref, b2_ref, o_ref,
                           padx, padz, patch):
    """x_ref   : (1, H, W, C)      f32  full image (block index constant in h)
       w1/w2   : (9*C, C)          bf16 conv weights, BN scale folded,
                                        rows ordered (dy, dx, cin)
       b1/b2   : (1, C)            f32  folded BN bias
       o_ref   : (1, TH, W, C)     bf16 output row-tile
       padx    : (H+4, W+2, C)     bf16 zero-padded whole image (persistent)
       padz    : (TH+2, W+2, C)    bf16 zero-padded z1 halo window
       patch   : (TH+2, W, 9*C)    bf16 im2col patch scratch
    """
    _, H, W, C = x_ref.shape
    TH = o_ref.shape[1]
    K9 = 9 * C
    h = pl.program_id(1)
    last = pl.num_programs(1) - 1

    # ---- stage the zero-padded input image into VMEM once per image --------
    # Only the halo ring is zeroed; the interior is fully overwritten.
    @pl.when(h == 0)
    def _():
        zrow = jnp.zeros((2, W + 2, C), padx.dtype)
        padx[0:2, :, :] = zrow                      # 2 extra top pad rows
        padx[H + 2:H + 4, :, :] = zrow              # 2 extra bottom pad rows
        zcol = jnp.zeros((H + 4, 1, C), padx.dtype)
        padx[:, 0:1, :] = zcol                      # left pad column
        padx[:, W + 1:W + 2, :] = zcol              # right pad column
        padx[2:H + 2, 1:W + 1, :] = x_ref[0].astype(padx.dtype)

    r0 = pl.multiple_of(h * TH, TH)                 # first output row of tile

    # ---- conv1 + BN1 + ReLU on the (TH+2)-row z1 halo window ---------------
    # z1 window row j corresponds to image row r0-1+j; it needs padx rows
    # r0+j+dy (padx row = image row + 2), so slab (dy,dx) is a plain strided
    # whole-vreg copy.
    for dy in range(3):
        for dx in range(3):
            k = dy * 3 + dx
            patch[:, :, k * C:(k + 1) * C] = \
                padx[pl.ds(r0 + dy, TH + 2), dx:dx + W, :]
    z1 = jnp.dot(patch[...].reshape((TH + 2) * W, K9), w1_ref[...],
                 preferred_element_type=jnp.float32)
    z1 = jnp.maximum(z1 + b1_ref[0], 0.0)
    padz[:, 1:W + 1, :] = z1.reshape(TH + 2, W, C).astype(padz.dtype)

    # conv2's zero padding around the z1 window (ring only; rows 0 / TH+1 are
    # real z1 rows for interior tiles and must NOT be zeroed there).
    zc = jnp.zeros((TH + 2, 1, C), padz.dtype)
    padz[:, 0:1, :] = zc
    padz[:, W + 1:W + 2, :] = zc

    @pl.when(h == 0)
    def _():
        padz[0:1, :, :] = jnp.zeros((1, W + 2, C), padz.dtype)

    @pl.when(h == last)
    def _():
        padz[TH + 1:TH + 2, :, :] = jnp.zeros((1, W + 2, C), padz.dtype)

    # ---- conv2 + BN2 + residual add (f32 x) + ReLU --------------------------
    for dy in range(3):
        for dx in range(3):
            k = dy * 3 + dx
            patch[0:TH, :, k * C:(k + 1) * C] = padz[dy:dy + TH, dx:dx + W, :]
    y = jnp.dot(patch[0:TH, :, :].reshape(TH * W, K9), w2_ref[...],
                preferred_element_type=jnp.float32)
    y = y + b2_ref[0]
    y = y + x_ref[0, pl.ds(r0, TH), :, :].reshape(TH * W, C)   # identity shortcut, f32
    y = jnp.maximum(y, 0.0)
    o_ref[...] = y.reshape(1, TH, W, C).astype(o_ref.dtype)


# --------------------------------------------------------------------------- #
# One-time parameter preparation (BN folding + layout + channel padding).
# --------------------------------------------------------------------------- #
def fold_params(params, eps=1e-5):
    """Fold eval-mode BN into the conv weights; pad channels lane-dense."""
    c = params["w1"].shape[0]
    cp = ((c + LANE - 1) // LANE) * LANE

    def fold(w_oihw, gamma, beta, mean, var):
        cout, cin, kh, kw = w_oihw.shape
        scale = gamma / jnp.sqrt(var + eps)                        # (Cout,)
        bias = (beta - mean * scale).astype(jnp.float32)           # (Cout,)
        w_hwio = jnp.transpose(w_oihw, (2, 3, 1, 0)) * scale[None, None, None, :]
        # zero-pad cin/cout so padded channels contribute exactly 0
        w_hwio = jnp.pad(w_hwio, ((0, 0), (0, 0), (0, cp - cin), (0, cp - cout)))
        bias = jnp.pad(bias, (0, cp - cout))
        w_flat = w_hwio.reshape(kh * kw * cp, cp).astype(jnp.bfloat16)
        return w_flat, bias.reshape(1, cp)

    w1, b1 = fold(params["w1"], params["g1"], params["b1"], params["m1"], params["v1"])
    w2, b2 = fold(params["w2"], params["g2"], params["b2"], params["m2"], params["v2"])
    return w1, b1, w2, b2


# --------------------------------------------------------------------------- #
# Forward wrappers
# --------------------------------------------------------------------------- #
def _residual_block_nhwc(x_nhwc, w1_flat, b1, w2_flat, b2):
    N, H, W, Cp = x_nhwc.shape                      # Cp already lane-padded, x f32
    assert w1_flat.shape == (9 * Cp, Cp)
    TH = 8 if (H % 8 == 0 and H >= 8) else H        # output rows per grid step
    nh = H // TH

    return pl.pallas_call(
        _residual_block_kernel,
        out_shape=jax.ShapeDtypeStruct((N, H, W, Cp), jnp.bfloat16),
        grid=(N, nh),
        in_specs=[
            # full image, block index constant along h => DMA'd once per image
            pl.BlockSpec((1, H, W, Cp), lambda n, h: (n, 0, 0, 0)),
            pl.BlockSpec((9 * Cp, Cp), lambda n, h: (0, 0)),
            pl.BlockSpec((1, Cp), lambda n, h: (0, 0)),
            pl.BlockSpec((9 * Cp, Cp), lambda n, h: (0, 0)),
            pl.BlockSpec((1, Cp), lambda n, h: (0, 0)),
        ],
        out_specs=pl.BlockSpec((1, TH, W, Cp), lambda n, h: (n, h, 0, 0)),
        scratch_shapes=[
            pltpu.VMEM((H + 4, W + 2, Cp), jnp.bfloat16),   # padded image (persistent)
            pltpu.VMEM((TH + 2, W + 2, Cp), jnp.bfloat16),  # padded z1 halo window
            pltpu.VMEM((TH + 2, W, 9 * Cp), jnp.bfloat16),  # im2col patch (bounded by TH)
        ],
        compiler_params=pltpu.CompilerParams(
            # n is embarrassingly parallel (megacore); h carries scratch state.
            dimension_semantics=("parallel", "arbitrary"),
            # headroom above v5e's 16 MiB scoped default for non-demo shapes
            vmem_limit_bytes=32 * 1024 * 1024),
    )(x_nhwc, w1_flat, b1, w2_flat, b2)


@jax.jit
def residual_block_forward(x_nchw, w1_flat, b1, w2_flat, b2):
    """PyTorch-convention (NCHW f32 in / NCHW f32 out) wrapper."""
    N, C, H, W = x_nchw.shape
    Cp = w1_flat.shape[1]
    x = jnp.transpose(x_nchw, (0, 2, 3, 1))                       # NCHW -> NHWC
    x = jnp.pad(x, ((0, 0), (0, 0), (0, 0), (0, Cp - C)))         # lane-dense channels
    out = _residual_block_nhwc(x, w1_flat, b1, w2_flat, b2)       # bf16 NHWC (padded C)
    out = out[..., :C].astype(jnp.float32)
    return jnp.transpose(out, (0, 3, 1, 2))                       # NHWC -> NCHW


# --------------------------------------------------------------------------- #
# Pure-JAX reference (sanity check)
# --------------------------------------------------------------------------- #
def _ref_forward(x_nchw, params):
    conv = functools.partial(
        jax.lax.conv_general_dilated,
        window_strides=(1, 1), padding=((1, 1), (1, 1)),
        dimension_numbers=("NCHW", "OIHW", "NCHW"))

    def bn(x, g, b, m, v, eps=1e-5):
        inv = g / jnp.sqrt(v + eps)
        return x * inv[None, :, None, None] + (b - m * inv)[None, :, None, None]

    z1 = jax.nn.relu(bn(conv(x_nchw, params["w1"]),
                        params["g1"], params["b1"], params["m1"], params["v1"]))
    z2 = bn(conv(z1, params["w2"]),
            params["g2"], params["b2"], params["m2"], params["v2"]) + x_nchw
    return jax.nn.relu(z2)


# --------------------------------------------------------------------------- #
if __name__ == "__main__":
    N, C, H, W = 2, 8, 16, 16          # small demo shapes; in_c == out_c, stride=1
    key = jax.random.PRNGKey(0)
    ks = jax.random.split(key, 11)

    x = jax.random.normal(ks[0], (N, C, H, W), jnp.float32)

    params = {
        "w1": 0.1 * jax.random.normal(ks[1], (C, C, 3, 3), jnp.float32),
        "g1": 1.0 + 0.1 * jax.random.normal(ks[2], (C,), jnp.float32),
        "b1": 0.1 * jax.random.normal(ks[3], (C,), jnp.float32),
        "m1": 0.05 * jax.random.normal(ks[4], (C,), jnp.float32),
        "v1": 0.9 + 0.2 * jax.random.uniform(ks[5], (C,), jnp.float32),
        "w2": 0.1 * jax.random.normal(ks[6], (C, C, 3, 3), jnp.float32),
        "g2": 1.0 + 0.1 * jax.random.normal(ks[7], (C,), jnp.float32),
        "b2": 0.1 * jax.random.normal(ks[8], (C,), jnp.float32),
        "m2": 0.05 * jax.random.normal(ks[9], (C,), jnp.float32),
        "v2": 0.9 + 0.2 * jax.random.uniform(ks[10], (C,), jnp.float32),
    }

    # Fold BN + transpose/pad weights once, outside the hot path.
    folded = fold_params(params)
    folded = jax.tree_util.tree_map(jax.block_until_ready, folded)

    out = residual_block_forward(x, *folded)
    out = jax.block_until_ready(out)

    ref = _ref_forward(x, params)
    assert out.shape == (N, C, H, W)
    assert jnp.allclose(out, ref, rtol=5e-2, atol=5e-2), "mismatch vs reference"

    print("KERNEL_OK")
</pallas_src>

<mosaic_0001>
module attributes {stable_mosaic.version = 11 : i64} {
  func.func @_residual_block_kernel(%arg0: i32, %arg1: i32, %arg2: memref<1x16x16x128xf32, #tpu.memory_space<vmem>>, %arg3: memref<1152x128xbf16, #tpu.memory_space<vmem>>, %arg4: memref<1x128xf32, #tpu.memory_space<vmem>>, %arg5: memref<1152x128xbf16, #tpu.memory_space<vmem>>, %arg6: memref<1x128xf32, #tpu.memory_space<vmem>>, %arg7: memref<1x8x16x128xbf16, #tpu.memory_space<vmem>>, %arg8: memref<20x18x128xbf16, #tpu.memory_space<vmem>>, %arg9: memref<10x18x128xbf16, #tpu.memory_space<vmem>>, %arg10: memref<10x16x1152xbf16, #tpu.memory_space<vmem>>) attributes {dimension_semantics = [#tpu.dimension_semantics<parallel>, #tpu.dimension_semantics<arbitrary>], iteration_bounds = array<i64: 2, 2>, scalar_prefetch = 0 : i64, scratch_operands = 3 : i64, tpu.core_type = #tpu.core_type<tc>, window_params = [{transform_indices = @transform_0, window_bounds = array<i64: 1, 16, 16, 128>}, {pipeline_mode = #tpu.pipeline_mode<synchronous>, transform_indices = @transform_1, window_bounds = array<i64: 1152, 128>}, {pipeline_mode = #tpu.pipeline_mode<synchronous>, transform_indices = @transform_2, window_bounds = array<i64: 1, 128>}, {pipeline_mode = #tpu.pipeline_mode<synchronous>, transform_indices = @transform_3, window_bounds = array<i64: 1152, 128>}, {pipeline_mode = #tpu.pipeline_mode<synchronous>, transform_indices = @transform_4, window_bounds = array<i64: 1, 128>}, {transform_indices = @transform_5, window_bounds = array<i64: 1, 8, 16, 128>}]} {
    %c0_i32 = arith.constant 0 : i32
    %0 = arith.cmpi eq, %arg1, %c0_i32 : i32
    %1 = arith.extui %0 : i1 to i32
    %c0_i32_0 = arith.constant 0 : i32
    %2 = arith.cmpi ne, %1, %c0_i32_0 : i32
    scf.if %2 {
      %cst_133 = arith.constant 0.000000e+00 : bf16
      %101 = vector.broadcast %cst_133 : bf16 to vector<2x18x128xbf16>
      %c0_134 = arith.constant 0 : index
      %c0_135 = arith.constant 0 : index
      %c0_136 = arith.constant 0 : index
      %102 = vector.load %arg8[%c0_134, %c0_135, %c0_136] : memref<20x18x128xbf16, #tpu.memory_space<vmem>>, vector<2x18x128xbf16>
      tpu.vector_store %arg8[%c0_134, %c0_135, %c0_136], %101 {strides = array<i32>} : memref<20x18x128xbf16, #tpu.memory_space<vmem>>, vector<2x18x128xbf16>,
      %c18 = arith.constant 18 : index
      %c0_137 = arith.constant 0 : index
      %c0_138 = arith.constant 0 : index
      %103 = vector.load %arg8[%c18, %c0_137, %c0_138] : memref<20x18x128xbf16, #tpu.memory_space<vmem>>, vector<2x18x128xbf16>
      tpu.vector_store %arg8[%c18, %c0_137, %c0_138], %101 {strides = array<i32>} : memref<20x18x128xbf16, #tpu.memory_space<vmem>>, vector<2x18x128xbf16>,
      %cst_139 = arith.constant 0.000000e+00 : bf16
      %104 = vector.broadcast %cst_139 : bf16 to vector<20x1x128xbf16>
      %c0_140 = arith.constant 0 : index
      %c0_141 = arith.constant 0 : index
      %c0_142 = arith.constant 0 : index
      %105 = vector.load %arg8[%c0_140, %c0_141, %c0_142] : memref<20x18x128xbf16, #tpu.memory_space<vmem>>, vector<20x1x128xbf16>
      tpu.vector_store %arg8[%c0_140, %c0_141, %c0_142], %104 {strides = array<i32>} : memref<20x18x128xbf16, #tpu.memory_space<vmem>>, vector<20x1x128xbf16>,
      %c0_143 = arith.constant 0 : index
      %c17_144 = arith.constant 17 : index
      %c0_145 = arith.constant 0 : index
      %106 = vector.load %arg8[%c0_143, %c17_144, %c0_145] : memref<20x18x128xbf16, #tpu.memory_space<vmem>>, vector<20x1x128xbf16>
      tpu.vector_store %arg8[%c0_143, %c17_144, %c0_145], %104 {strides = array<i32>} : memref<20x18x128xbf16, #tpu.memory_space<vmem>>, vector<20x1x128xbf16>,
      %c0_146 = arith.constant 0 : index
      %c0_147 = arith.constant 0 : index
      %c0_148 = arith.constant 0 : index
      %c0_149 = arith.constant 0 : index
      %107 = vector.load %arg2[%c0_146, %c0_147, %c0_148, %c0_149] : memref<1x16x16x128xf32, #tpu.memory_space<vmem>>, vector<1x16x16x128xf32>
      %108 = vector.shape_cast %107 : vector<1x16x16x128xf32> to vector<16x16x128xf32>
      %109 = arith.truncf %108 : vector<16x16x128xf32> to vector<16x16x128xbf16>
      %c2_150 = arith.constant 2 : index
      %c1_151 = arith.constant 1 : index
      %c0_152 = arith.constant 0 : index
      %110 = vector.load %arg8[%c2_150, %c1_151, %c0_152] : memref<20x18x128xbf16, #tpu.memory_space<vmem>>, vector<16x16x128xbf16>
      tpu.vector_store %arg8[%c2_150, %c1_151, %c0_152], %109 {strides = array<i32>} : memref<20x18x128xbf16, #tpu.memory_space<vmem>>, vector<16x16x128xbf16>,
    } else {
    }
    %c8_i32 = arith.constant 8 : i32
    %3 = arith.muli %arg1, %c8_i32 : i32
    %4 = tpu.assume_multiple %3, 8 : i32
    %c0_i32_1 = arith.constant 0 : i32
    %5 = arith.addi %4, %c0_i32_1 : i32
    %6 = arith.index_cast %5 : i32 to index
    %c0 = arith.constant 0 : index
    %c0_2 = arith.constant 0 : index
    %7 = vector.load %arg8[%6, %c0, %c0_2] : memref<20x18x128xbf16, #tpu.memory_space<vmem>>, vector<10x16x128xbf16>
    %c0_3 = arith.constant 0 : index
    %c0_4 = arith.constant 0 : index
    %c0_5 = arith.constant 0 : index
    %8 = vector.load %arg10[%c0_3, %c0_4, %c0_5] : memref<10x16x1152xbf16, #tpu.memory_space<vmem>>, vector<10x16x128xbf16>
    tpu.vector_store %arg10[%c0_3, %c0_4, %c0_5], %7 {strides = array<i32>} : memref<10x16x1152xbf16, #tpu.memory_space<vmem>>, vector<10x16x128xbf16>,
    %c0_i32_6 = arith.constant 0 : i32
    %9 = arith.addi %4, %c0_i32_6 : i32
    %10 = arith.index_cast %9 : i32 to index
    %c1 = arith.constant 1 : index
    %c0_7 = arith.constant 0 : index
    %11 = vector.load %arg8[%10, %c1, %c0_7] : memref<20x18x128xbf16, #tpu.memory_space<vmem>>, vector<10x16x128xbf16>
    %c0_8 = arith.constant 0 : index
    %c0_9 = arith.constant 0 : index
    %c128 = arith.constant 128 : index
    %12 = vector.load %arg10[%c0_8, %c0_9, %c128] : memref<10x16x1152xbf16, #tpu.memory_space<vmem>>, vector<10x16x128xbf16>
    tpu.vector_store %arg10[%c0_8, %c0_9, %c128], %11 {strides = array<i32>} : memref<10x16x1152xbf16, #tpu.memory_space<vmem>>, vector<10x16x128xbf16>,
    %c0_i32_10 = arith.constant 0 : i32
    %13 = arith.addi %4, %c0_i32_10 : i32
    %14 = arith.index_cast %13 : i32 to index
    %c2 = arith.constant 2 : index
    %c0_11 = arith.constant 0 : index
    %15 = vector.load %arg8[%14, %c2, %c0_11] : memref<20x18x128xbf16, #tpu.memory_space<vmem>>, vector<10x16x128xbf16>
    %c0_12 = arith.constant 0 : index
    %c0_13 = arith.constant 0 : index
    %c256 = arith.constant 256 : index
    %16 = vector.load %arg10[%c0_12, %c0_13, %c256] : memref<10x16x1152xbf16, #tpu.memory_space<vmem>>, vector<10x16x128xbf16>
    tpu.vector_store %arg10[%c0_12, %c0_13, %c256], %15 {strides = array<i32>} : memref<10x16x1152xbf16, #tpu.memory_space<vmem>>, vector<10x16x128xbf16>,
    %c1_i32 = arith.constant 1 : i32
    %17 = arith.addi %4, %c1_i32 : i32
    %18 = arith.index_cast %17 : i32 to index
    %c0_14 = arith.constant 0 : index
    %c0_15 = arith.constant 0 : index
    %19 = vector.load %arg8[%18, %c0_14, %c0_15] : memref<20x18x128xbf16, #tpu.memory_space<vmem>>, vector<10x16x128xbf16>
    %c0_16 = arith.constant 0 : index
    %c0_17 = arith.constant 0 : index
    %c384 = arith.constant 384 : index
    %20 = vector.load %arg10[%c0_16, %c0_17, %c384] : memref<10x16x1152xbf16, #tpu.memory_space<vmem>>, vector<10x16x128xbf16>
    tpu.vector_store %arg10[%c0_16, %c0_17, %c384], %19 {strides = array<i32>} : memref<10x16x1152xbf16, #tpu.memory_space<vmem>>, vector<10x16x128xbf16>,
    %c1_i32_18 = arith.constant 1 : i32
    %21 = arith.addi %4, %c1_i32_18 : i32
    %22 = arith.index_cast %21 : i32 to index
    %c1_19 = arith.constant 1 : index
    %c0_20 = arith.constant 0 : index
    %23 = vector.load %arg8[%22, %c1_19, %c0_20] : memref<20x18x128xbf16, #tpu.memory_space<vmem>>, vector<10x16x128xbf16>
    %c0_21 = arith.constant 0 : index
    %c0_22 = arith.constant 0 : index
    %c512 = arith.constant 512 : index
    %24 = vector.load %arg10[%c0_21, %c0_22, %c512] : memref<10x16x1152xbf16, #tpu.memory_space<vmem>>, vector<10x16x128xbf16>
    tpu.vector_store %arg10[%c0_21, %c0_22, %c512], %23 {strides = array<i32>} : memref<10x16x1152xbf16, #tpu.memory_space<vmem>>, vector<10x16x128xbf16>,
    %c1_i32_23 = arith.constant 1 : i32
    %25 = arith.addi %4, %c1_i32_23 : i32
    %26 = arith.index_cast %25 : i32 to index
    %c2_24 = arith.constant 2 : index
    %c0_25 = arith.constant 0 : index
    %27 = vector.load %arg8[%26, %c2_24, %c0_25] : memref<20x18x128xbf16, #tpu.memory_space<vmem>>, vector<10x16x128xbf16>
    %c0_26 = arith.constant 0 : index
    %c0_27 = arith.constant 0 : index
    %c640 = arith.constant 640 : index
    %28 = vector.load %arg10[%c0_26, %c0_27, %c640] : memref<10x16x1152xbf16, #tpu.memory_space<vmem>>, vector<10x16x128xbf16>
    tpu.vector_store %arg10[%c0_26, %c0_27, %c640], %27 {strides = array<i32>} : memref<10x16x1152xbf16, #tpu.memory_space<vmem>>, vector<10x16x128xbf16>,
    %c2_i32 = arith.constant 2 : i32
    %29 = arith.addi %4, %c2_i32 : i32
    %30 = arith.index_cast %29 : i32 to index
    %c0_28 = arith.constant 0 : index
    %c0_29 = arith.constant 0 : index
    %31 = vector.load %arg8[%30, %c0_28, %c0_29] : memref<20x18x128xbf16, #tpu.memory_space<vmem>>, vector<10x16x128xbf16>
    %c0_30 = arith.constant 0 : index
    %c0_31 = arith.constant 0 : index
    %c768 = arith.constant 768 : index
    %32 = vector.load %arg10[%c0_30, %c0_31, %c768] : memref<10x16x1152xbf16, #tpu.memory_space<vmem>>, vector<10x16x128xbf16>
    tpu.vector_store %arg10[%c0_30, %c0_31, %c768], %31 {strides = array<i32>} : memref<10x16x1152xbf16, #tpu.memory_space<vmem>>, vector<10x16x128xbf16>,
    %c2_i32_32 = arith.constant 2 : i32
    %33 = arith.addi %4, %c2_i32_32 : i32
    %34 = arith.index_cast %33 : i32 to index
    %c1_33 = arith.constant 1 : index
    %c0_34 = arith.constant 0 : index
    %35 = vector.load %arg8[%34, %c1_33, %c0_34] : memref<20x18x128xbf16, #tpu.memory_space<vmem>>, vector<10x16x128xbf16>
    %c0_35 = arith.constant 0 : index
    %c0_36 = arith.constant 0 : index
    %c896 = arith.constant 896 : index
    %36 = vector.load %arg10[%c0_35, %c0_36, %c896] : memref<10x16x1152xbf16, #tpu.memory_space<vmem>>, vector<10x16x128xbf16>
    tpu.vector_store %arg10[%c0_35, %c0_36, %c896], %35 {strides = array<i32>} : memref<10x16x1152xbf16, #tpu.memory_space<vmem>>, vector<10x16x128xbf16>,
    %c2_i32_37 = arith.constant 2 : i32
    %37 = arith.addi %4, %c2_i32_37 : i32
    %38 = arith.index_cast %37 : i32 to index
    %c2_38 = arith.constant 2 : index
    %c0_39 = arith.constant 0 : index
    %39 = vector.load %arg8[%38, %c2_38, %c0_39] : memref<20x18x128xbf16, #tpu.memory_space<vmem>>, vector<10x16x128xbf16>
    %c0_40 = arith.constant 0 : index
    %c0_41 = arith.constant 0 : index
    %c1024 = arith.constant 1024 : index
    %40 = vector.load %arg10[%c0_40, %c0_41, %c1024] : memref<10x16x1152xbf16, #tpu.memory_space<vmem>>, vector<10x16x128xbf16>
    tpu.vector_store %arg10[%c0_40, %c0_41, %c1024], %39 {strides = array<i32>} : memref<10x16x1152xbf16, #tpu.memory_space<vmem>>, vector<10x16x128xbf16>,
    %c0_42 = arith.constant 0 : index
    %c0_43 = arith.constant 0 : index
    %c0_44 = arith.constant 0 : index
    %41 = vector.load %arg10[%c0_42, %c0_43, %c0_44] : memref<10x16x1152xbf16, #tpu.memory_space<vmem>>, vector<10x16x1152xbf16>
    %42 = vector.shape_cast %41 : vector<10x16x1152xbf16> to vector<160x1152xbf16>
    %c0_45 = arith.constant 0 : index
    %c0_46 = arith.constant 0 : index
    %43 = vector.load %arg3[%c0_45, %c0_46] : memref<1152x128xbf16, #tpu.memory_space<vmem>>, vector<1152x128xbf16>
    %cst = arith.constant dense<0.000000e+00> : vector<160x128xf32>
    %44 = tpu.matmul %42, %43, %cst {dimension_numbers = #tpu.dot_dimension_numbers<[1], [0], [0], [1], [0, 0, 1, 1], [], []>} : vector<160x1152xbf16>, vector<1152x128xbf16>, vector<160x128xf32> -> vector<160x128xf32>
    %c0_47 = arith.constant 0 : index
    %c0_48 = arith.constant 0 : index
    %45 = vector.load %arg4[%c0_47, %c0_48] : memref<1x128xf32, #tpu.memory_space<vmem>>, vector<1x128xf32>
    %46 = vector.shape_cast %45 : vector<1x128xf32> to vector<128xf32>
    %47 = vector.shape_cast %46 : vector<128xf32> to vector<1x128xf32>
    %48 = vector.broadcast %47 : vector<1x128xf32> to vector<160x128xf32>
    %49 = arith.addf %44, %48 : vector<160x128xf32>
    %cst_49 = arith.constant 0.000000e+00 : f32
    %50 = vector.broadcast %cst_49 : f32 to vector<160x128xf32>
    %51 = arith.maximumf %49, %50 : vector<160x128xf32>
    %52 = vector.shape_cast %51 : vector<160x128xf32> to vector<10x16x128xf32>
    %53 = arith.truncf %52 : vector<10x16x128xf32> to vector<10x16x128xbf16>
    %c0_50 = arith.constant 0 : index
    %c1_51 = arith.constant 1 : index
    %c0_52 = arith.constant 0 : index
    %54 = vector.load %arg9[%c0_50, %c1_51, %c0_52] : memref<10x18x128xbf16, #tpu.memory_space<vmem>>, vector<10x16x128xbf16>
    tpu.vector_store %arg9[%c0_50, %c1_51, %c0_52], %53 {strides = array<i32>} : memref<10x18x128xbf16, #tpu.memory_space<vmem>>, vector<10x16x128xbf16>,
    %cst_53 = arith.constant 0.000000e+00 : bf16
    %55 = vector.broadcast %cst_53 : bf16 to vector<10x1x128xbf16>
    %c0_54 = arith.constant 0 : index
    %c0_55 = arith.constant 0 : index
    %c0_56 = arith.constant 0 : index
    %56 = vector.load %arg9[%c0_54, %c0_55, %c0_56] : memref<10x18x128xbf16, #tpu.memory_space<vmem>>, vector<10x1x128xbf16>
    tpu.vector_store %arg9[%c0_54, %c0_55, %c0_56], %55 {strides = array<i32>} : memref<10x18x128xbf16, #tpu.memory_space<vmem>>, vector<10x1x128xbf16>,
    %c0_57 = arith.constant 0 : index
    %c17 = arith.constant 17 : index
    %c0_58 = arith.constant 0 : index
    %57 = vector.load %arg9[%c0_57, %c17, %c0_58] : memref<10x18x128xbf16, #tpu.memory_space<vmem>>, vector<10x1x128xbf16>
    tpu.vector_store %arg9[%c0_57, %c17, %c0_58], %55 {strides = array<i32>} : memref<10x18x128xbf16, #tpu.memory_space<vmem>>, vector<10x1x128xbf16>,
    %c0_i32_59 = arith.constant 0 : i32
    %58 = arith.cmpi eq, %arg1, %c0_i32_59 : i32
    %59 = arith.extui %58 : i1 to i32
    %c0_i32_60 = arith.constant 0 : i32
    %60 = arith.cmpi ne, %59, %c0_i32_60 : i32
    scf.if %60 {
      %cst_133 = arith.constant 0.000000e+00 : bf16
      %101 = vector.broadcast %cst_133 : bf16 to vector<1x18x128xbf16>
      %c0_134 = arith.constant 0 : index
      %c0_135 = arith.constant 0 : index
      %c0_136 = arith.constant 0 : index
      %102 = vector.load %arg9[%c0_134, %c0_135, %c0_136] : memref<10x18x128xbf16, #tpu.memory_space<vmem>>, vector<1x18x128xbf16>
      tpu.vector_store %arg9[%c0_134, %c0_135, %c0_136], %101 {strides = array<i32>} : memref<10x18x128xbf16, #tpu.memory_space<vmem>>, vector<1x18x128xbf16>,
    } else {
    }
    %c1_i32_61 = arith.constant 1 : i32
    %61 = arith.cmpi eq, %arg1, %c1_i32_61 : i32
    %62 = arith.extui %61 : i1 to i32
    %c0_i32_62 = arith.constant 0 : i32
    %63 = arith.cmpi ne, %62, %c0_i32_62 : i32
    scf.if %63 {
      %cst_133 = arith.constant 0.000000e+00 : bf16
      %101 = vector.broadcast %cst_133 : bf16 to vector<1x18x128xbf16>
      %c9 = arith.constant 9 : index
      %c0_134 = arith.constant 0 : index
      %c0_135 = arith.constant 0 : index
      %102 = vector.load %arg9[%c9, %c0_134, %c0_135] : memref<10x18x128xbf16, #tpu.memory_space<vmem>>, vector<1x18x128xbf16>
      tpu.vector_store %arg9[%c9, %c0_134, %c0_135], %101 {strides = array<i32>} : memref<10x18x128xbf16, #tpu.memory_space<vmem>>, vector<1x18x128xbf16>,
    } else {
    }
    %c0_63 = arith.constant 0 : index
    %c0_64 = arith.constant 0 : index
    %c0_65 = arith.constant 0 : index
    %64 = vector.load %arg9[%c0_63, %c0_64, %c0_65] : memref<10x18x128xbf16, #tpu.memory_space<vmem>>, vector<8x16x128xbf16>
    %c0_66 = arith.constant 0 : index
    %c0_67 = arith.constant 0 : index
    %c0_68 = arith.constant 0 : index
    %65 = vector.load %arg10[%c0_66, %c0_67, %c0_68] : memref<10x16x1152xbf16, #tpu.memory_space<vmem>>, vector<8x16x128xbf16>
    tpu.vector_store %arg10[%c0_66, %c0_67, %c0_68], %64 {strides = array<i32>} : memref<10x16x1152xbf16, #tpu.memory_space<vmem>>, vector<8x16x128xbf16>,
    %c0_69 = arith.constant 0 : index
    %c1_70 = arith.constant 1 : index
    %c0_71 = arith.constant 0 : index
    %66 = vector.load %arg9[%c0_69, %c1_70, %c0_71] : memref<10x18x128xbf16, #tpu.memory_space<vmem>>, vector<8x16x128xbf16>
    %c0_72 = arith.constant 0 : index
    %c0_73 = arith.constant 0 : index
    %c128_74 = arith.constant 128 : index
    %67 = vector.load %arg10[%c0_72, %c0_73, %c128_74] : memref<10x16x1152xbf16, #tpu.memory_space<vmem>>, vector<8x16x128xbf16>
    tpu.vector_store %arg10[%c0_72, %c0_73, %c128_74], %66 {strides = array<i32>} : memref<10x16x1152xbf16, #tpu.memory_space<vmem>>, vector<8x16x128xbf16>,
    %c0_75 = arith.constant 0 : index
    %c2_76 = arith.constant 2 : index
    %c0_77 = arith.constant 0 : index
    %68 = vector.load %arg9[%c0_75, %c2_76, %c0_77] : memref<10x18x128xbf16, #tpu.memory_space<vmem>>, vector<8x16x128xbf16>
    %c0_78 = arith.constant 0 : index
    %c0_79 = arith.constant 0 : index
    %c256_80 = arith.constant 256 : index
    %69 = vector.load %arg10[%c0_78, %c0_79, %c256_80] : memref<10x16x1152xbf16, #tpu.memory_space<vmem>>, vector<8x16x128xbf16>
    tpu.vector_store %arg10[%c0_78, %c0_79, %c256_80], %68 {strides = array<i32>} : memref<10x16x1152xbf16, #tpu.memory_space<vmem>>, vector<8x16x128xbf16>,
    %c1_81 = arith.constant 1 : index
    %c0_82 = arith.constant 0 : index
    %c0_83 = arith.constant 0 : index
    %70 = vector.load %arg9[%c1_81, %c0_82, %c0_83] : memref<10x18x128xbf16, #tpu.memory_space<vmem>>, vector<8x16x128xbf16>
    %c0_84 = arith.constant 0 : index
    %c0_85 = arith.constant 0 : index
    %c384_86 = arith.constant 384 : index
    %71 = vector.load %arg10[%c0_84, %c0_85, %c384_86] : memref<10x16x1152xbf16, #tpu.memory_space<vmem>>, vector<8x16x128xbf16>
    tpu.vector_store %arg10[%c0_84, %c0_85, %c384_86], %70 {strides = array<i32>} : memref<10x16x1152xbf16, #tpu.memory_space<vmem>>, vector<8x16x128xbf16>,
    %c1_87 = arith.constant 1 : index
    %c1_88 = arith.constant 1 : index
    %c0_89 = arith.constant 0 : index
    %72 = vector.load %arg9[%c1_87, %c1_88, %c0_89] : memref<10x18x128xbf16, #tpu.memory_space<vmem>>, vector<8x16x128xbf16>
    %c0_90 = arith.constant 0 : index
    %c0_91 = arith.constant 0 : index
    %c512_92 = arith.constant 512 : index
    %73 = vector.load %arg10[%c0_90, %c0_91, %c512_92] : memref<10x16x1152xbf16, #tpu.memory_space<vmem>>, vector<8x16x128xbf16>
    tpu.vector_store %arg10[%c0_90, %c0_91, %c512_92], %72 {strides = array<i32>} : memref<10x16x1152xbf16, #tpu.memory_space<vmem>>, vector<8x16x128xbf16>,
    %c1_93 = arith.constant 1 : index
    %c2_94 = arith.constant 2 : index
    %c0_95 = arith.constant 0 : index
    %74 = vector.load %arg9[%c1_93, %c2_94, %c0_95] : memref<10x18x128xbf16, #tpu.memory_space<vmem>>, vector<8x16x128xbf16>
    %c0_96 = arith.constant 0 : index
    %c0_97 = arith.constant 0 : index
    %c640_98 = arith.constant 640 : index
    %75 = vector.load %arg10[%c0_96, %c0_97, %c640_98] : memref<10x16x1152xbf16, #tpu.memory_space<vmem>>, vector<8x16x128xbf16>
    tpu.vector_store %arg10[%c0_96, %c0_97, %c640_98], %74 {strides = array<i32>} : memref<10x16x1152xbf16, #tpu.memory_space<vmem>>, vector<8x16x128xbf16>,
    %c2_99 = arith.constant 2 : index
    %c0_100 = arith.constant 0 : index
    %c0_101 = arith.constant 0 : index
    %76 = vector.load %arg9[%c2_99, %c0_100, %c0_101] : memref<10x18x128xbf16, #tpu.memory_space<vmem>>, vector<8x16x128xbf16>
    %c0_102 = arith.constant 0 : index
    %c0_103 = arith.constant 0 : index
    %c768_104 = arith.constant 768 : index
    %77 = vector.load %arg10[%c0_102, %c0_103, %c768_104] : memref<10x16x1152xbf16, #tpu.memory_space<vmem>>, vector<8x16x128xbf16>
    tpu.vector_store %arg10[%c0_102, %c0_103, %c768_104], %76 {strides = array<i32>} : memref<10x16x1152xbf16, #tpu.memory_space<vmem>>, vector<8x16x128xbf16>,
    %c2_105 = arith.constant 2 : index
    %c1_106 = arith.constant 1 : index
    %c0_107 = arith.constant 0 : index
    %78 = vector.load %arg9[%c2_105, %c1_106, %c0_107] : memref<10x18x128xbf16, #tpu.memory_space<vmem>>, vector<8x16x128xbf16>
    %c0_108 = arith.constant 0 : index
    %c0_109 = arith.constant 0 : index
    %c896_110 = arith.constant 896 : index
    %79 = vector.load %arg10[%c0_108, %c0_109, %c896_110] : memref<10x16x1152xbf16, #tpu.memory_space<vmem>>, vector<8x16x128xbf16>
    tpu.vector_store %arg10[%c0_108, %c0_109, %c896_110], %78 {strides = array<i32>} : memref<10x16x1152xbf16, #tpu.memory_space<vmem>>, vector<8x16x128xbf16>,
    %c2_111 = arith.constant 2 : index
    %c2_112 = arith.constant 2 : index
    %c0_113 = arith.constant 0 : index
    %80 = vector.load %arg9[%c2_111, %c2_112, %c0_113] : memref<10x18x128xbf16, #tpu.memory_space<vmem>>, vector<8x16x128xbf16>
    %c0_114 = arith.constant 0 : index
    %c0_115 = arith.constant 0 : index
    %c1024_116 = arith.constant 1024 : index
    %81 = vector.load %arg10[%c0_114, %c0_115, %c1024_116] : memref<10x16x1152xbf16, #tpu.memory_space<vmem>>, vector<8x16x128xbf16>
    tpu.vector_store %arg10[%c0_114, %c0_115, %c1024_116], %80 {strides = array<i32>} : memref<10x16x1152xbf16, #tpu.memory_space<vmem>>, vector<8x16x128xbf16>,
    %c0_117 = arith.constant 0 : index
    %c0_118 = arith.constant 0 : index
    %c0_119 = arith.constant 0 : index
    %82 = vector.load %arg10[%c0_117, %c0_118, %c0_119] : memref<10x16x1152xbf16, #tpu.memory_space<vmem>>, vector<8x16x1152xbf16>
    %83 = vector.shape_cast %82 : vector<8x16x1152xbf16> to vector<128x1152xbf16>
    %c0_120 = arith.constant 0 : index
    %c0_121 = arith.constant 0 : index
    %84 = vector.load %arg5[%c0_120, %c0_121] : memref<1152x128xbf16, #tpu.memory_space<vmem>>, vector<1152x128xbf16>
    %cst_122 = arith.constant dense<0.000000e+00> : vector<128x128xf32>
    %85 = tpu.matmul %83, %84, %cst_122 {dimension_numbers = #tpu.dot_dimension_numbers<[1], [0], [0], [1], [0, 0, 1, 1], [], []>} : vector<128x1152xbf16>, vector<1152x128xbf16>, vector<128x128xf32> -> vector<128x128xf32>
    %c0_123 = arith.constant 0 : index
    %c0_124 = arith.constant 0 : index
    %86 = vector.load %arg6[%c0_123, %c0_124] : memref<1x128xf32, #tpu.memory_space<vmem>>, vector<1x128xf32>
    %87 = vector.shape_cast %86 : vector<1x128xf32> to vector<128xf32>
    %88 = vector.shape_cast %87 : vector<128xf32> to vector<1x128xf32>
    %89 = vector.broadcast %88 : vector<1x128xf32> to vector<128x128xf32>
    %90 = arith.addf %85, %89 : vector<128x128xf32>
    %c0_125 = arith.constant 0 : index
    %91 = arith.index_cast %4 : i32 to index
    %c0_126 = arith.constant 0 : index
    %c0_127 = arith.constant 0 : index
    %92 = vector.load %arg2[%c0_125, %91, %c0_126, %c0_127] : memref<1x16x16x128xf32, #tpu.memory_space<vmem>>, vector<1x8x16x128xf32>
    %93 = vector.shape_cast %92 : vector<1x8x16x128xf32> to vector<8x16x128xf32>
    %94 = vector.shape_cast %93 : vector<8x16x128xf32> to vector<128x128xf32>
    %95 = arith.addf %90, %94 : vector<128x128xf32>
    %cst_128 = arith.constant 0.000000e+00 : f32
    %96 = vector.broadcast %cst_128 : f32 to vector<128x128xf32>
    %97 = arith.maximumf %95, %96 : vector<128x128xf32>
    %98 = vector.shape_cast %97 : vector<128x128xf32> to vector<1x8x16x128xf32>
    %99 = arith.truncf %98 : vector<1x8x16x128xf32> to vector<1x8x16x128xbf16>
    %c0_129 = arith.constant 0 : index
    %c0_130 = arith.constant 0 : index
    %c0_131 = arith.constant 0 : index
    %c0_132 = arith.constant 0 : index
    %100 = vector.load %arg7[%c0_129, %c0_130, %c0_131, %c0_132] : memref<1x8x16x128xbf16, #tpu.memory_space<vmem>>, vector<1x8x16x128xbf16>
    tpu.vector_store %arg7[%c0_129, %c0_130, %c0_131, %c0_132], %99 {strides = array<i32>} : memref<1x8x16x128xbf16, #tpu.memory_space<vmem>>, vector<1x8x16x128xbf16>,
    return
  }
  func.func @transform_0(%arg0: i32, %arg1: i32) -> (i32, i32, i32, i32) {
    %c0_i32 = arith.constant 0 : i32
    %c0_i32_0 = arith.constant 0 : i32
    %c0_i32_1 = arith.constant 0 : i32
    %c0_i32_2 = arith.constant 0 : i32
    return %arg0, %c0_i32, %c0_i32_0, %c0_i32_1 : i32, i32, i32, i32
  }
  func.func @transform_1(%arg0: i32, %arg1: i32) -> (i32, i32) {
    %c0_i32 = arith.constant 0 : i32
    %c0_i32_0 = arith.constant 0 : i32
    %c0_i32_1 = arith.constant 0 : i32
    return %c0_i32, %c0_i32_0 : i32, i32
  }
  func.func @transform_2(%arg0: i32, %arg1: i32) -> (i32, i32) {
    %c0_i32 = arith.constant 0 : i32
    %c0_i32_0 = arith.constant 0 : i32
    %c0_i32_1 = arith.constant 0 : i32
    return %c0_i32, %c0_i32_0 : i32, i32
  }
  func.func @transform_3(%arg0: i32, %arg1: i32) -> (i32, i32) {
    %c0_i32 = arith.constant 0 : i32
    %c0_i32_0 = arith.constant 0 : i32
    %c0_i32_1 = arith.constant 0 : i32
    return %c0_i32, %c0_i32_0 : i32, i32
  }
  func.func @transform_4(%arg0: i32, %arg1: i32) -> (i32, i32) {
    %c0_i32 = arith.constant 0 : i32
    %c0_i32_0 = arith.constant 0 : i32
    %c0_i32_1 = arith.constant 0 : i32
    return %c0_i32, %c0_i32_0 : i32, i32
  }
  func.func @transform_5(%arg0: i32, %arg1: i32) -> (i32, i32, i32, i32) {
    %c0_i32 = arith.constant 0 : i32
    %c0_i32_0 = arith.constant 0 : i32
    %c0_i32_1 = arith.constant 0 : i32
    return %arg0, %arg1, %c0_i32, %c0_i32_0 : i32, i32, i32, i32
  }
}

</mosaic_0001>

<bundles_post_ra>
// kernel: residual_block_forward.1
= control target key start
LH: loop header
LB: loop body
LE: loop exit
PB: predicated region body
PF: predicated region fallthrough
CT: control target
= control target key end

     0   :  { %s8695_s18 = smov 0   ;;  %s8697_s19 = smov 0   ;;  %s10123_s0 = inlined_call_operand.vmem [shape: f32[2,16,16,128], index: 0, kind: input, shape index: {}]   ;;  %s10124_s1 = inlined_call_operand.vmem [shape: bf16[1152,128], index: 1, kind: input, shape index: {}]   ;;  %s10125_s2 = inlined_call_operand.vmem [shape: f32[1,128], index: 2, kind: input, shape index: {}]   ;;  %s10126_s3 = inlined_call_operand.vmem [shape: bf16[1152,128], index: 3, kind: input, shape index: {}]   ;;  %s10127_s4 = inlined_call_operand.vmem [shape: f32[1,128], index: 4, kind: input, shape index: {}]   ;;  %s10128_s5 = inlined_call_operand.vmem [shape: bf16[2,16,16,128], index: 5, kind: output, shape index: {}]  }
   0x1   :  { %s8699_s20 = smov 0   ;;  %s8701_s21 = smov 0  }
   0x2   :  { %s8703_s22 = smov 0  }
   0x3 LB: > { %s24_s23 = sadd.s32 1, %s8652_s20  ;;  %s27_s24 = sadd.s32 1, %s8656_s21  ;;  %s8660_s22 = sphi %s8703_s22, %s15_s22   ;;  %s8656_s21 = sphi %s8701_s21, %s10148_s21   ;;  %s8652_s20 = sphi %s8699_s20, %s10147_s20   ;;  %s8648_s19 = sphi %s8697_s19, %s10146_s19   ;;  %s8644_s18 = sphi %s8695_s18, %s10145_s18  }
   0x4   : > { %p25_p0 = scmp.ge.s32.totalorder %s24_s23, 2  ;;  %p6721_p1 = scmp.ge.s32.totalorder %s8660_s22, 1 }
   0x5   : > { %p201_p2 = scmp.lt.s32.totalorder %s8660_s22, 5 }
   0x6   : > { %s10150_s23 = smov (%p25_p0, %s24_s23), 0  ;;  %s10152_s24 = smov (!%p25_p0, %s27_s24), %s8656_s21 }
   0x7   : > { %p202_p3 = pnand %p6721_p1, %p201_p2  ;;  %p29_p4 = scmp.ge.s32.totalorder %s10152_s24, 2 }
   0x8   : > { %p234_p5 = scmp.lt.s32.totalorder (!%p202_p3), %s8648_s19, 1  ;;  %s6724_s25 = sshll.u32 (!%p202_p3), %s8644_s18, 3 }
   0x9   : > { %s10154_s24 = smov (%p29_p4, %s10152_s24), 0  ;;  %205 = sbr.rel (%p202_p3) target bundleno = 1018 (0x3fa), region = 40 }
   0xa   : > { %p242_p6 = scmp.lt.s32.totalorder (!%p202_p3), %s6724_s25, 15  ;;  %p6728_p7 = scmp.ne.s32.totalorder (!%p202_p3), %s8644_s18, 0 }
  0x10   : > { %s10156_s19 = smov (!%p234_p5, %s8648_s19), 1  ;;  %s10158_s25 = smov (!%p242_p6, %s6724_s25), 15 }
  0x11   : > { %s7385_s26 = sshll.u32 %s10156_s19, 8  ;;  %s6726_s27 = sshll.u32 %s10156_s19, 5  ;;  %vm268_vm0 = vcmask (!%p6728_p7), 1040384   ;;  %vm269_vm1 = vsmask.f32 (!%p6728_p7), 256  ;;  %v8662_v1 = vmov (!%p6728_p7), 0  }
  0x12   : > { %s8731_s30 = scalar_lea.vmem %s10123_s0, %s7385_s26  ;;  %s6725_s6 = sshll.u32 %s10158_s25, 1  ;;  %v277_v0 = vld [vmem:[#allocation2 + $0x18] sm:$0x1] (!%p6728_p7)  ;;  %255 = vst [vmem:[#allocation2] sm:$0xf] (!%p6728_p7), %v8662_v1  ;;  %vm8743_vm2 = vmand (!%p6728_p7), %vm268_vm0, %vm269_vm1  ;;  %vm844_vm5 = vcmask (!%p6728_p7), 1043456  }
  0x13   : > { %s246_s7 = sadd.s32 %s6726_s27, %s6725_s6  ;;  %254 = sbr.rel (%p6728_p7) target bundleno = 121 (0x79), region = 44  ;;  %256 = vst [vmem:[#allocation2 + $0x4] sm:$0xf] (!%p6728_p7), %v8662_v1  ;;  %257 = vst [vmem:[#allocation2 + $0x8] sm:$0x1] (!%p6728_p7), %v8662_v1  ;;  %v278_v5 = vsel (!%p6728_p7), %vm8743_vm2, 0, %v277_v0 }
  0x14   : > { %s6727_s8 = sshll.u32 %s246_s7, 2  ;;  %258 = vst [vmem:[#allocation2 + $0xc] sm:$0xf] (!%p6728_p7), %v8662_v1  ;;  %259 = vst [vmem:[#allocation2 + $0x10] sm:$0xf] (!%p6728_p7), %v8662_v1  ;;  %v393_v49 = vld [vmem:[%s8731_s30] sm:$0xff] (!%p6728_p7) }
  0x15   : > { %s8736_s11 = scalar_lea.vmem %s10128_s5, %s6727_s8  ;;  %260 = vst [vmem:[#allocation2 + $0x14] sm:$0x1] (!%p6728_p7), %v8662_v1  ;;  %262 = vst [vmem:[#allocation2 + $0xd8] sm:$0xf] (!%p6728_p7), %v8662_v1  ;;  %v280_v3 = vld [vmem:[#allocation2 + $0x24] sm:$0x1] (!%p6728_p7) }
  0x16   : > { %263 = vst [vmem:[#allocation2 + $0xdc] sm:$0xf] (!%p6728_p7), %v8662_v1  ;;  %264 = vst [vmem:[#allocation2 + $0xe0] sm:$0x1] (!%p6728_p7), %v8662_v1  ;;  %v283_v4 = vld [vmem:[#allocation2 + $0x30] sm:$0x1] (!%p6728_p7) }
  0x17   : > { %265 = vst [vmem:[#allocation2 + $0xe4] sm:$0xf] (!%p6728_p7), %v8662_v1  ;;  %266 = vst [vmem:[#allocation2 + $0xe8] sm:$0xf] (!%p6728_p7), %v8662_v1  ;;  %vm331_vm3 = vsmask.f32 (!%p6728_p7), 7938 }
  0x18   : > { %267 = vst [vmem:[#allocation2 + $0xec] sm:$0x1] (!%p6728_p7), %v8662_v1  ;;  %v281_v6 = vsel (!%p6728_p7), %vm8743_vm2, 0, %v280_v3  ;;  %v284_v7 = vsel (!%p6728_p7), %vm8743_vm2, 0, %v283_v4  ;;  %v286_v8 = vld [vmem:[#allocation2 + $0x3c] sm:$0x1] (!%p6728_p7)  ;;  %vm8773_vm4 = vmand (!%p6728_p7), %vm268_vm0, %vm331_vm3 }
  0x19   : > { %279 = vst [vmem:[#allocation2 + $0x18] sm:$0x1] (!%p6728_p7), %v278_v5  ;;  %282 = vst [vmem:[#allocation2 + $0x24] sm:$0x1] (!%p6728_p7), %v281_v6  ;;  %v287_v9 = vsel (!%p6728_p7), %vm8743_vm2, 0, %v286_v8 }
  0x1a   : > { %285 = vst [vmem:[#allocation2 + $0x30] sm:$0x1] %v284_v7  ;;  %v289_v10 = vld [vmem:[#allocation2 + $0x48] sm:$0x1]  ;;  %v292_v11 = vld [vmem:[#allocation2 + $0x54] sm:$0x1]  ;;  %v7386_v7 = vpack.c.bf16 %v393_v49, %v393_v49  ;;  %vm8839_vm6 = vmand %vm844_vm5, %vm331_vm3 }
  0x1b   : > { %288 = vst [vmem:[#allocation2 + $0x3c] sm:$0x1] %v287_v9  ;;  %v290_v12 = vsel %vm8743_vm2, 0, %v289_v10  ;;  %v293_v13 = vsel %vm8743_vm2, 0, %v292_v11  ;;  %v295_v14 = vld [vmem:[#allocation2 + $0x60] sm:$0x1] }
  0x1c   : > { %v298_v15 = vld [vmem:[#allocation2 + $0x6c] sm:$0x1]  ;;  %291 = vst [vmem:[#allocation2 + $0x48] sm:$0x1] %v290_v12  ;;  %294 = vst [vmem:[#allocation2 + $0x54] sm:$0x1] %v293_v13 }
  0x1d   : > { %v296_v16 = vsel %vm8743_vm2, 0, %v295_v14  ;;  %v299_v17 = vsel %vm8743_vm2, 0, %v298_v15  ;;  %v301_v18 = vld [vmem:[#allocation2 + $0x78] sm:$0x1]  ;;  %v304_v19 = vld [vmem:[#allocation2 + $0x84] sm:$0x1] }
  0x1e   : > { %297 = vst [vmem:[#allocation2 + $0x60] sm:$0x1] %v296_v16  ;;  %300 = vst [vmem:[#allocation2 + $0x6c] sm:$0x1] %v299_v17  ;;  %v302_v20 = vsel %vm8743_vm2, 0, %v301_v18  ;;  %v305_v21 = vsel %vm8743_vm2, 0, %v304_v19 }
  0x1f   : > { %v307_v22 = vld [vmem:[#allocation2 + $0x90] sm:$0x1]  ;;  %v310_v23 = vld [vmem:[#allocation2 + $0x9c] sm:$0x1]  ;;  %303 = vst [vmem:[#allocation2 + $0x78] sm:$0x1] %v302_v20 }
  0x20   : > { %306 = vst [vmem:[#allocation2 + $0x84] sm:$0x1] %v305_v21  ;;  %v308_v24 = vsel %vm8743_vm2, 0, %v307_v22  ;;  %v311_v25 = vsel %vm8743_vm2, 0, %v310_v23  ;;  %v313_v26 = vld [vmem:[#allocation2 + $0xa8] sm:$0x1] }
  0x21   : > { %v316_v27 = vld [vmem:[#allocation2 + $0xb4] sm:$0x1]  ;;  %309 = vst [vmem:[#allocation2 + $0x90] sm:$0x1] %v308_v24  ;;  %312 = vst [vmem:[#allocation2 + $0x9c] sm:$0x1] %v311_v25 }
  0x22   : > { %v314_v29 = vsel %vm8743_vm2, 0, %v313_v26  ;;  %v317_v30 = vsel %vm8743_vm2, 0, %v316_v27  ;;  %v319_v31 = vld [vmem:[#allocation2 + $0xc0] sm:$0x1]  ;;  %v322_v32 = vld [vmem:[#allocation2 + $0xcc] sm:$0x1] }
  0x23   : > { %315 = vst [vmem:[#allocation2 + $0xa8] sm:$0x1] %v314_v29  ;;  %318 = vst [vmem:[#allocation2 + $0xb4] sm:$0x1] %v317_v30  ;;  %v320_v33 = vsel %vm8743_vm2, 0, %v319_v31  ;;  %v323_v34 = vsel %vm8743_vm2, 0, %v322_v32 }
  0x24   : > { %v339_v35 = vld [vmem:[#allocation2 + $0x20] sm:$0x1]  ;;  %v342_v36 = vld [vmem:[#allocation2 + $0x2c] sm:$0x1]  ;;  %321 = vst [vmem:[#allocation2 + $0xc0] sm:$0x1] %v320_v33 }
  0x25   : > { %324 = vst [vmem:[#allocation2 + $0xcc] sm:$0x1] %v323_v34  ;;  %v340_v37 = vsel %vm8773_vm4, 0, %v339_v35  ;;  %v343_v38 = vsel %vm8773_vm4, 0, %v342_v36  ;;  %v345_v39 = vld [vmem:[#allocation2 + $0x38] sm:$0x1] }
  0x26   : > { %v348_v40 = vld [vmem:[#allocation2 + $0x44] sm:$0x1]  ;;  %341 = vst [vmem:[#allocation2 + $0x20] sm:$0x1] %v340_v37  ;;  %344 = vst [vmem:[#allocation2 + $0x2c] sm:$0x1] %v343_v38 }
  0x27   : > { %v346_v41 = vsel %vm8773_vm4, 0, %v345_v39  ;;  %v349_v42 = vsel %vm8773_vm4, 0, %v348_v40  ;;  %v351_v43 = vld [vmem:[#allocation2 + $0x50] sm:$0x1]  ;;  %v354_v44 = vld [vmem:[#allocation2 + $0x5c] sm:$0x1] }
  0x28   : > { %347 = vst [vmem:[#allocation2 + $0x38] sm:$0x1] %v346_v41  ;;  %350 = vst [vmem:[#allocation2 + $0x44] sm:$0x1] %v349_v42  ;;  %v352_v45 = vsel %vm8773_vm4, 0, %v351_v43  ;;  %v355_v46 = vsel %vm8773_vm4, 0, %v354_v44 }
  0x29   : > { %v357_v47 = vld [vmem:[#allocation2 + $0x68] sm:$0x1]  ;;  %v360_v48 = vld [vmem:[#allocation2 + $0x74] sm:$0x1]  ;;  %353 = vst [vmem:[#allocation2 + $0x50] sm:$0x1] %v352_v45 }
  0x2a   : > { %356 = vst [vmem:[#allocation2 + $0x5c] sm:$0x1] %v355_v46  ;;  %v358_v50 = vsel %vm8773_vm4, 0, %v357_v47  ;;  %v361_v51 = vsel %vm8773_vm4, 0, %v360_v48  ;;  %v363_v52 = vld [vmem:[#allocation2 + $0x80] sm:$0x1] }
  0x2b   : > { %v366_v53 = vld [vmem:[#allocation2 + $0x8c] sm:$0x1]  ;;  %359 = vst [vmem:[#allocation2 + $0x68] sm:$0x1] %v358_v50  ;;  %362 = vst [vmem:[#allocation2 + $0x74] sm:$0x1] %v361_v51 }
  0x2c   : > { %v364_v54 = vsel %vm8773_vm4, 0, %v363_v52  ;;  %v367_v55 = vsel %vm8773_vm4, 0, %v366_v53  ;;  %v369_v56 = vld [vmem:[#allocation2 + $0x98] sm:$0x1]  ;;  %v372_v57 = vld [vmem:[#allocation2 + $0xa4] sm:$0x1] }
  0x2d   : > { %365 = vst [vmem:[#allocation2 + $0x80] sm:$0x1] %v364_v54  ;;  %368 = vst [vmem:[#allocation2 + $0x8c] sm:$0x1] %v367_v55  ;;  %v370_v58 = vsel %vm8773_vm4, 0, %v369_v56  ;;  %v373_v59 = vsel %vm8773_vm4, 0, %v372_v57 }
  0x2e   : > { %v375_v60 = vld [vmem:[#allocation2 + $0xb0] sm:$0x1]  ;;  %v378_v61 = vld [vmem:[#allocation2 + $0xbc] sm:$0x1]  ;;  %371 = vst [vmem:[#allocation2 + $0x98] sm:$0x1] %v370_v58 }
  0x2f   : > { %374 = vst [vmem:[#allocation2 + $0xa4] sm:$0x1] %v373_v59  ;;  %v376_v62 = vsel %vm8773_vm4, 0, %v375_v60  ;;  %v379_v63 = vsel %vm8773_vm4, 0, %v378_v61  ;;  %v381_v0 = vld [vmem:[#allocation2 + $0xc8] sm:$0x1] }
  0x30   : > { %v384_v1 = vld [vmem:[#allocation2 + $0xd4] sm:$0x1]  ;;  %377 = vst [vmem:[#allocation2 + $0xb0] sm:$0x1] %v376_v62  ;;  %380 = vst [vmem:[#allocation2 + $0xbc] sm:$0x1] %v379_v63 }
  0x31   : > { %v382_v3 = vsel %vm8773_vm4, 0, %v381_v0  ;;  %v385_v4 = vsel %vm8773_vm4, 0, %v384_v1  ;;  %v271_v5 = vld [vmem:[#allocation2] sm:$0x1]  ;;  %v274_v6 = vld [vmem:[#allocation2 + $0xc] sm:$0x1] }
  0x32   : > { %383 = vst [vmem:[#allocation2 + $0xc8] sm:$0x1] %v382_v3  ;;  %386 = vst [vmem:[#allocation2 + $0xd4] sm:$0x1] %v385_v4  ;;  %v272_v8 = vsel %vm8743_vm2, 0, %v271_v5  ;;  %v275_v9 = vsel %vm8743_vm2, 0, %v274_v6 }
  0x33   : > { %v325_v10 = vld [vmem:[#allocation2 + $0xd8] sm:$0x1]  ;;  %v328_v11 = vld [vmem:[#allocation2 + $0xe4] sm:$0x1]  ;;  %273 = vst [vmem:[#allocation2] sm:$0x1] %v272_v8 }
  0x34   : > { %276 = vst [vmem:[#allocation2 + $0xc] sm:$0x1] %v275_v9  ;;  %v326_v12 = vsel %vm8743_vm2, 0, %v325_v10  ;;  %v329_v13 = vsel %vm8743_vm2, 0, %v328_v11  ;;  %v333_v14 = vld [vmem:[#allocation2 + $0x8] sm:$0x1] }
  0x35   : > { %v336_v15 = vld [vmem:[#allocation2 + $0x14] sm:$0x1]  ;;  %327 = vst [vmem:[#allocation2 + $0xd8] sm:$0x1] %v326_v12  ;;  %330 = vst [vmem:[#allocation2 + $0xe4] sm:$0x1] %v329_v13 }
  0x36   : > { %v334_v16 = vsel %vm8773_vm4, 0, %v333_v14  ;;  %v337_v17 = vsel %vm8773_vm4, 0, %v336_v15  ;;  %v387_v18 = vld [vmem:[#allocation2 + $0xe0] sm:$0x1]  ;;  %v390_v19 = vld [vmem:[#allocation2 + $0xec] sm:$0x1] }
  0x37   : > { %335 = vst [vmem:[#allocation2 + $0x8] sm:$0x1] %v334_v16  ;;  %338 = vst [vmem:[#allocation2 + $0x14] sm:$0x1] %v337_v17  ;;  %v388_v20 = vsel %vm8773_vm4, 0, %v387_v18  ;;  %v391_v21 = vsel %vm8773_vm4, 0, %v390_v19 }
  0x38   : > { %v524_v22 = vshrl.u32 %v7386_v7, 16  ;;  %v527_v23 = vshll.u32 %v7386_v7, 16  ;;  %389 = vst [vmem:[#allocation2 + $0xe0] sm:$0x1] %v388_v20  ;;  %392 = vst [vmem:[#allocation2 + $0xec] sm:$0x1] %v391_v21 }
  0x39   : > { %v394_v24 = vld [vmem:[%s8731_s30 + $0x8] sm:$0xff]  ;;  %v395_v25 = vld [vmem:[%s8731_s30 + $0x10] sm:$0xff]  ;;  %v396_v30 = vld [vmem:[%s8731_s30 + $0x18] sm:$0xff]  ;;  %vm521_vm7 = vsmask.f32 4368 }
  0x3a   : > { %v526_v26 = vrot.slane %v524_v22, 7  ;;  %v7387_v27 = vpack.c.bf16 %v394_v24, %v394_v24  ;;  %v7388_v29 = vpack.c.bf16 %v395_v25, %v395_v25  ;;  %v846_v28 = vld [vmem:[#allocation2 + $0x18] sm:$0xf]  ;;  %v7389_v32 = vpack.c.bf16 %v396_v30, %v396_v30  ;;  %v397_v33 = vld [vmem:[%s8731_s30 + $0x20] sm:$0xff]  ;;  %v398_v38 = vld [vmem:[%s8731_s30 + $0x28] sm:$0xff] }
  0x3b   : > { %v399_v43 = vld [vmem:[%s8731_s30 + $0x30] sm:$0xff]  ;;  %v400_v44 = vld [vmem:[%s8731_s30 + $0x38] sm:$0xff]  ;;  %v7390_v47 = vpack.c.bf16 %v397_v33, %v397_v33  ;;  %v7391_v48 = vpack.c.bf16 %v398_v38, %v398_v38  ;;  %vm8851_vm8 = vmor %vm269_vm1, %vm521_vm7 }
  0x3c   : > { %v529_v34 = vor.u32 %v527_v23, %v526_v26  ;;  %v530_v35 = vrot.slane %v526_v26, 4  ;;  %v532_v36 = vshrl.u32 %v7387_v27, 16  ;;  %v535_v37 = vshll.u32 %v7387_v27, 16  ;;  %v850_v50 = vld [vmem:[#allocation2 + $0x20] sm:$0x1]  ;;  %v402_v16 = vld [vmem:[%s8731_s30 + $0x48] sm:$0xff] }
  0x3d   : > { %v541_v39 = vshrl.u32 %v7388_v29, 16  ;;  %v544_v40 = vshll.u32 %v7388_v29, 16  ;;  %v549_v41 = vshrl.u32 %v7389_v32, 16  ;;  %v552_v42 = vshll.u32 %v7389_v32, 16  ;;  %v853_v52 = vld [vmem:[#allocation2 + $0x24] sm:$0xf] }
  0x3e   : > { %v847_v45 = vsel %vm8839_vm6, %v529_v34, %v846_v28  ;;  %v534_v46 = vrot.slane %v532_v36, 7  ;;  %v7392_v54 = vpack.c.bf16 %v399_v43, %v399_v43  ;;  %v7393_v55 = vpack.c.bf16 %v400_v44, %v400_v44  ;;  %v857_v58 = vld [vmem:[#allocation2 + $0x2c] sm:$0x1]  ;;  %v401_v6 = vld [vmem:[%s8731_s30 + $0x40] sm:$0xff]  ;;  %v860_v10 = vld [vmem:[#allocation2 + $0x30] sm:$0xf] }
  0x3f   : > { %848 = vst [vmem:[#allocation2 + $0x18] sm:$0xf] %v847_v45  ;;  %v543_v51 = vrot.slane %v541_v39, 7  ;;  %v551_v53 = vrot.slane %v549_v41, 7  ;;  %v558_v59 = vshrl.u32 %v7390_v47, 16  ;;  %v561_v60 = vshll.u32 %v7390_v47, 16 }
  0x40   : > { %v537_v56 = vor.u32 %v535_v37, %v534_v46  ;;  %v539_v57 = vrot.slane %v534_v46, 4  ;;  %v566_v5 = vshrl.u32 %v7391_v48, 16  ;;  %v569_v11 = vshll.u32 %v7391_v48, 16  ;;  %v864_v17 = vld [vmem:[#allocation2 + $0x38] sm:$0x1]  ;;  %v403_v32 = vld [vmem:[%s8731_s30 + $0x50] sm:$0xff] }
  0x41   : > { %v546_v61 = vor.u32 %v544_v40, %v543_v51  ;;  %v547_v62 = vrot.slane %v543_v51, 4  ;;  %v554_v63 = vor.u32 %v552_v42, %v551_v53  ;;  %v556_v0 = vrot.slane %v551_v53, 4  ;;  %v867_v26 = vld [vmem:[#allocation2 + $0x3c] sm:$0xf]  ;;  %v871_v38 = vld [vmem:[#allocation2 + $0x44] sm:$0x1] }
  0x42   : > { %v538_v1 = vsel %vm8851_vm8, %v530_v35, %v537_v56  ;;  %v851_v3 = vsel %vm8743_vm2, %v539_v57, %v850_v50  ;;  %v560_v4 = vrot.slane %v558_v59, 7  ;;  %v568_v14 = vrot.slane %v566_v5, 7  ;;  %v404_v33 = vld [vmem:[%s8731_s30 + $0x58] sm:$0xff]  ;;  %v874_v44 = vld [vmem:[#allocation2 + $0x48] sm:$0xf]  ;;  %v405_v48 = vld [vmem:[%s8731_s30 + $0x60] sm:$0xff] }
  0x43   : > { %849 = vst [vmem:[#allocation2 + $0x1c] sm:$0xf] %v538_v1  ;;  %852 = vst [vmem:[#allocation2 + $0x20] sm:$0x1] %v851_v3  ;;  %v854_v7 = vsel %vm8839_vm6, %v546_v61, %v853_v52  ;;  %v555_v8 = vsel %vm8851_vm8, %v547_v62, %v554_v63  ;;  %v858_v9 = vsel %vm8743_vm2, %v556_v0, %v857_v58  ;;  %v575_v15 = vshrl.u32 %v7392_v54, 16  ;;  %v406_v50 = vld [vmem:[%s8731_s30 + $0x68] sm:$0xff] }
  0x44   : > { %855 = vst [vmem:[#allocation2 + $0x24] sm:$0xf] %v854_v7  ;;  %856 = vst [vmem:[#allocation2 + $0x28] sm:$0xf] %v555_v8  ;;  %v563_v12 = vor.u32 %v561_v60, %v560_v4  ;;  %v564_v13 = vrot.slane %v560_v4, 4  ;;  %v578_v18 = vshll.u32 %v7392_v54, 16  ;;  %v7394_v21 = vpack.c.bf16 %v401_v6, %v401_v6 }
  0x45   : > { %859 = vst [vmem:[#allocation2 + $0x2c] sm:$0x1] %v858_v9  ;;  %v583_v19 = vshrl.u32 %v7393_v55, 16  ;;  %v586_v20 = vshll.u32 %v7393_v55, 16  ;;  %v571_v23 = vor.u32 %v569_v11, %v568_v14  ;;  %v573_v24 = vrot.slane %v568_v14, 4  ;;  %v407_v6 = vld [vmem:[%s8731_s30 + $0x70] sm:$0xff] }
  0x46   : > { %v861_v22 = vsel %vm8839_vm6, %v563_v12, %v860_v10  ;;  %v577_v25 = vrot.slane %v575_v15, 7  ;;  %v592_v29 = vshrl.u32 %v7394_v21, 16  ;;  %v595_v30 = vshll.u32 %v7394_v21, 16  ;;  %v878_v60 = vld [vmem:[#allocation2 + $0x50] sm:$0x1]  ;;  %v408_v11 = vld [vmem:[%s8731_s30 + $0x78] sm:$0xff] }
  0x47   : > { %862 = vst [vmem:[#allocation2 + $0x30] sm:$0xf] %v861_v22  ;;  %v585_v27 = vrot.slane %v583_v19, 7  ;;  %v7395_v28 = vpack.c.bf16 %v402_v16, %v402_v16  ;;  %v572_v34 = vsel %vm8851_vm8, %v564_v13, %v571_v23  ;;  %v865_v35 = vsel %vm8743_vm2, %v573_v24, %v864_v17  ;;  %v881_v4 = vld [vmem:[#allocation2 + $0x54] sm:$0xf]  ;;  %v409_v12 = vld [vmem:[%s8731_s30 + $0x80] sm:$0xff] }
  0x48   : > { %v580_v36 = vor.u32 %v578_v18, %v577_v25  ;;  %v581_v37 = vrot.slane %v577_v25, 4  ;;  %863 = vst [vmem:[#allocation2 + $0x34] sm:$0xf] %v572_v34  ;;  %866 = vst [vmem:[#allocation2 + $0x38] sm:$0x1] %v865_v35  ;;  %v594_v41 = vrot.slane %v592_v29, 7  ;;  %v7396_v46 = vpack.c.bf16 %v403_v32, %v403_v32 }
  0x49   : > { %v588_v39 = vor.u32 %v586_v20, %v585_v27  ;;  %v590_v40 = vrot.slane %v585_v27, 4  ;;  %v600_v42 = vshrl.u32 %v7395_v28, 16  ;;  %v603_v45 = vshll.u32 %v7395_v28, 16  ;;  %v885_v17 = vld [vmem:[#allocation2 + $0x5c] sm:$0x1] }
  0x4a   : > { %v868_v43 = vsel %vm8839_vm6, %v580_v36, %v867_v26  ;;  %v7397_v47 = vpack.c.bf16 %v404_v33, %v404_v33  ;;  %v597_v53 = vor.u32 %v595_v30, %v594_v41  ;;  %v598_v54 = vrot.slane %v594_v41, 4  ;;  %v888_v23 = vld [vmem:[#allocation2 + $0x60] sm:$0xf]  ;;  %v892_v32 = vld [vmem:[#allocation2 + $0x68] sm:$0x1] }
  0x4b   : > { %869 = vst [vmem:[#allocation2 + $0x3c] sm:$0xf] %v868_v43  ;;  %v589_v51 = vsel %vm8851_vm8, %v581_v37, %v588_v39  ;;  %v872_v52 = vsel %vm8743_vm2, %v590_v40, %v871_v38  ;;  %v602_v55 = vrot.slane %v600_v42, 7  ;;  %v609_v56 = vshrl.u32 %v7396_v46, 16  ;;  %v410_v37 = vld [vmem:[%s8731_s30 + $0x88] sm:$0xff]  ;;  %v411_v38 = vld [vmem:[%s8731_s30 + $0x90] sm:$0xff] }
  0x4c   : > { %870 = vst [vmem:[#allocation2 + $0x40] sm:$0xf] %v589_v51  ;;  %873 = vst [vmem:[#allocation2 + $0x44] sm:$0x1] %v872_v52  ;;  %v612_v57 = vshll.u32 %v7396_v46, 16  ;;  %v617_v58 = vshrl.u32 %v7397_v47, 16  ;;  %v875_v59 = vsel %vm8839_vm6, %v597_v53, %v874_v44  ;;  %v7398_v62 = vpack.c.bf16 %v405_v48, %v405_v48 }
  0x4d   : > { %v620_v61 = vshll.u32 %v7397_v47, 16  ;;  %v7399_v63 = vpack.c.bf16 %v406_v50, %v406_v50  ;;  %876 = vst [vmem:[#allocation2 + $0x48] sm:$0xf] %v875_v59  ;;  %v605_v0 = vor.u32 %v603_v45, %v602_v55  ;;  %v607_v1 = vrot.slane %v602_v55, 4  ;;  %v412_v43 = vld [vmem:[%s8731_s30 + $0x98] sm:$0xff]  ;;  %v413_v44 = vld [vmem:[%s8731_s30 + $0xa0] sm:$0xff] }
  0x4e   : > { %v611_v3 = vrot.slane %v609_v56, 7  ;;  %v619_v5 = vrot.slane %v617_v58, 7  ;;  %v626_v7 = vshrl.u32 %v7398_v62, 16  ;;  %v629_v8 = vshll.u32 %v7398_v62, 16  ;;  %v895_v50 = vld [vmem:[#allocation2 + $0x6c] sm:$0xf] }
  0x4f   : > { %v634_v9 = vshrl.u32 %v7399_v63, 16  ;;  %v637_v10 = vshll.u32 %v7399_v63, 16  ;;  %v606_v13 = vsel %vm8851_vm8, %v598_v54, %v605_v0  ;;  %v879_v14 = vsel %vm8743_vm2, %v607_v1, %v878_v60  ;;  %v902_v58 = vld [vmem:[#allocation2 + $0x78] sm:$0xf] }
  0x50   : > { %v614_v15 = vor.u32 %v612_v57, %v611_v3  ;;  %v615_v16 = vrot.slane %v611_v3, 4  ;;  %877 = vst [vmem:[#allocation2 + $0x4c] sm:$0xf] %v606_v13  ;;  %880 = vst [vmem:[#allocation2 + $0x50] sm:$0x1] %v879_v14  ;;  %v622_v18 = vor.u32 %v620_v61, %v619_v5  ;;  %v624_v19 = vrot.slane %v619_v5, 4 }
  0x51   : > { %v628_v20 = vrot.slane %v626_v7, 7  ;;  %v636_v21 = vrot.slane %v634_v9, 7  ;;  %v7400_v24 = vpack.c.bf16 %v407_v6, %v407_v6  ;;  %v7401_v25 = vpack.c.bf16 %v408_v11, %v408_v11  ;;  %v899_v57 = vld [vmem:[#allocation2 + $0x74] sm:$0x1]  ;;  %v414_v6 = vld [vmem:[%s8731_s30 + $0xa8] sm:$0xff] }
  0x52   : > { %v882_v22 = vsel %vm8839_vm6, %v614_v15, %v881_v4  ;;  %v7402_v26 = vpack.c.bf16 %v409_v12, %v409_v12  ;;  %v623_v27 = vsel %vm8851_vm8, %v615_v16, %v622_v18  ;;  %v886_v29 = vsel %vm8743_vm2, %v624_v19, %v885_v17  ;;  %v415_v7 = vld [vmem:[%s8731_s30 + $0xb0] sm:$0xff]  ;;  %v906_v16 = vld [vmem:[#allocation2 + $0x80] sm:$0x1]  ;;  %v909_v17 = vld [vmem:[#allocation2 + $0x84] sm:$0xf] }
  0x53   : > { %883 = vst [vmem:[#allocation2 + $0x54] sm:$0xf] %v882_v22  ;;  %v631_v30 = vor.u32 %v629_v8, %v628_v20  ;;  %v632_v28 = vrot.slane %v628_v20, 4  ;;  %884 = vst [vmem:[#allocation2 + $0x58] sm:$0xf] %v623_v27  ;;  %v639_v33 = vor.u32 %v637_v10, %v636_v21  ;;  %v641_v34 = vrot.slane %v636_v21, 4 }
  0x54   : > { %887 = vst [vmem:[#allocation2 + $0x5c] sm:$0x1] %v886_v29  ;;  %v643_v35 = vshrl.u32 %v7400_v24, 16  ;;  %v646_v36 = vshll.u32 %v7400_v24, 16  ;;  %v651_v40 = vshrl.u32 %v7401_v25, 16  ;;  %v654_v41 = vshll.u32 %v7401_v25, 16 }
  0x55   : > { %v889_v39 = vsel %vm8839_vm6, %v631_v30, %v888_v23  ;;  %v660_v42 = vshrl.u32 %v7402_v26, 16  ;;  %v640_v45 = vsel %vm8851_vm8, %v632_v28, %v639_v33  ;;  %v893_v46 = vsel %vm8743_vm2, %v641_v34, %v892_v32  ;;  %v416_v28 = vld [vmem:[%s8731_s30 + $0xb8] sm:$0xff] }
  0x56   : > { %890 = vst [vmem:[#allocation2 + $0x60] sm:$0xf] %v889_v39  ;;  %v645_v47 = vrot.slane %v643_v35, 7  ;;  %v663_v48 = vshll.u32 %v7402_v26, 16  ;;  %891 = vst [vmem:[#allocation2 + $0x64] sm:$0xf] %v640_v45  ;;  %v7403_v53 = vpack.c.bf16 %v410_v37, %v410_v37  ;;  %v7404_v54 = vpack.c.bf16 %v411_v38, %v411_v38 }
  0x57   : > { %894 = vst [vmem:[#allocation2 + $0x68] sm:$0x1] %v893_v46  ;;  %v653_v51 = vrot.slane %v651_v40, 7  ;;  %v662_v52 = vrot.slane %v660_v42, 7  ;;  %v7405_v59 = vpack.c.bf16 %v412_v43, %v412_v43  ;;  %v7406_v60 = vpack.c.bf16 %v413_v44, %v413_v44  ;;  %v913_v35 = vld [vmem:[#allocation2 + $0x8c] sm:$0x1] }
  0x58   : > { %v648_v55 = vor.u32 %v646_v36, %v645_v47  ;;  %v649_v56 = vrot.slane %v645_v47, 4  ;;  %v668_v3 = vshrl.u32 %v7403_v53, 16  ;;  %v671_v4 = vshll.u32 %v7403_v53, 16  ;;  %v916_v36 = vld [vmem:[#allocation2 + $0x90] sm:$0xf]  ;;  %v417_v38 = vld [vmem:[%s8731_s30 + $0xc0] sm:$0xff] }
  0x59   : > { %v656_v61 = vor.u32 %v654_v41, %v653_v51  ;;  %v658_v62 = vrot.slane %v653_v51, 4  ;;  %v665_v63 = vor.u32 %v663_v48, %v662_v52  ;;  %v666_v0 = vrot.slane %v662_v52, 4  ;;  %v920_v51 = vld [vmem:[#allocation2 + $0x98] sm:$0x1]  ;;  %v923_v52 = vld [vmem:[#allocation2 + $0x9c] sm:$0xf] }
  0x5a   : > { %v896_v1 = vsel %vm8839_vm6, %v648_v55, %v895_v50  ;;  %v677_v5 = vshrl.u32 %v7404_v54, 16  ;;  %v680_v11 = vshll.u32 %v7404_v54, 16  ;;  %v670_v12 = vrot.slane %v668_v3, 7  ;;  %v418_v54 = vld [vmem:[%s8731_s30 + $0xc8] sm:$0xff] }
  0x5b   : > { %897 = vst [vmem:[#allocation2 + $0x6c] sm:$0xf] %v896_v1  ;;  %v657_v8 = vsel %vm8851_vm8, %v649_v56, %v656_v61  ;;  %v900_v9 = vsel %vm8743_vm2, %v658_v62, %v899_v57  ;;  %v903_v10 = vsel %vm8839_vm6, %v665_v63, %v902_v58  ;;  %v685_v14 = vshrl.u32 %v7405_v59, 16  ;;  %v421_v1 = vld [vmem:[%s8731_s30 + $0xe0] sm:$0xff]  ;;  %v422_v3 = vld [vmem:[%s8731_s30 + $0xe8] sm:$0xff] }
  0x5c   : > { %898 = vst [vmem:[#allocation2 + $0x70] sm:$0xf] %v657_v8  ;;  %901 = vst [vmem:[#allocation2 + $0x74] sm:$0x1] %v900_v9  ;;  %v679_v13 = vrot.slane %v677_v5, 7  ;;  %v688_v15 = vshll.u32 %v7405_v59, 16  ;;  %v7407_v20 = vpack.c.bf16 %v414_v6, %v414_v6  ;;  %v7408_v21 = vpack.c.bf16 %v415_v7, %v415_v7 }
  0x5d   : > { %904 = vst [vmem:[#allocation2 + $0x78] sm:$0xf] %v903_v10  ;;  %v694_v18 = vshrl.u32 %v7406_v60, 16  ;;  %v697_v19 = vshll.u32 %v7406_v60, 16  ;;  %v673_v22 = vor.u32 %v671_v4, %v670_v12  ;;  %v675_v23 = vrot.slane %v670_v12, 4  ;;  %v419_v59 = vld [vmem:[%s8731_s30 + $0xd0] sm:$0xff] }
  0x5e   : > { %v682_v24 = vor.u32 %v680_v11, %v679_v13  ;;  %v683_v25 = vrot.slane %v679_v13, 4  ;;  %v687_v26 = vrot.slane %v685_v14, 7  ;;  %v702_v29 = vshrl.u32 %v7407_v20, 16  ;;  %v420_v60 = vld [vmem:[%s8731_s30 + $0xd8] sm:$0xff]  ;;  %v927_v12 = vld [vmem:[#allocation2 + $0xa4] sm:$0x1] }
  0x5f   : > { %v696_v27 = vrot.slane %v694_v18, 7  ;;  %v705_v30 = vshll.u32 %v7407_v20, 16  ;;  %v674_v32 = vsel %vm8851_vm8, %v666_v0, %v673_v22  ;;  %v907_v33 = vsel %vm8743_vm2, %v675_v23, %v906_v16  ;;  %v930_v13 = vld [vmem:[#allocation2 + $0xa8] sm:$0xf] }
  0x60   : > { %v910_v34 = vsel %vm8839_vm6, %v682_v24, %v909_v17  ;;  %v711_v37 = vshrl.u32 %v7408_v21, 16  ;;  %905 = vst [vmem:[#allocation2 + $0x7c] sm:$0xf] %v674_v32  ;;  %908 = vst [vmem:[#allocation2 + $0x80] sm:$0x1] %v907_v33  ;;  %v690_v39 = vor.u32 %v688_v15, %v687_v26  ;;  %v692_v40 = vrot.slane %v687_v26, 4 }
  0x61   : > { %911 = vst [vmem:[#allocation2 + $0x84] sm:$0xf] %v910_v34  ;;  %v699_v41 = vor.u32 %v697_v19, %v696_v27  ;;  %v700_v42 = vrot.slane %v696_v27, 4  ;;  %v704_v43 = vrot.slane %v702_v29, 7  ;;  %v714_v45 = vshll.u32 %v7408_v21, 16 }
  0x62   : > { %v713_v44 = vrot.slane %v711_v37, 7  ;;  %v7409_v46 = vpack.c.bf16 %v416_v28, %v416_v28  ;;  %v691_v47 = vsel %vm8851_vm8, %v683_v25, %v690_v39  ;;  %v914_v48 = vsel %vm8743_vm2, %v692_v40, %v913_v35  ;;  %v937_v35 = vld [vmem:[#allocation2 + $0xb4] sm:$0xf] }
  0x63   : > { %v917_v50 = vsel %vm8839_vm6, %v699_v41, %v916_v36  ;;  %v7410_v53 = vpack.c.bf16 %v417_v38, %v417_v38  ;;  %912 = vst [vmem:[#allocation2 + $0x88] sm:$0xf] %v691_v47  ;;  %915 = vst [vmem:[#allocation2 + $0x8c] sm:$0x1] %v914_v48  ;;  %v707_v55 = vor.u32 %v705_v30, %v704_v43  ;;  %v709_v56 = vrot.slane %v704_v43, 4  ;;  %v423_v41 = vld [vmem:[%s8731_s30 + $0xf0] sm:$0xff] }
  0x64   : > { %918 = vst [vmem:[#allocation2 + $0x90] sm:$0xf] %v917_v50  ;;  %v716_v57 = vor.u32 %v714_v45, %v713_v44  ;;  %v717_v58 = vrot.slane %v713_v44, 4  ;;  %v719_v61 = vshrl.u32 %v7409_v46, 16  ;;  %v722_v62 = vshll.u32 %v7409_v46, 16 }
  0x65   : > { %v728_v63 = vshrl.u32 %v7410_v53, 16  ;;  %v731_v0 = vshll.u32 %v7410_v53, 16  ;;  %v708_v4 = vsel %vm8851_vm8, %v700_v42, %v707_v55  ;;  %v921_v5 = vsel %vm8743_vm2, %v709_v56, %v920_v51  ;;  %v934_v30 = vld [vmem:[#allocation2 + $0xb0] sm:$0x1]  ;;  %v424_v42 = vld [vmem:[%s8731_s30 + $0xf8] sm:$0xff] }
  0x66   : > { %v924_v6 = vsel %vm8839_vm6, %v716_v57, %v923_v52  ;;  %v7411_v7 = vpack.c.bf16 %v418_v54, %v418_v54  ;;  %919 = vst [vmem:[#allocation2 + $0x94] sm:$0xf] %v708_v4  ;;  %922 = vst [vmem:[#allocation2 + $0x98] sm:$0x1] %v921_v5  ;;  %v721_v8 = vrot.slane %v719_v61, 7  ;;  %v7412_v10 = vpack.c.bf16 %v419_v59, %v419_v59 }
  0x67   : > { %925 = vst [vmem:[#allocation2 + $0x9c] sm:$0xf] %v924_v6  ;;  %v730_v9 = vrot.slane %v728_v63, 7  ;;  %v7413_v11 = vpack.c.bf16 %v420_v60, %v420_v60  ;;  %v7414_v16 = vpack.c.bf16 %v421_v1, %v421_v1  ;;  %v7415_v17 = vpack.c.bf16 %v422_v3, %v422_v3  ;;  %v941_v47 = vld [vmem:[#allocation2 + $0xbc] sm:$0x1] }
  0x68   : > { %v736_v14 = vshrl.u32 %v7411_v7, 16  ;;  %v739_v15 = vshll.u32 %v7411_v7, 16  ;;  %v724_v18 = vor.u32 %v722_v62, %v721_v8  ;;  %v726_v19 = vrot.slane %v721_v8, 4  ;;  %v944_v54 = vld [vmem:[#allocation2 + $0xc0] sm:$0xf] }
  0x69   : > { %v733_v20 = vor.u32 %v731_v0, %v730_v9  ;;  %v734_v21 = vrot.slane %v730_v9, 4  ;;  %v745_v23 = vshrl.u32 %v7412_v10, 16  ;;  %v748_v24 = vshll.u32 %v7412_v10, 16  ;;  %v948_v61 = vld [vmem:[#allocation2 + $0xc8] sm:$0x1] }
  0x6a   : > { %v738_v22 = vrot.slane %v736_v14, 7  ;;  %v753_v25 = vshrl.u32 %v7413_v11, 16  ;;  %v725_v26 = vsel %vm8851_vm8, %v717_v58, %v724_v18  ;;  %v928_v27 = vsel %vm8743_vm2, %v726_v19, %v927_v12  ;;  %v951_v9 = vld [vmem:[#allocation2 + $0xcc] sm:$0xf] }
  0x6b   : > { %v931_v29 = vsel %vm8839_vm6, %v733_v20, %v930_v13  ;;  %v756_v28 = vshll.u32 %v7413_v11, 16  ;;  %926 = vst [vmem:[#allocation2 + $0xa0] sm:$0xf] %v725_v26  ;;  %929 = vst [vmem:[#allocation2 + $0xa4] sm:$0x1] %v928_v27  ;;  %v747_v34 = vrot.slane %v745_v23, 7  ;;  %v7416_v55 = vpack.c.bf16 %v423_v41, %v423_v41 }
  0x6c   : > { %932 = vst [vmem:[#allocation2 + $0xa8] sm:$0xf] %v931_v29  ;;  %v741_v32 = vor.u32 %v739_v15, %v738_v22  ;;  %v743_v33 = vrot.slane %v738_v22, 4  ;;  %v755_v36 = vrot.slane %v753_v25, 7  ;;  %v762_v37 = vshrl.u32 %v7414_v16, 16 }
  0x6d   : > { %v765_v38 = vshll.u32 %v7414_v16, 16  ;;  %v770_v39 = vshrl.u32 %v7415_v17, 16  ;;  %v773_v40 = vshll.u32 %v7415_v17, 16  ;;  %v750_v45 = vor.u32 %v748_v24, %v747_v34  ;;  %v955_v13 = vld [vmem:[#allocation2 + $0xd4] sm:$0x1] }
  0x6e   : > { %v742_v43 = vsel %vm8851_vm8, %v734_v21, %v741_v32  ;;  %v935_v44 = vsel %vm8743_vm2, %v743_v33, %v934_v30  ;;  %v751_v46 = vrot.slane %v747_v34, 4  ;;  %v758_v48 = vor.u32 %v756_v28, %v755_v36 }
  0x6f   : > { %933 = vst [vmem:[#allocation2 + $0xac] sm:$0xf] %v742_v43  ;;  %936 = vst [vmem:[#allocation2 + $0xb0] sm:$0x1] %v935_v44  ;;  %v760_v50 = vrot.slane %v755_v36, 4  ;;  %v764_v51 = vrot.slane %v762_v37, 7  ;;  %v938_v53 = vsel %vm8839_vm6, %v750_v45, %v937_v35  ;;  %v7417_v56 = vpack.c.bf16 %v424_v42, %v424_v42 }
  0x70   : > { %v772_v52 = vrot.slane %v770_v39, 7  ;;  %939 = vst [vmem:[#allocation2 + $0xb4] sm:$0xf] %v938_v53  ;;  %v759_v57 = vsel %vm8851_vm8, %v751_v46, %v758_v48  ;;  %v779_v0 = vshrl.u32 %v7416_v55, 16  ;;  %v782_v1 = vshll.u32 %v7416_v55, 16 }
  0x71   : > { %v942_v58 = vsel %vm8743_vm2, %v760_v50, %v941_v47  ;;  %v767_v59 = vor.u32 %v765_v38, %v764_v51  ;;  %v768_v60 = vrot.slane %v764_v51, 4  ;;  %940 = vst [vmem:[#allocation2 + $0xb8] sm:$0xf] %v759_v57  ;;  %v787_v4 = vshrl.u32 %v7417_v56, 16 }
  0x72   : > { %943 = vst [vmem:[#allocation2 + $0xbc] sm:$0x1] %v942_v58  ;;  %v775_v62 = vor.u32 %v773_v40, %v772_v52  ;;  %v777_v63 = vrot.slane %v772_v52, 4  ;;  %v790_v5 = vshll.u32 %v7417_v56, 16  ;;  %v781_v8 = vrot.slane %v779_v0, 7 }
  0x73   : > { %v945_v3 = vsel %vm8839_vm6, %v767_v59, %v944_v54  ;;  %v789_v10 = vrot.slane %v787_v4, 7 }
  0x74   : > { %946 = vst [vmem:[#allocation2 + $0xc0] sm:$0xf] %v945_v3  ;;  %v776_v6 = vsel %vm8851_vm8, %v768_v60, %v775_v62  ;;  %v949_v7 = vsel %vm8743_vm2, %v777_v63, %v948_v61  ;;  %v784_v11 = vor.u32 %v782_v1, %v781_v8  ;;  %v785_v12 = vrot.slane %v781_v8, 4 }
  0x75   : > { %947 = vst [vmem:[#allocation2 + $0xc4] sm:$0xf] %v776_v6  ;;  %950 = vst [vmem:[#allocation2 + $0xc8] sm:$0x1] %v949_v7  ;;  %v792_v14 = vor.u32 %v790_v5, %v789_v10  ;;  %v794_v15 = vrot.slane %v789_v10, 4 }
  0x76   : > { %v952_v16 = vsel %vm8839_vm6, %v784_v11, %v951_v9 }
  0x77   : > { %953 = vst [vmem:[#allocation2 + $0xcc] sm:$0xf] %v952_v16  ;;  %v793_v17 = vsel %vm8851_vm8, %v785_v12, %v792_v14  ;;  %v956_v18 = vsel %vm8743_vm2, %v794_v15, %v955_v13 }
  0x78   : > { %954 = vst [vmem:[#allocation2 + $0xd0] sm:$0xf] %v793_v17  ;;  %957 = vst [vmem:[#allocation2 + $0xd4] sm:$0x1] %v956_v18 }
  0x79 PF: > { %v8208_v19 = vld [vmem:[%s10124_s1 + $0x40] sm:$0xff]   ;;  %v8212_v49 = vld [vmem:[%s10124_s1 + $0x48] sm:$0xff]   ;;  %v8216_v24 = vld [vmem:[%s10124_s1 + $0x50] sm:$0xff]   ;;  %s7418_s13 = smul.u32 96, %s8644_s18  ;;  %vm1162_vm9 = vsmask.f32 7424 }
  0x7a   : > { %v8209_v20 = vld [vmem:[%s10124_s1] sm:$0xff]   ;;  %7503 = vmatprep.subr.bf16.mxu0 %v8208_v19  ;;  %v8213_v21 = vld [vmem:[%s10124_s1 + $0x8] sm:$0xff]   ;;  %v8217_v25 = vld [vmem:[%s10124_s1 + $0x10] sm:$0xff]   ;;  %vm1413_vm10 = vcmask 1046528   ;;  %vm3790_vm11 = vsmask.f32 256 }
  0x7b   : > { %v8210_v31 = vld [vmem:[%s10124_s1 + $0xc0] sm:$0xff]   ;;  %7504 = vmatpush3.bf16.msra.mxu0 %v8209_v20  ;;  %v8214_v22 = vld [vmem:[%s10124_s1 + $0xc8] sm:$0xff]   ;;  %v8218_v26 = vld [vmem:[%s10124_s1 + $0xd0] sm:$0xff]   ;;  %s9067_s6 = scalar_lea.vmem [#allocation2], %s7418_s13  ;;  %vm3993_vm12 = vcmask 1043456   ;;  %vm4000_vm14 = vcmask 1040384  }
  0x7c   : > { %v8211_v2 = vld [vmem:[%s10124_s1 + $0x80] sm:$0xff]   ;;  %7579 = vmatprep.subr.bf16.mxu1 %v8210_v31  ;;  %7505 = vmatprep.subr.bf16.mxu0 %v8212_v49  ;;  %v8215_v23 = vld [vmem:[%s10124_s1 + $0x88] sm:$0xff]   ;;  %v8219_v27 = vld [vmem:[%s10124_s1 + $0x90] sm:$0xff]   ;;  %vm3994_vm13 = vsmask.f32 7938 }
  0x7d   : > { %7580 = vmatpush3.bf16.msra.mxu1 %v8211_v2  ;;  %v8220_v29 = vld [vmem:[%s10124_s1 + $0x58] sm:$0xff]   ;;  %v8224_v33 = vld [vmem:[%s10124_s1 + $0x60] sm:$0xff]   ;;  %v8228_v37 = vld [vmem:[%s10124_s1 + $0x68] sm:$0xff]   ;;  %vm3791_vm15 = vsmask.f32 4368 }
  0x7e   : > { %7581 = vmatprep.subr.bf16.mxu1 %v8214_v22  ;;  %v8221_v30 = vld [vmem:[%s10124_s1 + $0x18] sm:$0xff]   ;;  %v8225_v34 = vld [vmem:[%s10124_s1 + $0x20] sm:$0xff]   ;;  %v8229_v38 = vld [vmem:[%s10124_s1 + $0x28] sm:$0xff]  }
  0x7f   : > { %7506 = vmatpush3.bf16.msra.mxu0 %v8213_v21  ;;  %v8222_v28 = vld [vmem:[%s10124_s1 + $0xd8] sm:$0xff]   ;;  %v8226_v35 = vld [vmem:[%s10124_s1 + $0xe0] sm:$0xff]   ;;  %v8230_v39 = vld [vmem:[%s10124_s1 + $0xe8] sm:$0xff]  }
  0x80   : > { %7507 = vmatprep.subr.bf16.mxu0 %v8216_v24  ;;  %v8223_v32 = vld [vmem:[%s10124_s1 + $0x98] sm:$0xff]   ;;  %v8227_v36 = vld [vmem:[%s10124_s1 + $0xa0] sm:$0xff]   ;;  %v8231_v40 = vld [vmem:[%s10124_s1 + $0xa8] sm:$0xff]  }
  0x81   : > { %7582 = vmatpush3.bf16.msra.mxu1 %v8215_v23  ;;  %v8232_v41 = vld [vmem:[%s10124_s1 + $0x70] sm:$0xff]   ;;  %v8236_v45 = vld [vmem:[%s10124_s1 + $0x78] sm:$0xff]   ;;  %v8239_v48 = vld [vmem:[%s9067_s6] sm:$0xff]  }
  0x82   : > { %7583 = vmatprep.subr.bf16.mxu1 %v8218_v26  ;;  %v8233_v42 = vld [vmem:[%s10124_s1 + $0x30] sm:$0xff]   ;;  %v8237_v46 = vld [vmem:[%s10124_s1 + $0x38] sm:$0xff]   ;;  %v8240_v50 = vld [vmem:[%s9067_s6 + $0x8] ss:$0 sps:$4 sm:$0x11]   ;;  %v1164_v52 = vshrl.u32 %v8239_v48, 16 }
  0x83   : > { %7508 = vmatpush3.bf16.msra.mxu0 %v8217_v25  ;;  %v8234_v43 = vld [vmem:[%s10124_s1 + $0xf0] sm:$0xff]   ;;  %v8238_v47 = vld [vmem:[%s10124_s1 + $0xf8] sm:$0xff]   ;;  %v1166_v53 = vshll.u32 %v8239_v48, 16  ;;  %v1171_v54 = vshll.u32 %v8240_v50, 16  ;;  %v8242_v55 = vld [vmem:[%s9067_s6] sm:$0xff]  }
  0x84   : > { %7509 = vmatprep.subr.bf16.mxu0 %v8220_v29  ;;  %v8235_v44 = vld [vmem:[%s10124_s1 + $0xb0] sm:$0xff]   ;;  %v8241_v51 = vld [vmem:[%s10124_s1 + $0xb8] sm:$0xff]   ;;  %v8243_v58 = vld [vmem:[%s10124_s1 + $0x140] sm:$0xff]  }
  0x85   : > { %7584 = vmatpush3.bf16.msra.mxu1 %v8219_v27  ;;  %v1168_v56 = vrot.slane %v1166_v53, 1  ;;  %v1173_v57 = vrot.slane %v1171_v54, 1  ;;  %v8244_v59 = vld [vmem:[%s9067_s6 + $0xc] sm:$0xff]   ;;  %v8245_v61 = vld [vmem:[%s10124_s1 + $0x100] sm:$0xff]   ;;  %v8251_v10 = vld [vmem:[%s9067_s6 + $0x18] sm:$0xff]  }
  0x86   : > { %7585 = vmatprep.subr.bf16.mxu1 %v8222_v28  ;;  %3290 = vmatprep.mubr.bf16.mxu1 %v8244_v59  ;;  %v8246_v62 = vld [vmem:[%s9067_s6] sm:$0xfe]   ;;  %v8247_v0 = vld [vmem:[%s9067_s6 + $0x8] ss:$0 sps:$4 sm:$0x11]   ;;  %v8248_v1 = vld [vmem:[%s9067_s6 + $0xc] sm:$0xff]  }
  0x87   : > { %7510 = vmatpush3.bf16.msra.mxu0 %v8221_v30  ;;  %v1169_v60 = vor.u32 %v1168_v56, %v1164_v52  ;;  %v1414_v3 = vrot.slane %v8246_v62, 1  ;;  %v8249_v4 = vld [vmem:[%s9067_s6 + $0x14] ss:$0 sps:$4 sm:$0x11]   ;;  %v1415_v5 = vrot.slane %v8247_v0, 1  ;;  %v1176_v6 = vshrl.u32 %v8248_v1, 16  ;;  %vm9534_vm0 = vmand %vm3993_vm12, %vm3994_vm13 }
  0x88   : > { %7511 = vmatprep.subr.bf16.mxu0 %v8224_v33  ;;  %v1178_v7 = vshll.u32 %v8248_v1, 16  ;;  %v8250_v8 = vld [vmem:[%s9067_s6 + $0xc] sm:$0xff]   ;;  %v1183_v9 = vshll.u32 %v8249_v4, 16  ;;  %v8253_v18 = vld [vmem:[%s9067_s6 + $0x14] ss:$0 sps:$4 sm:$0x11]   ;;  %vm9541_vm1 = vmand %vm4000_vm14, %vm3790_vm11 }
  0x89   : > { %7586 = vmatpush3.bf16.msra.mxu1 %v8223_v32  ;;  %v1174_v63 = vsel %vm1162_vm9, %v1169_v60, %v1173_v57  ;;  %v1416_v11 = vsel %vm1413_vm10, %v1414_v3, %v1415_v5  ;;  %v8254_v13 = vld [vmem:[%s10124_s1 + $0x148] sm:$0xff]   ;;  %v8256_v19 = vld [vmem:[%s9067_s6 + $0x18] sm:$0xff]   ;;  %v1418_v2 = vrot.slane %v8253_v18, 1  ;;  %v8257_v23 = vld [vmem:[%s9067_s6 + $0x20] ss:$0 sps:$4 sm:$0x11]  }
  0x8a   : > { %7587 = vmatprep.subr.bf16.mxu1 %v8226_v35  ;;  %3177 = vmatprep.mubr.bf16.mxu0 %v1174_v63  ;;  %v1180_v12 = vrot.slane %v1178_v7, 1  ;;  %v1185_v14 = vrot.slane %v1183_v9, 1  ;;  %v8255_v15 = vld [vmem:[%s10124_s1 + $0x108] sm:$0xff]   ;;  %v1188_v49 = vshrl.u32 %v8256_v19, 16  ;;  %v1190_v21 = vshll.u32 %v8256_v19, 16  ;;  %v8258_v24 = vld [vmem:[%s9067_s6 + $0x18] sm:$0xff]   ;;  %vm9547_vm2 = vmor %vm3790_vm11, %vm3791_vm15 }
  0x8b   : > { %7512 = vmatpush3.bf16.msra.mxu0 %v8225_v34  ;;  %v8252_v17 = vld [vmem:[%s9067_s6 + $0xc] sm:$0xfe]   ;;  %v8259_v26 = vld [vmem:[%s9067_s6 + $0x24] sm:$0xff]   ;;  %v1195_v27 = vshll.u32 %v8257_v23, 16  ;;  %v8260_v28 = vld [vmem:[%s9067_s6 + $0x18] sm:$0xfe]  }
  0x8c   : > { %7513 = vmatprep.subr.bf16.mxu0 %v8228_v37  ;;  %v1181_v16 = vor.u32 %v1180_v12, %v1176_v6  ;;  %v1417_v31 = vrot.slane %v8252_v17, 1  ;;  %v1192_v25 = vrot.slane %v1190_v21, 1  ;;  %v8262_v29 = vld [vmem:[%s10124_s1 + $0x150] sm:$0xff]   ;;  %v8261_v33 = vld [vmem:[%s9067_s6 + $0x20] ss:$0 sps:$4 sm:$0x11]   ;;  %vm9576_vm3 = vmand %vm4000_vm14, %vm3994_vm13 }
  0x8d   : > { %7588 = vmatpush3.bf16.msra.mxu1 %v8227_v36  ;;  %v1197_v32 = vrot.slane %v1195_v27, 1  ;;  %v1420_v34 = vrot.slane %v8260_v28, 1  ;;  %v8263_v35 = vld [vmem:[%s10124_s1 + $0x110] sm:$0xff]   ;;  %v1421_v37 = vrot.slane %v8261_v33, 1  ;;  %v8268_v48 = vld [vmem:[%s9067_s6 + $0x24] sm:$0xfe]  }
  0x8e   : > { %7589 = vmatprep.subr.bf16.mxu1 %v8230_v39  ;;  %v1186_v20 = vsel %vm1162_vm9, %v1181_v16, %v1185_v14  ;;  %v1419_v22 = vsel %vm1413_vm10, %v1417_v31, %v1418_v2  ;;  %v1193_v30 = vor.u32 %v1192_v25, %v1188_v49  ;;  %v8269_v52 = vld [vmem:[%s9067_s6 + $0x2c] ss:$0 sps:$4 sm:$0x11]   ;;  %v1423_v53 = vrot.slane %v8268_v48, 1  ;;  %v8271_v54 = vld [vmem:[%s9067_s6 + $0x30] sm:$0xff]   ;;  %v8273_v57 = vld [vmem:[%s10124_s1 + $0x118] sm:$0xff]  }
  0x8f   : > { %7514 = vmatpush3.bf16.msra.mxu0 %v8229_v38  ;;  %v8264_v38 = vld [vmem:[%s9067_s6 + $0x24] sm:$0xff]   ;;  %v1422_v39 = vsel %vm1413_vm10, %v1420_v34, %v1421_v37  ;;  %v1424_v56 = vrot.slane %v8269_v52, 1  ;;  %v1212_v59 = vshrl.u32 %v8271_v54, 16  ;;  %v1214_v60 = vshll.u32 %v8271_v54, 16  ;;  %v8275_v1 = vld [vmem:[%s9067_s6 + $0x3c] sm:$0xff]   ;;  %v8298_v48 = vld [vmem:[%s9067_s6 + $0x54] sm:$0xff]  }
  0x90   : > { %7515 = vmatprep.subr.bf16.mxu0 %v8232_v41  ;;  %v1198_v36 = vsel %vm1162_vm9, %v1193_v30, %v1197_v32  ;;  %v1200_v41 = vshrl.u32 %v8264_v38, 16  ;;  %v8278_v5 = vld [vmem:[%s10124_s1 + $0x1c0] sm:$0xff]   ;;  %v8276_v6 = vld [vmem:[%s9067_s6 + $0x30] sm:$0xfe]   ;;  %v8284_v31 = vld [vmem:[%s9067_s6 + $0x48] sm:$0xff]   ;;  %v1250_v54 = vshll.u32 %v8298_v48, 16 }
  0x91   : > { %7590 = vmatpush3.bf16.msra.mxu1 %v8231_v40  ;;  %v8265_v40 = vld [vmem:[%s9067_s6 + $0x2c] ss:$0 sps:$4 sm:$0x11]   ;;  %v1425_v62 = vsel %vm1413_vm10, %v1423_v53, %v1424_v56  ;;  %v1216_v63 = vrot.slane %v1214_v60, 1  ;;  %v8280_v12 = vld [vmem:[%s9067_s6 + $0x3c] sm:$0xff]   ;;  %v8300_v52 = vld [vmem:[%s9067_s6 + $0x54] sm:$0xff]  }
  0x92   : > { %7591 = vmatprep.subr.bf16.mxu1 %v8234_v43  ;;  %v8266_v43 = vld [vmem:[%s9067_s6 + $0x24] sm:$0xff]   ;;  %v8277_v7 = vld [vmem:[%s9067_s6 + $0x38] ss:$0 sps:$4 sm:$0x11]   ;;  %v1224_v16 = vshrl.u32 %v8280_v12, 16  ;;  %v1226_v17 = vshll.u32 %v8280_v12, 16 }
  0x93   : > { %7516 = vmatpush3.bf16.msra.mxu0 %v8233_v42  ;;  %v1202_v42 = vshll.u32 %v8264_v38, 16  ;;  %v1217_v3 = vor.u32 %v1216_v63, %v1212_v59  ;;  %v8281_v14 = vld [vmem:[%s9067_s6 + $0x44] ss:$0 sps:$4 sm:$0x11]   ;;  %v8289_v27 = vld [vmem:[%s9067_s6 + $0x48] sm:$0xff]   ;;  %v8293_v38 = vld [vmem:[%s9067_s6 + $0x54] sm:$0xff]  }
  0x94   : > { %7517 = vmatprep.subr.bf16.mxu0 %v8236_v45  ;;  %v1207_v45 = vshll.u32 %v8265_v40, 16  ;;  %v1231_v18 = vshll.u32 %v8281_v14, 16  ;;  %v8283_v19 = vld [vmem:[%s10124_s1 + $0x160] sm:$0xff]   ;;  %v8291_v30 = vld [vmem:[%s10124_s1 + $0x188] sm:$0xff]   ;;  %v1236_v32 = vshrl.u32 %v8289_v27, 16  ;;  %v1238_v33 = vshll.u32 %v8289_v27, 16 }
  0x95   : > { %7592 = vmatpush3.bf16.msra.mxu1 %v8235_v44  ;;  %v1204_v44 = vrot.slane %v1202_v42, 1  ;;  %v8285_v49 = vld [vmem:[%s10124_s1 + $0x120] sm:$0xff]   ;;  %v8290_v28 = vld [vmem:[%s9067_s6 + $0x50] ss:$0 sps:$4 sm:$0x11]   ;;  %v8292_v34 = vld [vmem:[%s9067_s6 + $0x48] sm:$0xff]  }
  0x96   : > { %7593 = vmatprep.subr.bf16.mxu1 %v8238_v47  ;;  %v8270_v47 = vld [vmem:[%s10124_s1 + $0x158] sm:$0xff]   ;;  %v1233_v2 = vrot.slane %v1231_v18, 1  ;;  %v8287_v23 = vld [vmem:[%s9067_s6 + $0x44] ss:$0 sps:$4 sm:$0x11]   ;;  %v1243_v37 = vshll.u32 %v8290_v28, 16 }
  0x97   : > { %7518 = vmatpush3.bf16.msra.mxu0 %v8237_v46  ;;  %v8267_v46 = vld [vmem:[%s9067_s6 + $0x30] sm:$0xff]   ;;  %v1205_v50 = vor.u32 %v1204_v44, %v1200_v41  ;;  %v8296_v41 = vld [vmem:[%s10124_s1 + $0x168] sm:$0xff]   ;;  %v1248_v53 = vshrl.u32 %v8298_v48, 16  ;;  %v8305_v63 = vld [vmem:[%s9067_s6 + $0x5c] ss:$0 sps:$4 sm:$0x11]  }
  0x98   : > { %7655 = vmatprep.subr.bf16.mxu0 %v8243_v58  ;;  %v8272_v58 = vld [vmem:[%s9067_s6 + $0x38] ss:$0 sps:$4 sm:$0x11]   ;;  %v1245_v40 = vrot.slane %v1243_v37, 1  ;;  %v8294_v42 = vld [vmem:[%s9067_s6 + $0x48] sm:$0xfe]  }
  0x99   : > { %7594 = vmatpush3.bf16.msra.mxu1 %v8241_v51  ;;  %v1209_v51 = vrot.slane %v1207_v45, 1  ;;  %v1219_v0 = vshll.u32 %v8272_v58, 16  ;;  %v8297_v44 = vld [vmem:[%s10124_s1 + $0x128] sm:$0xff]   ;;  %v8301_v56 = vld [vmem:[%s10124_s1 + $0x1d0] sm:$0xff]   ;;  %v8302_v58 = vld [vmem:[%s9067_s6 + $0x60] sm:$0xff]  }
  0x9a   : > { %3178 = vmatmul.mubr.bf16.vlgmr.msra.gmra.mrb[0].mxu0 %v8242_v55  ;;  %7731 = vmatprep.subr.bf16.mxu1 %v8278_v5  ;;  %v8303_v60 = vld [vmem:[%s10124_s1 + $0x190] sm:$0xff]   ;;  %v1436_v5 = vrot.slane %v8305_v63, 1  ;;  %v8312_v14 = vld [vmem:[%s9067_s6 + $0x60] sm:$0xff]   ;;  %v8325_v37 = vld [vmem:[%s9067_s6 + $0x78] sm:$0xff]  }
  0x9b   : > { %7656 = vmatpush3.bf16.msra.mxu0 %v8245_v61  ;;  %3185 = vmatprep.mubr.bf16.mxu0 %v1186_v20  ;;  %v1210_v55 = vsel %vm1162_vm9, %v1205_v50, %v1209_v51  ;;  %v8274_v61 = vld [vmem:[%s9067_s6 + $0x30] sm:$0xff]   ;;  %v1221_v4 = vrot.slane %v1219_v0, 1  ;;  %v1228_v20 = vrot.slane %v1226_v17, 1  ;;  %v8299_v51 = vld [vmem:[%s9067_s6 + $0x5c] ss:$0 sps:$4 sm:$0x11]  }
  0x9c   : > { %3291 = vmatmul.mubr.bf16.vlgmr.msra.gmra.mrb[0].mxu1 %v1416_v11  ;;  %7657 = vmatprep.subr.bf16.mxu0 %v8254_v13  ;;  %v1427_v11 = vrot.slane %v8277_v7, 1  ;;  %v8306_v0 = vld [vmem:[%s10124_s1 + $0x170] sm:$0xff]   ;;  %v8316_v18 = vld [vmem:[%s10124_s1 + $0x1e0] sm:$0xff]   ;;  %v8339_v63 = vld [vmem:[%s9067_s6 + $0x18] sm:$0xff]  }
  0x9d   : > { %3298 = vmatprep.mubr.bf16.mxu1 %v8251_v10  ;;  %v1222_v9 = vsel %vm1162_vm9, %v1217_v3, %v1221_v4  ;;  %v1426_v10 = vrot.slane %v8276_v6, 1  ;;  %v1229_v21 = vor.u32 %v1228_v20, %v1224_v16  ;;  %v8307_v4 = vld [vmem:[%s10124_s1 + $0x130] sm:$0xff]   ;;  %v8308_v6 = vld [vmem:[%s10124_s1 + $0x1d8] sm:$0xff]  }
  0x9e   : > { %v8313_v17 = vld [vmem:[%s9067_s6 + $0x6c] sm:$0xff]   ;;  %v8321_v27 = vld [vmem:[%s9067_s6 + $0x74] ss:$0 sps:$4 sm:$0x11]  }
  0x9f   : > { %7658 = vmatpush3.bf16.msra.mxu0 %v8255_v15  ;;  %v1428_v13 = vsel %vm1413_vm10, %v1426_v10, %v1427_v11  ;;  %v8282_v15 = vld [vmem:[%s9067_s6 + $0x3c] sm:$0xff]   ;;  %v1234_v25 = vsel %vm1162_vm9, %v1229_v21, %v1233_v2  ;;  %v8331_v48 = vld [vmem:[%s9067_s6 + $0xc] sm:$0xfe]  }
  0xa0   : > { %7659 = vmatprep.subr.bf16.mxu0 %v8262_v29  ;;  %v1430_v29 = vrot.slane %v8287_v23, 1  ;;  %v8311_v10 = vld [vmem:[%s10124_s1 + $0x198] sm:$0xff]   ;;  %v8317_v2 = vld [vmem:[%s10124_s1 + $0x1a0] sm:$0xff]  }
  0xa1   : > { %v8318_v21 = vld [vmem:[%s10124_s1 + $0x178] sm:$0xff]  }
  0xa2   : > { %3186 = vmatmul.mubr.bf16.gmra.mrb[4].mxu0 %v8250_v8  ;;  %v8279_v8 = vld [vmem:[%s10124_s1 + $0x180] sm:$0xff]  }
  0xa3   : > { %3193 = vmatprep.mubr.bf16.mxu0 %v1198_v36  ;;  %7660 = vmatpush3.bf16.msra.mxu0 %v8263_v35  ;;  %v1240_v36 = vrot.slane %v1238_v33, 1  ;;  %v8323_v33 = vld [vmem:[%s10124_s1 + $0x1a8] sm:$0xff]  }
  0xa4   : > { %3299 = vmatmul.mubr.bf16.gmra.mrb[4].mxu1 %v1419_v22  ;;  %7661 = vmatprep.subr.bf16.mxu0 %v8270_v47  ;;  %v8286_v22 = vld [vmem:[%s9067_s6 + $0x3c] sm:$0xfe]  }
  0xa5   : > { %3306 = vmatprep.mubr.bf16.mxu1 %v8259_v26  ;;  %7732 = vmatpush3.bf16.msra.mxu1 %v8279_v8  ;;  %v1429_v26 = vrot.slane %v8286_v22, 1  ;;  %v8309_v8 = vld [vmem:[%s9067_s6 + $0x60] sm:$0xff]  }
  0xa6   : > { %v1260_v11 = vshrl.u32 %v8309_v8, 16  ;;  %v1262_v12 = vshll.u32 %v8309_v8, 16 }
  0xa7   : > { %7662 = vmatpush3.bf16.msra.mxu0 %v8273_v57  ;;  %v1431_v35 = vsel %vm1413_vm10, %v1429_v26, %v1430_v29  ;;  %v1252_v57 = vrot.slane %v1250_v54, 1  ;;  %v8320_v26 = vld [vmem:[%s9067_s6 + $0x6c] sm:$0xff]   ;;  %v8322_v29 = vld [vmem:[%s10124_s1 + $0x138] sm:$0xff]  }
  0xa8   : > { %7663 = vmatprep.subr.bf16.mxu0 %v8283_v19  ;;  %v8314_v19 = vld [vmem:[%s9067_s6 + $0x60] sm:$0xfe]   ;;  %v1274_v28 = vshll.u32 %v8320_v26, 16  ;;  %v8334_v54 = vld [vmem:[%s9067_s6 + $0xc] sm:$0xff]  }
  0xaa   : > { %3194 = vmatmul.mubr.bf16.gmra.mrb[8].mxu0 %v8258_v24  ;;  %v8288_v24 = vld [vmem:[%s10124_s1 + $0x1c8] sm:$0xff]  }
  0xab   : > { %3201 = vmatprep.mubr.bf16.mxu0 %v1210_v55  ;;  %7664 = vmatpush3.bf16.msra.mxu0 %v8285_v49  ;;  %v1255_v55 = vshll.u32 %v8299_v51, 16  ;;  %v1438_v49 = vrot.slane %v8314_v19, 1  ;;  %v8333_v51 = vld [vmem:[%s10124_s1 + $0x1b8] sm:$0xff]  }
  0xac   : > { %3307 = vmatmul.mubr.bf16.gmra.mrb[8].mxu1 %v1422_v39  ;;  %7733 = vmatprep.subr.bf16.mxu1 %v8288_v24  ;;  %v1241_v39 = vor.u32 %v1240_v36, %v1236_v32  ;;  %v8319_v24 = vld [vmem:[%s10124_s1 + $0x1e8] sm:$0xff]   ;;  %v1279_v32 = vshll.u32 %v8321_v27, 16 }
  0xad   : > { %3314 = vmatprep.mubr.bf16.mxu1 %v8267_v46  ;;  %7734 = vmatpush3.bf16.msra.mxu1 %v8291_v30  ;;  %v1432_v46 = vrot.slane %v8294_v42, 1  ;;  %v1257_v59 = vrot.slane %v1255_v55, 1  ;;  %v1272_v30 = vshrl.u32 %v8320_v26, 16  ;;  %v8335_v55 = vld [vmem:[%s9067_s6 + $0x14] ss:$0 sps:$4 sm:$0x11]  }
  0xae   : > { %v1246_v45 = vsel %vm1162_vm9, %v1241_v39, %v1245_v40  ;;  %7665 = vmatprep.subr.bf16.mxu0 %v8296_v41  ;;  %7735 = vmatprep.subr.bf16.mxu1 %v8301_v56  ;;  %v1281_v36 = vrot.slane %v1279_v32, 1  ;;  %v8326_v39 = vld [vmem:[%s9067_s6 + $0x6c] sm:$0xfe]   ;;  %v8327_v40 = vld [vmem:[%s9067_s6 + $0x74] ss:$0 sps:$4 sm:$0x11]  }
  0xaf   : > { %7666 = vmatpush3.bf16.msra.mxu0 %v8297_v44  ;;  %v8328_v41 = vld [vmem:[%s10124_s1 + $0x1f0] sm:$0xff]   ;;  %v8346_v26 = vld [vmem:[%s9067_s6 + $0x24] sm:$0xff]  }
  0xb0   : > { %7667 = vmatprep.subr.bf16.mxu0 %v8306_v0  ;;  %v8329_v44 = vld [vmem:[%s10124_s1 + $0x1b0] sm:$0xff]   ;;  %v8347_v27 = vld [vmem:[%s10124_s1 + $0x208] sm:$0xff]  }
  0xb1   : > { %7736 = vmatpush3.bf16.msra.mxu1 %v8303_v60  ;;  %v1676_v60 = vshll.u32 %v8335_v55, 16 }
  0xb2   : > { %3202 = vmatmul.mubr.bf16.gmra.mrb[12].mxu0 %v8266_v43  ;;  %v8295_v43 = vld [vmem:[%s9067_s6 + $0x50] ss:$0 sps:$4 sm:$0x11]   ;;  %7737 = vmatprep.subr.bf16.mxu1 %v8308_v6  ;;  %v8342_v6 = vld [vmem:[%s9067_s6 + $0x18] sm:$0xff]  }
  0xb3   : > { %3209 = vmatprep.mubr.bf16.mxu0 %v1222_v9  ;;  %v1433_v47 = vrot.slane %v8295_v43, 1  ;;  %7668 = vmatpush3.bf16.msra.mxu0 %v8307_v4  ;;  %v8310_v9 = vld [vmem:[%s9067_s6 + $0x68] ss:$0 sps:$4 sm:$0x11]   ;;  %v1441_v43 = vrot.slane %v8326_v39, 1 }
  0xb4   : > { %3315 = vmatmul.mubr.bf16.gmra.mrb[12].mxu1 %v1425_v62  ;;  %v8304_v62 = vld [vmem:[%s9067_s6 + $0x54] sm:$0xfe]   ;;  %7669 = vmatprep.subr.bf16.mxu0 %v8318_v21  ;;  %v8345_v21 = vld [vmem:[%s9067_s6 + $0x2c] ss:$0 sps:$4 sm:$0x11]  }
  0xb5   : > { %3322 = vmatprep.mubr.bf16.mxu1 %v8275_v1  ;;  %v1434_v50 = vsel %vm1413_vm10, %v1432_v46, %v1433_v47  ;;  %v1435_v3 = vrot.slane %v8304_v62, 1  ;;  %7738 = vmatpush3.bf16.msra.mxu1 %v8311_v10  ;;  %v8330_v46 = vld [vmem:[%s10124_s1 + $0x1f8] sm:$0xff]   ;;  %v8338_v62 = vld [vmem:[%s9067_s6 + $0x20] ss:$0 sps:$4 sm:$0x11]  }
  0xb6   : > { %7739 = vmatprep.subr.bf16.mxu1 %v8316_v18  ;;  %v1681_v18 = vshrl.u32 %v8342_v6, 16 }
  0xb7   : > { %v1437_v7 = vsel %vm1413_vm10, %v1435_v3, %v1436_v5  ;;  %7670 = vmatpush3.bf16.msra.mxu0 %v8322_v29  ;;  %v2180_v5 = vshll.u32 %v8338_v62, 16  ;;  %v8357_v62 = vld [vmem:[%s9067_s6 + $0x38] ss:$0 sps:$4 sm:$0x11]  }
  0xb9   : > { %7740 = vmatpush3.bf16.msra.mxu1 %v8317_v2  ;;  %v2182_v10 = vrot.slane %v2180_v5, 1  ;;  %v8359_v5 = vld [vmem:[%s9067_s6 + $0x38] ss:$0 sps:$4 sm:$0x11]  }
  0xba   : > { %3210 = vmatmul.mubr.bf16.gmra.mrb[16].mxu0 %v8274_v61  ;;  %v1253_v61 = vor.u32 %v1252_v57, %v1248_v53  ;;  %7741 = vmatprep.subr.bf16.mxu1 %v8319_v24  ;;  %v8336_v57 = vld [vmem:[%s10124_s1 + $0x200] sm:$0xff]  }
  0xbb   : > { %3217 = vmatprep.mubr.bf16.mxu0 %v1234_v25  ;;  %8097 = vmatprep.subr.bf16.mxu0 %v8336_v57 }
  0xbc   : > { %3323 = vmatmul.mubr.bf16.gmra.mrb[16].mxu1 %v1428_v13  ;;  %v1258_v1 = vsel %vm1162_vm9, %v1253_v61, %v1257_v59  ;;  %v1267_v13 = vshll.u32 %v8310_v9, 16  ;;  %v1671_v59 = vshll.u32 %v8334_v54, 16  ;;  %v8337_v61 = vld [vmem:[%s9067_s6 + $0x18] sm:$0xff]   ;;  %v8344_v9 = vld [vmem:[%s9067_s6 + $0x24] sm:$0xff]  }
  0xbd   : > { %3330 = vmatprep.mubr.bf16.mxu1 %v8284_v31  ;;  %v8315_v31 = vld [vmem:[%s9067_s6 + $0x68] ss:$0 sps:$4 sm:$0x11]   ;;  %7742 = vmatpush3.bf16.msra.mxu1 %v8323_v33  ;;  %v2173_v3 = vshrl.u32 %v8337_v61, 16  ;;  %v2175_v4 = vshll.u32 %v8337_v61, 16  ;;  %v8352_v33 = vld [vmem:[%s9067_s6 + $0x30] sm:$0xff]  }
  0xbe   : > { %v1269_v16 = vrot.slane %v1267_v13, 1  ;;  %v1439_v23 = vrot.slane %v8315_v31, 1  ;;  %7743 = vmatprep.subr.bf16.mxu1 %v8328_v41  ;;  %v1673_v0 = vrot.slane %v1671_v59, 1  ;;  %v2185_v31 = vshrl.u32 %v8344_v9, 16  ;;  %v8356_v59 = vld [vmem:[%s9067_s6 + $0x30] sm:$0xfe]  }
  0xbf   : > { %v2177_v8 = vrot.slane %v2175_v4, 1  ;;  %v1928_v4 = vrot.slane %v8357_v62, 1  ;;  %v8378_v62 = vld [vmem:[%s9067_s6 + $0x54] sm:$0xff]  }
  0xc0   : > { %v1440_v25 = vsel %vm1413_vm10, %v1438_v49, %v1439_v23  ;;  %v2187_v23 = vshll.u32 %v8344_v9, 16 }
  0xc1   : > { %7744 = vmatpush3.bf16.msra.mxu1 %v8329_v44 }
  0xc2   : > { %3218 = vmatmul.mubr.bf16.gmra.mrb[20].mxu0 %v8282_v15  ;;  %v1264_v15 = vrot.slane %v1262_v12, 1  ;;  %7745 = vmatprep.subr.bf16.mxu1 %v8330_v46  ;;  %v8341_v12 = vld [vmem:[%s9067_s6 + $0x20] ss:$0 sps:$4 sm:$0x11]  }
  0xc3   : > { %3225 = vmatprep.mubr.bf16.mxu0 %v1246_v45  ;;  %v1442_v45 = vrot.slane %v8327_v40, 1 }
  0xc4   : > { %3331 = vmatmul.mubr.bf16.gmra.mrb[20].mxu1 %v1431_v35  ;;  %v1265_v20 = vor.u32 %v1264_v15, %v1260_v11  ;;  %v1276_v35 = vrot.slane %v1274_v28, 1  ;;  %v8340_v11 = vld [vmem:[%s9067_s6 + $0x18] sm:$0xfe]   ;;  %v8350_v28 = vld [vmem:[%s9067_s6 + $0x24] sm:$0xff]  }
  0xc5   : > { %3338 = vmatprep.mubr.bf16.mxu1 %v8293_v38  ;;  %v1443_v47 = vsel %vm1413_vm10, %v1441_v43, %v1442_v45  ;;  %7746 = vmatpush3.bf16.msra.mxu1 %v8333_v51  ;;  %v1921_v15 = vrot.slane %v8340_v11, 1  ;;  %v1695_v43 = vshll.u32 %v8350_v28, 16  ;;  %v8354_v51 = vld [vmem:[%s9067_s6 + $0x30] sm:$0xff]   ;;  %v8361_v11 = vld [vmem:[%s9067_s6 + $0x44] ss:$0 sps:$4 sm:$0x11]  }
  0xc6   : > { %v1270_v22 = vsel %vm1162_vm9, %v1265_v20, %v1269_v16  ;;  %v1277_v38 = vor.u32 %v1276_v35, %v1272_v30  ;;  %v1922_v16 = vrot.slane %v8341_v12, 1  ;;  %v1683_v20 = vshll.u32 %v8342_v6, 16 }
  0xc7   : > { %v2189_v30 = vrot.slane %v2187_v23, 1  ;;  %v1697_v45 = vrot.slane %v1695_v43, 1 }
  0xc8   : > { %v1282_v42 = vsel %vm1162_vm9, %v1277_v38, %v1281_v36  ;;  %v1923_v2 = vsel %vm1413_vm10, %v1921_v15, %v1922_v16  ;;  %v8348_v36 = vld [vmem:[%s9067_s6 + $0x24] sm:$0xfe]   ;;  %v1693_v38 = vshrl.u32 %v8350_v28, 16 }
  0xc9   : > { %v2190_v35 = vor.u32 %v2189_v30, %v2185_v31  ;;  %v1924_v40 = vrot.slane %v8348_v36, 1  ;;  %v8370_v36 = vld [vmem:[%s9067_s6 + $0x48] sm:$0xff]  }
  0xca   : > { %3226 = vmatmul.mubr.bf16.gmra.mrb[24].mxu0 %v8292_v34  ;;  %v8324_v34 = vld [vmem:[%s9067_s6 + $0x6c] sm:$0xff]  }
  0xcb   : > { %3233 = vmatprep.mubr.bf16.mxu0 %v1258_v1  ;;  %v1678_v1 = vrot.slane %v1676_v60, 1  ;;  %v8358_v60 = vld [vmem:[%s9067_s6 + $0x30] sm:$0xff]  }
  0xcc   : > { %3339 = vmatmul.mubr.bf16.gmra.mrb[24].mxu1 %v1434_v50  ;;  %v8332_v50 = vld [vmem:[%s9067_s6 + $0x14] ss:$0 sps:$4 sm:$0x11]   ;;  %v1707_v6 = vshll.u32 %v8358_v60, 16 }
  0xcd   : > { %3346 = vmatprep.mubr.bf16.mxu1 %v8302_v58  ;;  %v1919_v53 = vrot.slane %v8332_v50, 1  ;;  %v1669_v58 = vshrl.u32 %v8334_v54, 16  ;;  %v2199_v50 = vshll.u32 %v8352_v33, 16 }
  0xce   : > { %v1709_v9 = vrot.slane %v1707_v6, 1 }
  0xcf   : > { %v2201_v55 = vrot.slane %v2199_v50, 1 }
  0xd2   : > { %3234 = vmatmul.mubr.bf16.gmra.mrb[28].mxu0 %v8300_v52  ;;  %v1918_v52 = vrot.slane %v8331_v48, 1  ;;  %v2197_v48 = vshrl.u32 %v8352_v33, 16 }
  0xd3   : > { %3241 = vmatprep.mubr.bf16.mxu0 %v1270_v22  ;;  %v1685_v22 = vrot.slane %v1683_v20, 1 }
  0xd4   : > { %3347 = vmatmul.mubr.bf16.gmra.mrb[28].mxu1 %v1437_v7  ;;  %v1920_v56 = vsel %vm1413_vm10, %v1918_v52, %v1919_v53  ;;  %v1674_v7 = vor.u32 %v1673_v0, %v1669_v58  ;;  %v1698_v52 = vor.u32 %v1697_v45, %v1693_v38  ;;  %v2202_v61 = vor.u32 %v2201_v55, %v2197_v48 }
  0xd5   : > { %3354 = vmatprep.mubr.bf16.mxu1 %v8313_v17  ;;  %v8343_v17 = vld [vmem:[%s9067_s6 + $0x20] ss:$0 sps:$4 sm:$0x11]   ;;  %v1686_v29 = vor.u32 %v1685_v22, %v1681_v18  ;;  %v1927_v0 = vrot.slane %v8356_v59, 1  ;;  %v8363_v18 = vld [vmem:[%s10124_s1 + $0x218] sm:$0xff]   ;;  %v8368_v22 = vld [vmem:[%s9067_s6 + $0x48] sm:$0xff]  }
  0xd6   : > { %v1679_v13 = vsel %vm1162_vm9, %v1674_v7, %v1678_v1  ;;  %v1688_v49 = vshll.u32 %v8343_v17, 16  ;;  %v1705_v1 = vshrl.u32 %v8358_v60, 16  ;;  %v2216_v17 = vshll.u32 %v8361_v11, 16  ;;  %v8377_v59 = vld [vmem:[%s9067_s6 + $0x5c] ss:$0 sps:$4 sm:$0x11]  }
  0xd7   : > { %v2221_v30 = vshrl.u32 %v8368_v22, 16 }
  0xd8   : > { %v1690_v24 = vrot.slane %v1688_v49, 1  ;;  %v2218_v31 = vrot.slane %v2216_v17, 1  ;;  %v8366_v49 = vld [vmem:[%s9067_s6 + $0x3c] sm:$0xff]  }
  0xda   : > { %3242 = vmatmul.mubr.bf16.gmra.mrb[32].mxu0 %v8312_v14  ;;  %v2178_v14 = vor.u32 %v2177_v8, %v2173_v3  ;;  %v1929_v8 = vsel %vm1413_vm10, %v1927_v0, %v1928_v4 }
  0xdb   : > { %3249 = vmatprep.mubr.bf16.mxu0 %v1282_v42  ;;  %v8351_v42 = vld [vmem:[%s9067_s6 + $0x2c] ss:$0 sps:$4 sm:$0x11]  }
  0xdc   : > { %3355 = vmatmul.mubr.bf16.gmra.mrb[32].mxu1 %v1440_v25  ;;  %v2183_v19 = vsel %vm1162_vm9, %v2178_v14, %v2182_v10  ;;  %v2192_v25 = vshll.u32 %v8345_v21, 16  ;;  %v1700_v46 = vshll.u32 %v8351_v42, 16  ;;  %v1712_v10 = vshll.u32 %v8359_v5, 16  ;;  %v8365_v21 = vld [vmem:[%s9067_s6 + $0x44] ss:$0 sps:$4 sm:$0x11]  }
  0xdd   : > { %3362 = vmatprep.mubr.bf16.mxu1 %v8325_v37  ;;  %v8349_v37 = vld [vmem:[%s9067_s6 + $0x2c] ss:$0 sps:$4 sm:$0x11]   ;;  %v1710_v14 = vor.u32 %v1709_v9, %v1705_v1  ;;  %v2240_v1 = vshll.u32 %v8377_v59, 16  ;;  %v8379_v5 = vld [vmem:[%s9067_s6 + $0x54] sm:$0xfe]  }
  0xde   : > { %v2194_v32 = vrot.slane %v2192_v25, 1  ;;  %v1925_v41 = vrot.slane %v8349_v37, 1  ;;  %v1702_v53 = vrot.slane %v1700_v46, 1  ;;  %v1714_v15 = vrot.slane %v1712_v10, 1  ;;  %v8371_v42 = vld [vmem:[%s9067_s6 + $0x48] sm:$0xfe]  }
  0xdf   : > { %v1717_v25 = vshrl.u32 %v8366_v49, 16  ;;  %v8372_v46 = vld [vmem:[%s9067_s6 + $0x50] ss:$0 sps:$4 sm:$0x11]   ;;  %v1936_v10 = vrot.slane %v8379_v5, 1 }
  0xe0   : > { %v2195_v39 = vsel %vm1162_vm9, %v2190_v35, %v2194_v32  ;;  %v1926_v44 = vsel %vm1413_vm10, %v1924_v40, %v1925_v41  ;;  %v2223_v35 = vshll.u32 %v8368_v22, 16  ;;  %v8373_v41 = vld [vmem:[%s9067_s6 + $0x48] sm:$0xff]   ;;  %v8400_v5 = vld [vmem:[%s9067_s6 + $0x80] ss:$0 sps:$4 sm:$0x11]  }
  0xe1   : > { %v1729_v48 = vshrl.u32 %v8373_v41, 16  ;;  %v8386_v22 = vld [vmem:[%s10124_s1 + $0x228] sm:$0xff]  }
  0xe2   : > { %3250 = vmatmul.mubr.bf16.gmra.mrb[36].mxu0 %v8324_v34  ;;  %v1691_v34 = vsel %vm1162_vm9, %v1686_v29, %v1690_v24  ;;  %v1719_v29 = vshll.u32 %v8366_v49, 16 }
  0xe3   : > { %3403 = vmatprep.mubr.bf16.mxu0 %v1920_v56  ;;  %v8355_v56 = vld [vmem:[%s10124_s1 + $0x210] sm:$0xff]  }
  0xe4   : > { %3363 = vmatmul.mubr.bf16.gmra.mrb[36].mxu1 %v1443_v47  ;;  %v8353_v47 = vld [vmem:[%s9067_s6 + $0x38] ss:$0 sps:$4 sm:$0x11]   ;;  %v1721_v32 = vrot.slane %v1719_v29, 1 }
  0xe5   : > { %3516 = vmatprep.mubr.bf16.mxu1 %v2183_v19  ;;  %v2204_v54 = vshll.u32 %v8353_v47, 16  ;;  %v1715_v19 = vsel %vm1162_vm9, %v1710_v14, %v1714_v15  ;;  %v1933_v47 = vrot.slane %v8371_v42, 1  ;;  %v8382_v14 = vld [vmem:[%s9067_s6 + $0x5c] ss:$0 sps:$4 sm:$0x11]  }
  0xe6   : > { %v1722_v37 = vor.u32 %v1721_v32, %v1717_v25 }
  0xe7   : > { %v2206_v58 = vrot.slane %v2204_v54, 1  ;;  %v8375_v54 = vld [vmem:[%s10124_s1 + $0x220] sm:$0xff]  }
  0xe9   : > { %v2207_v3 = vsel %vm1162_vm9, %v2202_v61, %v2206_v58  ;;  %v8376_v58 = vld [vmem:[%s9067_s6 + $0x54] sm:$0xff]  }
  0xea   : > { %3404 = vmatmul.mubr.bf16.vlgmr.msra.gmra.mrb[40].mxu0 %v1679_v13  ;;  %v8362_v13 = vld [vmem:[%s9067_s6 + $0x3c] sm:$0xff]   ;;  %v2235_v0 = vshll.u32 %v8376_v58, 16 }
  0xeb   : > { %8098 = vmatpush3.bf16.msra.mxu0 %v8336_v57  ;;  %3411 = vmatprep.mubr.bf16.mxu0 %v1923_v2  ;;  %v1703_v57 = vsel %vm1162_vm9, %v1698_v52, %v1702_v53  ;;  %v8364_v2 = vld [vmem:[%s9067_s6 + $0x3c] sm:$0xfe]   ;;  %v8374_v52 = vld [vmem:[%s9067_s6 + $0x50] ss:$0 sps:$4 sm:$0x11]   ;;  %v1731_v53 = vshll.u32 %v8373_v41, 16 }
  0xec   : > { %3517 = vmatmul.mubr.bf16.vlgmr.msra.gmra.mrb[40].mxu1 %v8339_v63  ;;  %8099 = vmatprep.subr.bf16.mxu0 %v8347_v27  ;;  %v8360_v63 = vld [vmem:[%s9067_s6 + $0x3c] sm:$0xff]   ;;  %v1930_v24 = vrot.slane %v8364_v2, 1  ;;  %v2237_v6 = vrot.slane %v2235_v0, 1 }
  0xed   : > { %3524 = vmatprep.mubr.bf16.mxu1 %v2195_v39  ;;  %v2209_v7 = vshrl.u32 %v8360_v63, 16  ;;  %v2211_v12 = vshll.u32 %v8360_v63, 16  ;;  %v2225_v39 = vrot.slane %v2223_v35, 1  ;;  %v2233_v63 = vshrl.u32 %v8376_v58, 16 }
  0xef   : > { %8100 = vmatpush3.bf16.msra.mxu0 %v8347_v27  ;;  %v2213_v16 = vrot.slane %v2211_v12, 1  ;;  %v8367_v27 = vld [vmem:[%s9067_s6 + $0x44] ss:$0 sps:$4 sm:$0x11]   ;;  %v2238_v12 = vor.u32 %v2237_v6, %v2233_v63  ;;  %v8401_v6 = vld [vmem:[%s9067_s6 + $0x78] sm:$0xff]  }
  0xf0   : > { %8101 = vmatprep.subr.bf16.mxu0 %v8355_v56  ;;  %v1724_v33 = vshll.u32 %v8367_v27, 16 }
  0xf1   : > { %v2214_v20 = vor.u32 %v2213_v16, %v2209_v7  ;;  %v2242_v7 = vrot.slane %v2240_v1, 1  ;;  %v8383_v16 = vld [vmem:[%s9067_s6 + $0x60] sm:$0xff]  }
  0xf2   : > { %3412 = vmatmul.mubr.bf16.gmra.mrb[44].mxu0 %v1691_v34  ;;  %v8369_v34 = vld [vmem:[%s9067_s6 + $0x50] ss:$0 sps:$4 sm:$0x11]   ;;  %v1726_v38 = vrot.slane %v1724_v33, 1  ;;  %v2245_v2 = vshrl.u32 %v8383_v16, 16  ;;  %v2247_v49 = vshll.u32 %v8383_v16, 16 }
  0xf3   : > { %3419 = vmatprep.mubr.bf16.mxu0 %v1926_v44  ;;  %8102 = vmatpush3.bf16.msra.mxu0 %v8355_v56  ;;  %v2219_v23 = vsel %vm1162_vm9, %v2214_v20, %v2218_v31  ;;  %v2228_v40 = vshll.u32 %v8369_v34, 16  ;;  %v2226_v44 = vor.u32 %v2225_v39, %v2221_v30  ;;  %v1733_v56 = vrot.slane %v1731_v53, 1  ;;  %v8384_v20 = vld [vmem:[%s9067_s6 + $0x68] ss:$0 sps:$4 sm:$0x11]  }
  0xf4   : > { %3525 = vmatmul.mubr.bf16.gmra.mrb[44].mxu1 %v8346_v26  ;;  %8103 = vmatprep.subr.bf16.mxu0 %v8363_v18  ;;  %v1931_v26 = vrot.slane %v8365_v21, 1  ;;  %v1727_v43 = vsel %vm1162_vm9, %v1722_v37, %v1726_v38  ;;  %v2243_v17 = vsel %vm1162_vm9, %v2238_v12, %v2242_v7  ;;  %v8385_v21 = vld [vmem:[%s9067_s6 + $0x60] sm:$0xff]   ;;  %v2249_v25 = vrot.slane %v2247_v49, 1  ;;  %v8388_v33 = vld [vmem:[%s9067_s6 + $0x68] ss:$0 sps:$4 sm:$0x11]  }
  0xf5   : > { %3532 = vmatprep.mubr.bf16.mxu1 %v2207_v3  ;;  %v2230_v45 = vrot.slane %v2228_v40, 1  ;;  %v1734_v60 = vor.u32 %v1733_v56, %v1729_v48  ;;  %v8381_v3 = vld [vmem:[%s9067_s6 + $0x54] sm:$0xff]   ;;  %v8387_v30 = vld [vmem:[%s9067_s6 + $0x60] sm:$0xfe]   ;;  %v1940_v38 = vrot.slane %v8388_v33, 1 }
  0xf6   : > { %v1932_v28 = vsel %vm1413_vm10, %v1930_v24, %v1931_v26  ;;  %v1741_v9 = vshrl.u32 %v8381_v3, 16  ;;  %v1743_v11 = vshll.u32 %v8381_v3, 16  ;;  %v2252_v24 = vshll.u32 %v8384_v20, 16  ;;  %v8389_v26 = vld [vmem:[%s9067_s6 + $0x60] sm:$0xff]   ;;  %v8395_v56 = vld [vmem:[%s9067_s6 + $0x6c] sm:$0xfe]  }
  0xf7   : > { %8104 = vmatpush3.bf16.msra.mxu0 %v8363_v18  ;;  %v2231_v50 = vsel %vm1162_vm9, %v2226_v44, %v2230_v45  ;;  %v2250_v32 = vor.u32 %v2249_v25, %v2245_v2  ;;  %v1753_v34 = vshrl.u32 %v8389_v26, 16  ;;  %v1939_v35 = vrot.slane %v8387_v30, 1  ;;  %v8390_v39 = vld [vmem:[%s9067_s6 + $0x68] ss:$0 sps:$4 sm:$0x11]   ;;  %v8402_v12 = vld [vmem:[%s10124_s1 + $0x238] sm:$0xff]  }
  0xf8   : > { %8105 = vmatprep.subr.bf16.mxu0 %v8375_v54  ;;  %v1745_v15 = vrot.slane %v1743_v11, 1  ;;  %v2254_v29 = vrot.slane %v2252_v24, 1  ;;  %v8392_v44 = vld [vmem:[%s9067_s6 + $0x74] ss:$0 sps:$4 sm:$0x11]   ;;  %v1942_v59 = vrot.slane %v8395_v56, 1 }
  0xf9   : > { %v1941_v42 = vsel %vm1413_vm10, %v1939_v35, %v1940_v38  ;;  %v2276_v11 = vshll.u32 %v8400_v5, 16  ;;  %v8406_v49 = vld [vmem:[%s9067_s6 + $0x80] ss:$0 sps:$4 sm:$0x11]   ;;  %v8407_v24 = vld [vmem:[%s9067_s6 + $0x84] sm:$0xff]  }
  0xfa   : > { %3420 = vmatmul.mubr.bf16.gmra.mrb[48].mxu0 %v1703_v57  ;;  %v1736_v57 = vshll.u32 %v8374_v52, 16  ;;  %v1746_v31 = vor.u32 %v1745_v15, %v1741_v9  ;;  %v2255_v37 = vsel %vm1162_vm9, %v2250_v32, %v2254_v29  ;;  %v8394_v52 = vld [vmem:[%s10124_s1 + $0x230] sm:$0xff]   ;;  %v8405_v15 = vld [vmem:[%s9067_s6 + $0x78] sm:$0xff]   ;;  %v2281_v30 = vshrl.u32 %v8407_v24, 16  ;;  %v8409_v32 = vld [vmem:[%s9067_s6 + $0x84] sm:$0xff]  }
  0xfb   : > { %3427 = vmatprep.mubr.bf16.mxu0 %v1929_v8  ;;  %8106 = vmatpush3.bf16.msra.mxu0 %v8375_v54  ;;  %v8380_v8 = vld [vmem:[%s9067_s6 + $0x5c] ss:$0 sps:$4 sm:$0x11]   ;;  %v2278_v16 = vrot.slane %v2276_v11, 1  ;;  %v8416_v56 = vld [vmem:[%s9067_s6 + $0x3c] sm:$0xfe]  }
  0xfc   : > { %3533 = vmatmul.mubr.bf16.gmra.mrb[48].mxu1 %v8354_v51  ;;  %v1934_v51 = vrot.slane %v8372_v46, 1  ;;  %v1738_v61 = vrot.slane %v1736_v57, 1  ;;  %8107 = vmatprep.subr.bf16.mxu0 %v8386_v22  ;;  %v8393_v46 = vld [vmem:[%s9067_s6 + $0x6c] sm:$0xff]   ;;  %v8396_v57 = vld [vmem:[%s9067_s6 + $0x74] ss:$0 sps:$4 sm:$0x11]  }
  0xfd   : > { %3540 = vmatprep.mubr.bf16.mxu1 %v2219_v23  ;;  %v8410_v38 = vld [vmem:[%s9067_s6 + $0x18] sm:$0xfe]  }
  0xfe   : > { %v1935_v55 = vsel %vm1413_vm10, %v1933_v47, %v1934_v51  ;;  %v1739_v4 = vsel %vm1162_vm9, %v1734_v60, %v1738_v61  ;;  %v2264_v51 = vshll.u32 %v8392_v44, 16  ;;  %v1943_v60 = vrot.slane %v8396_v57, 1  ;;  %v8397_v61 = vld [vmem:[%s9067_s6 + $0x6c] sm:$0xff]   ;;  %v8412_v44 = vld [vmem:[%s9067_s6 + $0x24] sm:$0xfe]  }
  0xff   : > { %8108 = vmatpush3.bf16.msra.mxu0 %v8386_v22  ;;  %v1765_v0 = vshrl.u32 %v8397_v61, 16  ;;  %v1767_v1 = vshll.u32 %v8397_v61, 16  ;;  %v8417_v57 = vld [vmem:[%s9067_s6 + $0x44] ss:$0 sps:$4 sm:$0x11]  }
 0x100   : > { %8109 = vmatprep.subr.bf16.mxu0 %v8394_v52  ;;  %v1944_v63 = vsel %vm1413_vm10, %v1942_v59, %v1943_v60  ;;  %v2431_v59 = vrot.slane %v8416_v56, 1  ;;  %v2432_v60 = vrot.slane %v8417_v57, 1  ;;  %v8418_v61 = vld [vmem:[%s9067_s6 + $0x48] sm:$0xfe]  }
 0x101   : > { %v1769_v7 = vrot.slane %v1767_v1, 1  ;;  %v8420_v1 = vld [vmem:[%s9067_s6 + $0x54] sm:$0xfe]  }
 0x102   : > { %3428 = vmatmul.mubr.bf16.gmra.mrb[52].mxu0 %v1715_v19  ;;  %v1748_v19 = vshll.u32 %v8382_v14, 16  ;;  %v2437_v5 = vrot.slane %v8420_v1, 1 }
 0x103   : > { %3435 = vmatprep.mubr.bf16.mxu0 %v1932_v28  ;;  %v8391_v28 = vld [vmem:[%s9067_s6 + $0x6c] sm:$0xff]   ;;  %8110 = vmatpush3.bf16.msra.mxu0 %v8394_v52  ;;  %v8415_v52 = vld [vmem:[%s9067_s6 + $0x38] ss:$0 sps:$4 sm:$0x11]  }
 0x104   : > { %3541 = vmatmul.mubr.bf16.gmra.mrb[52].mxu1 %v8362_v13  ;;  %v1937_v13 = vrot.slane %v8380_v8, 1  ;;  %v1750_v23 = vrot.slane %v1748_v19, 1  ;;  %v2257_v41 = vshrl.u32 %v8391_v28, 16  ;;  %v2259_v45 = vshll.u32 %v8391_v28, 16  ;;  %8111 = vmatprep.subr.bf16.mxu0 %v8402_v12 }
 0x105   : > { %3548 = vmatprep.mubr.bf16.mxu1 %v2231_v50  ;;  %v2283_v28 = vshll.u32 %v8407_v24, 16 }
 0x106   : > { %v1938_v18 = vsel %vm1413_vm10, %v1936_v10, %v1937_v13  ;;  %v1751_v27 = vsel %vm1162_vm9, %v1746_v31, %v1750_v23  ;;  %v2261_v50 = vrot.slane %v2259_v45, 1  ;;  %v1770_v13 = vor.u32 %v1769_v7, %v1765_v0 }
 0x107   : > { %8112 = vmatpush3.bf16.msra.mxu0 %v8402_v12  ;;  %v1779_v23 = vshll.u32 %v8405_v15, 16  ;;  %v2434_v0 = vrot.slane %v8418_v61, 1 }
 0x108   : > { %v2262_v54 = vor.u32 %v2261_v50, %v2257_v41  ;;  %v8414_v50 = vld [vmem:[%s9067_s6 + $0x30] sm:$0xfe]  }
 0x109   : > { %v1781_v29 = vrot.slane %v1779_v23, 1 }
 0x10a   : > { %3436 = vmatmul.mubr.bf16.gmra.mrb[56].mxu0 %v1727_v43  ;;  %v1760_v43 = vshll.u32 %v8390_v39, 16  ;;  %v8411_v39 = vld [vmem:[%s9067_s6 + $0x20] ss:$0 sps:$4 sm:$0x11]  }
 0x10b   : > { %3443 = vmatprep.mubr.bf16.mxu0 %v1935_v55  ;;  %v2266_v55 = vrot.slane %v2264_v51, 1 }
 0x10c   : > { %3549 = vmatmul.mubr.bf16.gmra.mrb[56].mxu1 %v8370_v36  ;;  %v1755_v36 = vshll.u32 %v8389_v26, 16  ;;  %v1762_v48 = vrot.slane %v1760_v43, 1  ;;  %v1784_v26 = vshll.u32 %v8406_v49, 16  ;;  %v2423_v43 = vrot.slane %v8411_v39, 1  ;;  %v8428_v49 = vld [vmem:[%s9067_s6 + $0x84] sm:$0xfe]  }
 0x10d   : > { %3556 = vmatprep.mubr.bf16.mxu1 %v2243_v17  ;;  %v2267_v58 = vsel %vm1162_vm9, %v2262_v54, %v2266_v55  ;;  %v8403_v17 = vld [vmem:[%s9067_s6 + $0x78] sm:$0xfe]   ;;  %v2429_v55 = vrot.slane %v8415_v52, 1  ;;  %v2449_v23 = vrot.slane %v8428_v49, 1 }
 0x10e   : > { %v1757_v40 = vrot.slane %v1755_v36, 1  ;;  %v1945_v31 = vrot.slane %v8403_v17, 1  ;;  %v1786_v33 = vrot.slane %v1784_v26, 1  ;;  %v2285_v36 = vrot.slane %v2283_v28, 1  ;;  %v8426_v17 = vld [vmem:[%s9067_s6 + $0x78] sm:$0xfe]  }
 0x110   : > { %v1758_v47 = vor.u32 %v1757_v40, %v1753_v34  ;;  %v2286_v41 = vor.u32 %v2285_v36, %v2281_v30 }
 0x112   : > { %3444 = vmatmul.mubr.bf16.gmra.mrb[60].mxu0 %v1739_v4  ;;  %v1763_v53 = vsel %vm1162_vm9, %v1758_v47, %v1762_v48  ;;  %v8399_v4 = vld [vmem:[%s9067_s6 + $0x78] sm:$0xff]   ;;  %v2425_v48 = vrot.slane %v8412_v44, 1 }
 0x113   : > { %3451 = vmatprep.mubr.bf16.mxu0 %v1938_v18  ;;  %v2269_v9 = vshrl.u32 %v8399_v4, 16  ;;  %v2271_v10 = vshll.u32 %v8399_v4, 16  ;;  %v8404_v18 = vld [vmem:[%s9067_s6 + $0x80] ss:$0 sps:$4 sm:$0x11]  }
 0x114   : > { %3557 = vmatmul.mubr.bf16.gmra.mrb[60].mxu1 %v8378_v62  ;;  %v8398_v62 = vld [vmem:[%s9067_s6 + $0x74] ss:$0 sps:$4 sm:$0x11]   ;;  %v1946_v2 = vrot.slane %v8404_v18, 1 }
 0x115   : > { %3564 = vmatprep.mubr.bf16.mxu1 %v2255_v37  ;;  %v1772_v3 = vshll.u32 %v8398_v62, 16  ;;  %v2273_v14 = vrot.slane %v2271_v10, 1  ;;  %v8419_v62 = vld [vmem:[%s9067_s6 + $0x50] ss:$0 sps:$4 sm:$0x11]  }
 0x116   : > { %v1947_v25 = vsel %vm1413_vm10, %v1945_v31, %v1946_v2  ;;  %v8421_v4 = vld [vmem:[%s9067_s6 + $0x5c] ss:$0 sps:$4 sm:$0x11]  }
 0x117   : > { %v1774_v8 = vrot.slane %v1772_v3, 1  ;;  %v2274_v20 = vor.u32 %v2273_v14, %v2269_v9  ;;  %v2435_v3 = vrot.slane %v8419_v62, 1  ;;  %v2438_v7 = vrot.slane %v8421_v4, 1  ;;  %v8423_v9 = vld [vmem:[%s9067_s6 + $0x68] ss:$0 sps:$4 sm:$0x11]  }
 0x118   : > { %v2441_v12 = vrot.slane %v8423_v9, 1  ;;  %v8425_v14 = vld [vmem:[%s9067_s6 + $0x74] ss:$0 sps:$4 sm:$0x11]  }
 0x119   : > { %v1775_v19 = vsel %vm1162_vm9, %v1770_v13, %v1774_v8  ;;  %v2279_v22 = vsel %vm1162_vm9, %v2274_v20, %v2278_v16  ;;  %v8422_v8 = vld [vmem:[%s9067_s6 + $0x60] sm:$0xfe]   ;;  %v2439_v10 = vsel %vm1413_vm10, %v2437_v5, %v2438_v7  ;;  %v8424_v13 = vld [vmem:[%s9067_s6 + $0x6c] sm:$0xfe]   ;;  %v2444_v18 = vrot.slane %v8425_v14, 1 }
 0x11a   : > { %3452 = vmatmul.mubr.bf16.gmra.mrb[64].mxu0 %v1751_v27  ;;  %v8408_v27 = vld [vmem:[%s9067_s6 + $0x8c] ss:$0 sps:$4 sm:$0x11]   ;;  %v2440_v11 = vrot.slane %v8422_v8, 1  ;;  %v2443_v16 = vrot.slane %v8424_v13, 1  ;;  %v2446_v20 = vrot.slane %v8426_v17, 1 }
 0x11b   : > { %3459 = vmatprep.mubr.bf16.mxu0 %v1941_v42  ;;  %v2288_v34 = vshll.u32 %v8408_v27, 16  ;;  %v2422_v42 = vrot.slane %v8410_v38, 1  ;;  %v9405_v27 = vld [vmem:[%s10125_s2] ss:$0 sm:$0xff] }
 0x11c   : > { %3565 = vmatmul.mubr.bf16.gmra.mrb[64].mxu1 %v8385_v21  ;;  %v1777_v21 = vshrl.u32 %v8405_v15, 16  ;;  %v2442_v15 = vsel %vm1413_vm10, %v2440_v11, %v2441_v12  ;;  %v2445_v31 = vsel %vm1413_vm10, %v2443_v16, %v2444_v18 }
 0x11d   : > { %3572 = vmatprep.mubr.bf16.mxu1 %v2267_v58  ;;  %v2290_v37 = vrot.slane %v2288_v34, 1  ;;  %v2424_v47 = vsel %vm1413_vm10, %v2422_v42, %v2423_v43 }
 0x11e   : > { %v1782_v35 = vor.u32 %v1781_v29, %v1777_v21  ;;  %v8429_v21 = vld [vmem:[%s9067_s6 + $0x8c] ss:$0 sps:$4 sm:$0x11]  }
 0x11f   : > { %v2291_v45 = vsel %vm1162_vm9, %v2286_v41, %v2290_v37  ;;  %v2450_v24 = vrot.slane %v8429_v21, 1 }
 0x120   : > { %v1787_v40 = vsel %vm1162_vm9, %v1782_v35, %v1786_v33 }
 0x122   : > { %3460 = vmatmul.mubr.bf16.gmra.mrb[68].mxu0 %v1763_v53  ;;  %v2428_v53 = vrot.slane %v8414_v50, 1 }
 0x123   : > { %3467 = vmatprep.mubr.bf16.mxu0 %v1944_v63  ;;  %v2433_v63 = vsel %vm1413_vm10, %v2431_v59, %v2432_v60 }
 0x124   : > { %3573 = vmatmul.mubr.bf16.gmra.mrb[68].mxu1 %v8393_v46  ;;  %v8413_v46 = vld [vmem:[%s9067_s6 + $0x2c] ss:$0 sps:$4 sm:$0x11]   ;;  %v2430_v58 = vsel %vm1413_vm10, %v2428_v53, %v2429_v55 }
 0x125   : > { %3580 = vmatprep.mubr.bf16.mxu1 %v2279_v22  ;;  %v2426_v51 = vrot.slane %v8413_v46, 1 }
 0x127   : > { %v2427_v54 = vsel %vm1413_vm10, %v2425_v48, %v2426_v51 }
 0x12a   : > { %3468 = vmatmul.mubr.bf16.gmra.mrb[72].mxu0 %v1775_v19  ;;  %v8427_v19 = vld [vmem:[%s9067_s6 + $0x80] ss:$0 sps:$4 sm:$0x11]  }
 0x12b   : > { %3475 = vmatprep.mubr.bf16.mxu0 %v1947_v25  ;;  %v2447_v2 = vrot.slane %v8427_v19, 1  ;;  %v2451_v25 = vsel %vm1413_vm10, %v2449_v23, %v2450_v24 }
 0x12c   : > { %3581 = vmatmul.mubr.bf16.gmra.mrb[72].mxu1 %v8401_v6  ;;  %v2436_v6 = vsel %vm1413_vm10, %v2434_v0, %v2435_v3 }
 0x12d   : > { %3588 = vmatprep.mubr.bf16.mxu1 %v2291_v45  ;;  %v2448_v22 = vsel %vm1413_vm10, %v2446_v20, %v2447_v2 }
 0x132   : > { %3476 = vmatmul.mubr.bf16.gmra.mrb[76].mxu0 %v1787_v40 }
 0x133   : > { %8113 = vmatprep.mubr.bf16.mxu0 %v2424_v47 }
 0x134   : > { %3589 = vmatmul.mubr.bf16.gmra.mrb[76].mxu1 %v8409_v32 }
 0x13a   : > { %8114 = vmatmul.mubr.bf16.vlgmr.msra.gmra.mrb[80].mxu0 %v2427_v54 }
 0x13b   : > { %8117 = vmatprep.mubr.bf16.mxu0 %v2430_v58 }
 0x142   : > { %8118 = vmatmul.mubr.bf16.gmra.mrb[84].mxu0 %v2433_v63 }
 0x143   : > { %8121 = vmatprep.mubr.bf16.mxu0 %v2436_v6 }
 0x14a   : > { %8122 = vmatmul.mubr.bf16.gmra.mrb[88].mxu0 %v2439_v10 }
 0x14b   : > { %8125 = vmatprep.mubr.bf16.mxu0 %v2442_v15 }
 0x152   : > { %8126 = vmatmul.mubr.bf16.gmra.mrb[92].mxu0 %v2445_v31 }
 0x153   : > { %8129 = vmatprep.mubr.bf16.mxu0 %v2448_v22 }
 0x15a   : > { %8130 = vmatmul.mubr.bf16.gmra.mrb[96].mxu0 %v2451_v25 }
 0x16d   : > { %v7519_v26 = vpop.f32.mrb[0].mxu0 }
 0x16e   : > { %v7520_v29 = vpop.f32.mrb[1].mxu0 }
 0x16f   : > { %v7521_v30 = vadd.f32 %v7520_v29, %v7519_v26  ;;  %v7522_v28 = vpop.f32.mrb[2].mxu0  ;;  %v7595_v32 = vpop.f32.mrb[0].mxu1 }
 0x170   : > { %v7523_v33 = vpop.f32.mrb[3].mxu0  ;;  %v7596_v36 = vpop.f32.mrb[1].mxu1 }
 0x171   : > { %v3180_v34 = vadd.f32 %v7521_v30, %v9405_v27  ;;  %v7524_v35 = vadd.f32 %v7523_v33, %v7522_v28  ;;  %v7597_v37 = vadd.f32 %v7596_v36, %v7595_v32  ;;  %v7598_v38 = vpop.f32.mrb[2].mxu1 }
 0x172   : > { %v7599_v40 = vpop.f32.mrb[3].mxu1 }
 0x173   : > { %v3183_v39 = vadd.f32 %v7524_v35, %v9405_v27  ;;  %v9409_v41 = vadd.f32 %v7597_v37, %v3180_v34  ;;  %v7600_v42 = vadd.f32 %v7599_v40, %v7598_v38 }
 0x175   : > { %v7525_v43 = vpop.f32.mrb[4].mxu0  ;;  %v9411_v44 = vadd.f32 %v7600_v42, %v3183_v39 }
 0x176   : > { %v7526_v45 = vpop.f32.mrb[5].mxu0 }
 0x177   : > { %v7527_v46 = vadd.f32 %v7526_v45, %v7525_v43  ;;  %v7528_v47 = vpop.f32.mrb[6].mxu0  ;;  %v7601_v48 = vpop.f32.mrb[4].mxu1 }
 0x178   : > { %v7529_v50 = vpop.f32.mrb[7].mxu0  ;;  %v7602_v53 = vpop.f32.mrb[5].mxu1 }
 0x179   : > { %v3188_v51 = vadd.f32 %v7527_v46, %v9405_v27  ;;  %v7530_v52 = vadd.f32 %v7529_v50, %v7528_v47  ;;  %v7603_v54 = vadd.f32 %v7602_v53, %v7601_v48  ;;  %v7604_v55 = vpop.f32.mrb[6].mxu1 }
 0x17a   : > { %v7605_v57 = vpop.f32.mrb[7].mxu1 }
 0x17b   : > { %v3191_v56 = vadd.f32 %v7530_v52, %v9405_v27  ;;  %v9415_v58 = vadd.f32 %v7603_v54, %v3188_v51  ;;  %v7606_v59 = vadd.f32 %v7605_v57, %v7604_v55 }
 0x17d   : > { %v7531_v60 = vpop.f32.mrb[8].mxu0  ;;  %v9417_v61 = vadd.f32 %v7606_v59, %v3191_v56 }
 0x17e   : > { %v7532_v62 = vpop.f32.mrb[9].mxu0 }
 0x17f   : > { %v7533_v63 = vadd.f32 %v7532_v62, %v7531_v60  ;;  %v7534_v0 = vpop.f32.mrb[10].mxu0  ;;  %v7607_v1 = vpop.f32.mrb[8].mxu1 }
 0x180   : > { %v7535_v3 = vpop.f32.mrb[11].mxu0  ;;  %v7608_v6 = vpop.f32.mrb[9].mxu1 }
 0x181   : > { %v3196_v4 = vadd.f32 %v7533_v63, %v9405_v27  ;;  %v7536_v5 = vadd.f32 %v7535_v3, %v7534_v0  ;;  %v7609_v7 = vadd.f32 %v7608_v6, %v7607_v1  ;;  %v7610_v8 = vpop.f32.mrb[10].mxu1 }
 0x182   : > { %v7611_v10 = vpop.f32.mrb[11].mxu1 }
 0x183   : > { %v3199_v9 = vadd.f32 %v7536_v5, %v9405_v27  ;;  %v9421_v11 = vadd.f32 %v7609_v7, %v3196_v4  ;;  %v7612_v12 = vadd.f32 %v7611_v10, %v7610_v8 }
 0x185   : > { %v7537_v13 = vpop.f32.mrb[12].mxu0  ;;  %v9423_v14 = vadd.f32 %v7612_v12, %v3199_v9 }
 0x186   : > { %v7538_v15 = vpop.f32.mrb[13].mxu0 }
 0x187   : > { %v7539_v16 = vadd.f32 %v7538_v15, %v7537_v13  ;;  %v7540_v17 = vpop.f32.mrb[14].mxu0  ;;  %v7613_v18 = vpop.f32.mrb[12].mxu1 }
 0x188   : > { %v7541_v19 = vpop.f32.mrb[15].mxu0  ;;  %v7614_v2 = vpop.f32.mrb[13].mxu1 }
 0x189   : > { %v3204_v20 = vadd.f32 %v7539_v16, %v9405_v27  ;;  %v7542_v31 = vadd.f32 %v7541_v19, %v7540_v17  ;;  %v7615_v49 = vadd.f32 %v7614_v2, %v7613_v18  ;;  %v7616_v21 = vpop.f32.mrb[14].mxu1 }
 0x18a   : > { %v7617_v23 = vpop.f32.mrb[15].mxu1 }
 0x18b   : > { %v3207_v22 = vadd.f32 %v7542_v31, %v9405_v27  ;;  %v9427_v24 = vadd.f32 %v7615_v49, %v3204_v20  ;;  %v7618_v25 = vadd.f32 %v7617_v23, %v7616_v21 }
 0x18d   : > { %v7543_v26 = vpop.f32.mrb[16].mxu0  ;;  %v9429_v29 = vadd.f32 %v7618_v25, %v3207_v22 }
 0x18e   : > { %v7544_v30 = vpop.f32.mrb[17].mxu0 }
 0x18f   : > { %v7545_v28 = vadd.f32 %v7544_v30, %v7543_v26  ;;  %v7546_v32 = vpop.f32.mrb[18].mxu0  ;;  %v7619_v33 = vpop.f32.mrb[16].mxu1 }
 0x190   : > { %v7547_v34 = vpop.f32.mrb[19].mxu0  ;;  %v7620_v37 = vpop.f32.mrb[17].mxu1 }
 0x191   : > { %v3212_v35 = vadd.f32 %v7545_v28, %v9405_v27  ;;  %v7548_v36 = vadd.f32 %v7547_v34, %v7546_v32  ;;  %v7621_v38 = vadd.f32 %v7620_v37, %v7619_v33  ;;  %v7622_v39 = vpop.f32.mrb[18].mxu1 }
 0x192   : > { %v7623_v42 = vpop.f32.mrb[19].mxu1 }
 0x193   : > { %v3215_v40 = vadd.f32 %v7548_v36, %v9405_v27  ;;  %v9433_v43 = vadd.f32 %v7621_v38, %v3212_v35  ;;  %v7624_v45 = vadd.f32 %v7623_v42, %v7622_v39 }
 0x195   : > { %v9435_v46 = vadd.f32 %v7624_v45, %v3215_v40  ;;  %v7549_v47 = vpop.f32.mrb[20].mxu0 }
 0x196   : > { %v7550_v48 = vpop.f32.mrb[21].mxu0 }
 0x197   : > { %v7551_v50 = vadd.f32 %v7550_v48, %v7549_v47  ;;  %v7552_v51 = vpop.f32.mrb[22].mxu0  ;;  %v7625_v52 = vpop.f32.mrb[20].mxu1 }
 0x198   : > { %v7553_v53 = vpop.f32.mrb[23].mxu0  ;;  %v7626_v54 = vpop.f32.mrb[21].mxu1 }
 0x199   : > { %v3220_v55 = vadd.f32 %v7551_v50, %v9405_v27  ;;  %v7554_v56 = vadd.f32 %v7553_v53, %v7552_v51  ;;  %v7627_v57 = vadd.f32 %v7626_v54, %v7625_v52  ;;  %v7628_v59 = vpop.f32.mrb[22].mxu1 }
 0x19a   : > { %v7629_v60 = vpop.f32.mrb[23].mxu1 }
 0x19b   : > { %v3223_v62 = vadd.f32 %v7554_v56, %v9405_v27  ;;  %v9439_v63 = vadd.f32 %v7627_v57, %v3220_v55  ;;  %v7630_v0 = vadd.f32 %v7629_v60, %v7628_v59 }
 0x19d   : > { %v9441_v1 = vadd.f32 %v7630_v0, %v3223_v62  ;;  %v7555_v3 = vpop.f32.mrb[24].mxu0 }
 0x19e   : > { %v7556_v4 = vpop.f32.mrb[25].mxu0 }
 0x19f   : > { %v7557_v5 = vadd.f32 %v7556_v4, %v7555_v3  ;;  %v7558_v6 = vpop.f32.mrb[26].mxu0  ;;  %v7631_v7 = vpop.f32.mrb[24].mxu1 }
 0x1a0   : > { %v7559_v8 = vpop.f32.mrb[27].mxu0  ;;  %v7632_v9 = vpop.f32.mrb[25].mxu1 }
 0x1a1   : > { %v3228_v10 = vadd.f32 %v7557_v5, %v9405_v27  ;;  %v7560_v12 = vadd.f32 %v7559_v8, %v7558_v6  ;;  %v7633_v13 = vadd.f32 %v7632_v9, %v7631_v7  ;;  %v7634_v15 = vpop.f32.mrb[26].mxu1 }
 0x1a2   : > { %v7635_v16 = vpop.f32.mrb[27].mxu1 }
 0x1a3   : > { %v3231_v17 = vadd.f32 %v7560_v12, %v9405_v27  ;;  %v9445_v18 = vadd.f32 %v7633_v13, %v3228_v10  ;;  %v7636_v19 = vadd.f32 %v7635_v16, %v7634_v15 }
 0x1a5   : > { %v9447_v20 = vadd.f32 %v7636_v19, %v3231_v17  ;;  %v7561_v31 = vpop.f32.mrb[28].mxu0 }
 0x1a6   : > { %v7562_v2 = vpop.f32.mrb[29].mxu0 }
 0x1a7   : > { %v7563_v49 = vadd.f32 %v7562_v2, %v7561_v31  ;;  %v7564_v21 = vpop.f32.mrb[30].mxu0  ;;  %v7637_v22 = vpop.f32.mrb[28].mxu1 }
 0x1a8   : > { %v7565_v23 = vpop.f32.mrb[31].mxu0  ;;  %v7638_v25 = vpop.f32.mrb[29].mxu1 }
 0x1a9   : > { %v3236_v26 = vadd.f32 %v7563_v49, %v9405_v27  ;;  %v7566_v30 = vadd.f32 %v7565_v23, %v7564_v21  ;;  %v7639_v28 = vadd.f32 %v7638_v25, %v7637_v22  ;;  %v7640_v32 = vpop.f32.mrb[30].mxu1 }
 0x1aa   : > { %v7641_v33 = vpop.f32.mrb[31].mxu1 }
 0x1ab   : > { %v3239_v34 = vadd.f32 %v7566_v30, %v9405_v27  ;;  %v9451_v35 = vadd.f32 %v7639_v28, %v3236_v26  ;;  %v7642_v36 = vadd.f32 %v7641_v33, %v7640_v32 }
 0x1ad   : > { %v9453_v37 = vadd.f32 %v7642_v36, %v3239_v34  ;;  %v7567_v38 = vpop.f32.mrb[32].mxu0 }
 0x1ae   : > { %v7568_v39 = vpop.f32.mrb[33].mxu0 }
 0x1af   : > { %v7643_v40 = vpop.f32.mrb[32].mxu1  ;;  %v7569_v42 = vadd.f32 %v7568_v39, %v7567_v38  ;;  %v7570_v45 = vpop.f32.mrb[34].mxu0 }
 0x1b0   : > { %v7644_v47 = vpop.f32.mrb[33].mxu1  ;;  %v7571_v48 = vpop.f32.mrb[35].mxu0 }
 0x1b1   : > { %v7645_v50 = vadd.f32 %v7644_v47, %v7643_v40  ;;  %v7646_v51 = vpop.f32.mrb[34].mxu1  ;;  %v3244_v52 = vadd.f32 %v7569_v42, %v9405_v27  ;;  %v7572_v53 = vadd.f32 %v7571_v48, %v7570_v45 }
 0x1b2   : > { %v7647_v54 = vpop.f32.mrb[35].mxu1 }
 0x1b3   : > { %v7648_v55 = vadd.f32 %v7647_v54, %v7646_v51  ;;  %v3247_v56 = vadd.f32 %v7572_v53, %v9405_v27  ;;  %v9457_v57 = vadd.f32 %v7645_v50, %v3244_v52 }
 0x1b5   : > { %v9459_v59 = vadd.f32 %v7648_v55, %v3247_v56  ;;  %v7573_v60 = vpop.f32.mrb[36].mxu0 }
 0x1b6   : > { %v7574_v62 = vpop.f32.mrb[37].mxu0 }
 0x1b7   : > { %v7575_v0 = vadd.f32 %v7574_v62, %v7573_v60  ;;  %v7576_v3 = vpop.f32.mrb[38].mxu0  ;;  %v7649_v4 = vpop.f32.mrb[36].mxu1 }
 0x1b8   : > { %v7577_v5 = vpop.f32.mrb[39].mxu0  ;;  %v7650_v6 = vpop.f32.mrb[37].mxu1 }
 0x1b9   : > { %v3252_v7 = vadd.f32 %v7575_v0, %v9405_v27  ;;  %v7578_v8 = vadd.f32 %v7577_v5, %v7576_v3  ;;  %v7651_v9 = vadd.f32 %v7650_v6, %v7649_v4  ;;  %v7652_v10 = vpop.f32.mrb[38].mxu1 }
 0x1ba   : > { %v7653_v12 = vpop.f32.mrb[39].mxu1 }
 0x1bb   : > { %v3255_v13 = vadd.f32 %v7578_v8, %v9405_v27  ;;  %v9463_v15 = vadd.f32 %v7651_v9, %v3252_v7  ;;  %v7654_v16 = vadd.f32 %v7653_v12, %v7652_v10 }
 0x1bd   : > { %v9465_v17 = vadd.f32 %v7654_v16, %v3255_v13  ;;  %v7671_v19 = vpop.f32.mrb[40].mxu0 }
 0x1be   : > { %v7672_v31 = vpop.f32.mrb[41].mxu0 }
 0x1bf   : > { %v7673_v2 = vadd.f32 %v7672_v31, %v7671_v19  ;;  %v7674_v49 = vpop.f32.mrb[42].mxu0  ;;  %v7747_v21 = vpop.f32.mrb[40].mxu1 }
 0x1c0   : > { %v7675_v22 = vpop.f32.mrb[43].mxu0  ;;  %v7748_v26 = vpop.f32.mrb[41].mxu1 }
 0x1c1   : > { %v3406_v23 = vadd.f32 %v7673_v2, %v9409_v41  ;;  %v7676_v25 = vadd.f32 %v7675_v22, %v7674_v49  ;;  %v7749_v30 = vadd.f32 %v7748_v26, %v7747_v21  ;;  %v7750_v28 = vpop.f32.mrb[42].mxu1 }
 0x1c2   : > { %v7751_v27 = vpop.f32.mrb[43].mxu1 }
 0x1c3   : > { %v3409_v32 = vadd.f32 %v7676_v25, %v9411_v44  ;;  %v7752_v33 = vadd.f32 %v7751_v27, %v7750_v28  ;;  %v9469_v34 = vadd.f32 %v7749_v30, %v3406_v23 }
 0x1c5   : > { %v7677_v36 = vpop.f32.mrb[44].mxu0  ;;  %v9471_v39 = vadd.f32 %v7752_v33, %v3409_v32 }
 0x1c6   : > { %v7678_v38 = vpop.f32.mrb[45].mxu0 }
 0x1c7   : > { %v7679_v40 = vadd.f32 %v7678_v38, %v7677_v36  ;;  %v7680_v42 = vpop.f32.mrb[46].mxu0  ;;  %v7753_v45 = vpop.f32.mrb[44].mxu1 }
 0x1c8   : > { %v7681_v47 = vpop.f32.mrb[47].mxu0  ;;  %v7754_v50 = vpop.f32.mrb[45].mxu1 }
 0x1c9   : > { %v3414_v41 = vadd.f32 %v7679_v40, %v9415_v58  ;;  %v7682_v48 = vadd.f32 %v7681_v47, %v7680_v42  ;;  %v7755_v51 = vadd.f32 %v7754_v50, %v7753_v45  ;;  %v7756_v52 = vpop.f32.mrb[46].mxu1 }
 0x1ca   : > { %v7757_v53 = vpop.f32.mrb[47].mxu1 }
 0x1cb   : > { %v3417_v44 = vadd.f32 %v7682_v48, %v9417_v61  ;;  %v7758_v54 = vadd.f32 %v7757_v53, %v7756_v52  ;;  %v9475_v55 = vadd.f32 %v7755_v51, %v3414_v41 }
 0x1cd   : > { %v7683_v56 = vpop.f32.mrb[48].mxu0  ;;  %v9477_v62 = vadd.f32 %v7758_v54, %v3417_v44 }
 0x1ce   : > { %v7684_v60 = vpop.f32.mrb[49].mxu0 }
 0x1cf   : > { %v7685_v0 = vadd.f32 %v7684_v60, %v7683_v56  ;;  %v7686_v3 = vpop.f32.mrb[50].mxu0  ;;  %v7759_v58 = vpop.f32.mrb[48].mxu1 }
 0x1d0   : > { %v7687_v4 = vpop.f32.mrb[51].mxu0  ;;  %v7760_v7 = vpop.f32.mrb[49].mxu1 }
 0x1d1   : > { %v3422_v5 = vadd.f32 %v7685_v0, %v9421_v11  ;;  %v7688_v6 = vadd.f32 %v7687_v4, %v7686_v3  ;;  %v7761_v9 = vadd.f32 %v7760_v7, %v7759_v58  ;;  %v7762_v61 = vpop.f32.mrb[50].mxu1 }
 0x1d2   : > { %v7763_v10 = vpop.f32.mrb[51].mxu1 }
 0x1d3   : > { %v3425_v8 = vadd.f32 %v7688_v6, %v9423_v14  ;;  %v7764_v12 = vadd.f32 %v7763_v10, %v7762_v61  ;;  %v9481_v13 = vadd.f32 %v7761_v9, %v3422_v5 }
 0x1d5   : > { %v7689_v16 = vpop.f32.mrb[52].mxu0  ;;  %v9483_v31 = vadd.f32 %v7764_v12, %v3425_v8 }
 0x1d6   : > { %v7690_v19 = vpop.f32.mrb[53].mxu0 }
 0x1d7   : > { %v7691_v2 = vadd.f32 %v7690_v19, %v7689_v16  ;;  %v7692_v49 = vpop.f32.mrb[54].mxu0  ;;  %v7765_v21 = vpop.f32.mrb[52].mxu1 }
 0x1d8   : > { %v7693_v22 = vpop.f32.mrb[55].mxu0  ;;  %v7766_v25 = vpop.f32.mrb[53].mxu1 }
 0x1d9   : > { %v3430_v11 = vadd.f32 %v7691_v2, %v9427_v24  ;;  %v7694_v23 = vadd.f32 %v7693_v22, %v7692_v49  ;;  %v7767_v26 = vadd.f32 %v7766_v25, %v7765_v21  ;;  %v7768_v14 = vpop.f32.mrb[54].mxu1 }
 0x1da   : > { %v7769_v28 = vpop.f32.mrb[55].mxu1 }
 0x1db   : > { %v3433_v30 = vadd.f32 %v7694_v23, %v9429_v29  ;;  %v7770_v32 = vadd.f32 %v7769_v28, %v7768_v14  ;;  %v9487_v27 = vadd.f32 %v7767_v26, %v3430_v11 }
 0x1dd   : > { %v7695_v33 = vpop.f32.mrb[56].mxu0  ;;  %v9489_v36 = vadd.f32 %v7770_v32, %v3433_v30 }
 0x1de   : > { %v7696_v38 = vpop.f32.mrb[57].mxu0 }
 0x1df   : > { %v7697_v40 = vadd.f32 %v7696_v38, %v7695_v33  ;;  %v7698_v42 = vpop.f32.mrb[58].mxu0  ;;  %v7771_v45 = vpop.f32.mrb[56].mxu1 }
 0x1e0   : > { %v7699_v47 = vpop.f32.mrb[59].mxu0  ;;  %v7772_v48 = vpop.f32.mrb[57].mxu1 }
 0x1e1   : > { %v3438_v24 = vadd.f32 %v7697_v40, %v9433_v43  ;;  %v7700_v41 = vadd.f32 %v7699_v47, %v7698_v42  ;;  %v7773_v50 = vadd.f32 %v7772_v48, %v7771_v45  ;;  %v7774_v51 = vpop.f32.mrb[58].mxu1 }
 0x1e2   : > { %v7775_v52 = vpop.f32.mrb[59].mxu1 }
 0x1e3   : > { %v3441_v29 = vadd.f32 %v7700_v41, %v9435_v46  ;;  %v7776_v44 = vadd.f32 %v7775_v52, %v7774_v51  ;;  %v9493_v53 = vadd.f32 %v7773_v50, %v3438_v24 }
 0x1e5   : > { %v7701_v54 = vpop.f32.mrb[60].mxu0  ;;  %v9495_v60 = vadd.f32 %v7776_v44, %v3441_v29 }
 0x1e6   : > { %v7702_v56 = vpop.f32.mrb[61].mxu0 }
 0x1e7   : > { %v7703_v0 = vadd.f32 %v7702_v56, %v7701_v54  ;;  %v7704_v3 = vpop.f32.mrb[62].mxu0  ;;  %v7777_v58 = vpop.f32.mrb[60].mxu1 }
 0x1e8   : > { %v7705_v4 = vpop.f32.mrb[63].mxu0  ;;  %v7778_v7 = vpop.f32.mrb[61].mxu1 }
 0x1e9   : > { %v3446_v5 = vadd.f32 %v7703_v0, %v9439_v63  ;;  %v7706_v43 = vadd.f32 %v7705_v4, %v7704_v3  ;;  %v7779_v8 = vadd.f32 %v7778_v7, %v7777_v58  ;;  %v7780_v46 = vpop.f32.mrb[62].mxu1 }
 0x1ea   : > { %v7781_v9 = vpop.f32.mrb[63].mxu1 }
 0x1eb   : > { %v3449_v6 = vadd.f32 %v7706_v43, %v9441_v1  ;;  %v7782_v10 = vadd.f32 %v7781_v9, %v7780_v46  ;;  %v9499_v16 = vadd.f32 %v7779_v8, %v3446_v5 }
 0x1ed   : > { %v7707_v61 = vpop.f32.mrb[64].mxu0  ;;  %v9501_v21 = vadd.f32 %v7782_v10, %v3449_v6 }
 0x1ee   : > { %v7708_v12 = vpop.f32.mrb[65].mxu0 }
 0x1ef   : > { %v7709_v19 = vadd.f32 %v7708_v12, %v7707_v61  ;;  %v7710_v2 = vpop.f32.mrb[66].mxu0  ;;  %v7783_v11 = vpop.f32.mrb[64].mxu1 }
 0x1f0   : > { %v7711_v49 = vpop.f32.mrb[67].mxu0  ;;  %v7784_v23 = vpop.f32.mrb[65].mxu1 }
 0x1f1   : > { %v3454_v63 = vadd.f32 %v7709_v19, %v9445_v18  ;;  %v7712_v22 = vadd.f32 %v7711_v49, %v7710_v2  ;;  %v7785_v25 = vadd.f32 %v7784_v23, %v7783_v11  ;;  %v7786_v26 = vpop.f32.mrb[66].mxu1 }
 0x1f2   : > { %v7787_v14 = vpop.f32.mrb[67].mxu1 }
 0x1f3   : > { %v3457_v1 = vadd.f32 %v7712_v22, %v9447_v20  ;;  %v7788_v30 = vadd.f32 %v7787_v14, %v7786_v26  ;;  %v9505_v32 = vadd.f32 %v7785_v25, %v3454_v63 }
 0x1f5   : > { %v7713_v28 = vpop.f32.mrb[68].mxu0  ;;  %v9507_v42 = vadd.f32 %v7788_v30, %v3457_v1 }
 0x1f6   : > { %v7714_v33 = vpop.f32.mrb[69].mxu0 }
 0x1f7   : > { %v7715_v38 = vadd.f32 %v7714_v33, %v7713_v28  ;;  %v7716_v40 = vpop.f32.mrb[70].mxu0  ;;  %v7789_v47 = vpop.f32.mrb[68].mxu1 }
 0x1f8   : > { %v7717_v45 = vpop.f32.mrb[71].mxu0  ;;  %v7790_v41 = vpop.f32.mrb[69].mxu1 }
 0x1f9   : > { %v3462_v18 = vadd.f32 %v7715_v38, %v9451_v35  ;;  %v7718_v24 = vadd.f32 %v7717_v45, %v7716_v40  ;;  %v7791_v48 = vadd.f32 %v7790_v41, %v7789_v47  ;;  %v7792_v50 = vpop.f32.mrb[70].mxu1 }
 0x1fa   : > { %v7793_v51 = vpop.f32.mrb[71].mxu1 }
 0x1fb   : > { %v3465_v20 = vadd.f32 %v7718_v24, %v9453_v37  ;;  %v7794_v29 = vadd.f32 %v7793_v51, %v7792_v50  ;;  %v9511_v52 = vadd.f32 %v7791_v48, %v3462_v18 }
 0x1fd   : > { %v7719_v44 = vpop.f32.mrb[72].mxu0  ;;  %v9513_v54 = vadd.f32 %v7794_v29, %v3465_v20 }
 0x1fe   : > { %v7720_v56 = vpop.f32.mrb[73].mxu0 }
 0x1ff   : > { %v7721_v0 = vadd.f32 %v7720_v56, %v7719_v44  ;;  %v7722_v3 = vpop.f32.mrb[74].mxu0  ;;  %v7795_v4 = vpop.f32.mrb[72].mxu1 }
 0x200   : > { %v7723_v5 = vpop.f32.mrb[75].mxu0  ;;  %v7796_v58 = vpop.f32.mrb[73].mxu1 }
 0x201   : > { %v3470_v35 = vadd.f32 %v7721_v0, %v9457_v57  ;;  %v7724_v43 = vadd.f32 %v7723_v5, %v7722_v3  ;;  %v7797_v6 = vadd.f32 %v7796_v58, %v7795_v4  ;;  %v7798_v37 = vpop.f32.mrb[74].mxu1 }
 0x202   : > { %v7799_v8 = vpop.f32.mrb[75].mxu1 }
 0x203   : > { %v3473_v7 = vadd.f32 %v7724_v43, %v9459_v59  ;;  %v7800_v46 = vadd.f32 %v7799_v8, %v7798_v37  ;;  %v9517_v9 = vadd.f32 %v7797_v6, %v3470_v35  ;;  %v4005_v43 = vld [vmem:[#allocation3 + $0xc] sm:$0xf] }
 0x205   : > { %v7725_v61 = vpop.f32.mrb[76].mxu0  ;;  %v9519_v12 = vadd.f32 %v7800_v46, %v3473_v7 }
 0x206   : > { %v7726_v10 = vpop.f32.mrb[77].mxu0 }
 0x207   : > { %v7727_v19 = vadd.f32 %v7726_v10, %v7725_v61  ;;  %v7728_v2 = vpop.f32.mrb[78].mxu0  ;;  %v7801_v49 = vpop.f32.mrb[76].mxu1  ;;  %v3996_v10 = vld [vmem:[#allocation3] sm:$0xf] }
 0x208   : > { %v7729_v63 = vpop.f32.mrb[79].mxu0  ;;  %v7802_v11 = vpop.f32.mrb[77].mxu1 }
 0x209   : > { %v3478_v57 = vadd.f32 %v7727_v19, %v9463_v15  ;;  %v7730_v22 = vadd.f32 %v7729_v63, %v7728_v2  ;;  %v7803_v1 = vadd.f32 %v7802_v11, %v7801_v49  ;;  %v7804_v23 = vpop.f32.mrb[78].mxu1 }
 0x20a   : > { %v7805_v25 = vpop.f32.mrb[79].mxu1 }
 0x20b   : > { %v3481_v59 = vadd.f32 %v7730_v22, %v9465_v17  ;;  %v7806_v26 = vadd.f32 %v7805_v25, %v7804_v23  ;;  %v9523_v14 = vadd.f32 %v7803_v1, %v3478_v57 }
 0x20d   : > { %v8115_v30 = vpop.f32.mrb[80].mxu0  ;;  %v9526_v38 = vadd.f32 %v7806_v26, %v3481_v59  ;;  %v4002_v26 = vld [vmem:[#allocation3 + $0x8] sm:$0x1] }
 0x20e   : > { %v3640_v28 = vadd.f32 %v8115_v30, %v9475_v55  ;;  %v3631_v33 = vpop.f32.mrb[81].mxu0 }
 0x20f   : > { %v3632_v40 = vadd.f32 %v3631_v33, %v9469_v34  ;;  %v8116_v45 = vpop.f32.mrb[82].mxu0 }
 0x210   : > { %v3712_v15 = vmax.f32 %v3640_v28, 0.0  ;;  %v3643_v18 = vadd.f32 %v8116_v45, %v9477_v62  ;;  %v3634_v47 = vpop.f32.mrb[83].mxu0 }
 0x211   : > { %v3710_v24 = vmax.f32 %v3632_v40, 0.0  ;;  %v3635_v17 = vadd.f32 %v3634_v47, %v9471_v39 }
 0x212   : > { %v7421_v41 = vpack.c.bf16 %v3712_v15, %v3712_v15  ;;  %v3713_v20 = vmax.f32 %v3643_v18, 0.0 }
 0x213   : > { %v7419_v48 = vpack.c.bf16 %v3710_v24, %v3710_v24  ;;  %v3711_v55 = vmax.f32 %v3635_v17, 0.0 }
 0x214   : > { %v3811_v50 = vshrl.u32 %v7421_v41, 16  ;;  %v7422_v51 = vpack.c.bf16 %v3713_v20, %v3713_v20  ;;  %v3814_v34 = vshll.u32 %v7421_v41, 16 }
 0x215   : > { %v3794_v29 = vshrl.u32 %v7419_v48, 16  ;;  %v3797_v44 = vshll.u32 %v7419_v48, 16  ;;  %v7420_v56 = vpack.c.bf16 %v3711_v55, %v3711_v55  ;;  %v8119_v62 = vpop.f32.mrb[84].mxu0 }
 0x216   : > { %v3813_v0 = vrot.slane %v3811_v50, 7  ;;  %v3819_v3 = vshrl.u32 %v7422_v51, 16  ;;  %v3822_v4 = vshll.u32 %v7422_v51, 16  ;;  %v3656_v39 = vadd.f32 %v8119_v62, %v9487_v27  ;;  %v3647_v5 = vpop.f32.mrb[85].mxu0 }
 0x217   : > { %v3796_v58 = vrot.slane %v3794_v29, 7  ;;  %v3802_v6 = vshrl.u32 %v7420_v56, 16  ;;  %v3805_v37 = vshll.u32 %v7420_v56, 16  ;;  %v3648_v7 = vadd.f32 %v3647_v5, %v9481_v13  ;;  %v8120_v8 = vpop.f32.mrb[86].mxu0  ;;  %v4009_v13 = vld [vmem:[#allocation3 + $0x14] sm:$0x1] }
 0x218   : > { %v3816_v46 = vor.u32 %v3814_v34, %v3813_v0  ;;  %v3817_v61 = vrot.slane %v3813_v0, 4  ;;  %v3821_v19 = vrot.slane %v3819_v3, 7  ;;  %v3716_v2 = vmax.f32 %v3656_v39, 0.0  ;;  %v3650_v49 = vpop.f32.mrb[87].mxu0  ;;  %v4012_v39 = vld [vmem:[#allocation3 + $0x18] sm:$0xf] }
 0x219   : > { %v3799_v63 = vor.u32 %v3797_v44, %v3796_v58  ;;  %v3800_v57 = vrot.slane %v3796_v58, 4  ;;  %v3804_v11 = vrot.slane %v3802_v6, 7  ;;  %v3714_v1 = vmax.f32 %v3648_v7, 0.0  ;;  %v4019_v44 = vld [vmem:[#allocation3 + $0x24] sm:$0xf] }
 0x21a   : > { %v4006_v23 = vsel %vm9534_vm0, %v3816_v46, %v4005_v43  ;;  %v3824_v59 = vor.u32 %v3822_v4, %v3821_v19  ;;  %v3826_v25 = vrot.slane %v3821_v19, 4  ;;  %v7425_v30 = vpack.c.bf16 %v3716_v2, %v3716_v2 }
 0x21b   : > { %4007 = vst [vmem:[#allocation3 + $0xc] sm:$0xf] %v4006_v23  ;;  %v3997_v28 = vsel %vm9534_vm0, %v3799_v63, %v3996_v10  ;;  %v3807_v33 = vor.u32 %v3805_v37, %v3804_v11  ;;  %v3809_v40 = vrot.slane %v3804_v11, 4  ;;  %v7423_v45 = vpack.c.bf16 %v3714_v1, %v3714_v1 }
 0x21c   : > { %3998 = vst [vmem:[#allocation3] sm:$0xf] %v3997_v28  ;;  %v3825_v15 = vsel %vm9547_vm2, %v3817_v61, %v3824_v59  ;;  %v4010_v18 = vsel %vm9541_vm1, %v3826_v25, %v4009_v13  ;;  %v3845_v47 = vshrl.u32 %v7425_v30, 16  ;;  %v3848_v41 = vshll.u32 %v7425_v30, 16 }
 0x21d   : > { %4008 = vst [vmem:[#allocation3 + $0x10] sm:$0xf] %v3825_v15  ;;  %4011 = vst [vmem:[#allocation3 + $0x14] sm:$0x1] %v4010_v18  ;;  %v3808_v24 = vsel %vm9547_vm2, %v3800_v57, %v3807_v33  ;;  %v4003_v17 = vsel %vm9541_vm1, %v3809_v40, %v4002_v26  ;;  %v3828_v20 = vshrl.u32 %v7423_v45, 16  ;;  %v8123_v48 = vpop.f32.mrb[88].mxu0  ;;  %v3659_v50 = vadd.f32 %v8120_v8, %v9489_v36 }
 0x21e   : > { %3999 = vst [vmem:[#allocation3 + $0x4] sm:$0xf] %v3808_v24  ;;  %4004 = vst [vmem:[#allocation3 + $0x8] sm:$0x1] %v4003_v17  ;;  %v9563_v55 = vrot.slane %v3845_v47, 7  ;;  %v3651_v51 = vadd.f32 %v3650_v49, %v9483_v31  ;;  %v3672_v34 = vadd.f32 %v8123_v48, %v9499_v16  ;;  %v3663_v29 = vpop.f32.mrb[89].mxu0 }
 0x21f   : > { %v9568_v56 = vrot.slane %v3828_v20, 7  ;;  %v3831_v62 = vshll.u32 %v7423_v45, 16  ;;  %v3664_v0 = vadd.f32 %v3663_v29, %v9493_v53  ;;  %v8124_v3 = vpop.f32.mrb[90].mxu0  ;;  %v3717_v5 = vmax.f32 %v3659_v50, 0.0  ;;  %v4023_v26 = vld [vmem:[#allocation3 + $0x2c] sm:$0x1] }
 0x220   : > { %v3850_v4 = vor.u32 %v3848_v41, %v9563_v55  ;;  %v3715_v43 = vmax.f32 %v3651_v51, 0.0  ;;  %v3666_v58 = vpop.f32.mrb[91].mxu0  ;;  %v3851_v36 = vrot.slane %v9563_v55, 4  ;;  %v3720_v6 = vmax.f32 %v3672_v34, 0.0  ;;  %v4016_v47 = vld [vmem:[#allocation3 + $0x20] sm:$0x1] }
 0x221   : > { %v3833_v31 = vor.u32 %v3831_v62, %v9568_v56  ;;  %v3718_v16 = vmax.f32 %v3664_v0, 0.0  ;;  %v7426_v8 = vpack.c.bf16 %v3717_v5, %v3717_v5  ;;  %v3675_v61 = vadd.f32 %v8124_v3, %v9501_v21  ;;  %v4033_v29 = vld [vmem:[#allocation3 + $0x3c] sm:$0xf] }
 0x222   : > { %v4071_v37 = vld [vmem:[#allocation3 + $0xc] sm:$0x1]  ;;  %v4020_v53 = vsel %vm9534_vm0, %v3850_v4, %v4019_v44  ;;  %v7424_v46 = vpack.c.bf16 %v3715_v43, %v3715_v43  ;;  %v7429_v49 = vpack.c.bf16 %v3720_v6, %v3720_v6  ;;  %v3834_v11 = vrot.slane %v9568_v56, 4 }
 0x223   : > { %v4072_v10 = vsel %vm9541_vm1, 0, %v4071_v37  ;;  %v4068_v19 = vld [vmem:[#allocation3] sm:$0x1]  ;;  %4021 = vst [vmem:[#allocation3 + $0x24] sm:$0xf] %v4020_v53  ;;  %v4013_v2 = vsel %vm9534_vm0, %v3833_v31, %v4012_v39  ;;  %v7427_v63 = vpack.c.bf16 %v3718_v16, %v3718_v16  ;;  %v3853_v1 = vshrl.u32 %v7426_v8, 16 }
 0x224   : > { %4073 = vst [vmem:[#allocation3 + $0xc] sm:$0x1] %v4072_v10  ;;  %v4069_v57 = vsel %vm9541_vm1, 0, %v4068_v19  ;;  %v4102_v13 = vld [vmem:[#allocation3 + $0x14] sm:$0x1]  ;;  %v3836_v21 = vshrl.u32 %v7424_v46, 16  ;;  %v3667_v20 = vadd.f32 %v3666_v58, %v9495_v60 }
 0x225   : > { %4014 = vst [vmem:[#allocation3 + $0x18] sm:$0xf] %v4013_v2  ;;  %4070 = vst [vmem:[#allocation3] sm:$0x1] %v4069_v57  ;;  %v4103_v23 = vsel %vm9576_vm3, 0, %v4102_v13  ;;  %v3856_v25 = vshll.u32 %v7426_v8, 16 }
 0x226   : > { %v4099_v59 = vld [vmem:[#allocation3 + $0x8] sm:$0x1]  ;;  %v3839_v30 = vshll.u32 %v7424_v46, 16  ;;  %v3879_v28 = vshrl.u32 %v7429_v49, 16  ;;  %4104 = vst [vmem:[#allocation3 + $0x14] sm:$0x1] %v4103_v23 }
 0x227   : > { %v4100_v33 = vsel %vm9576_vm3, 0, %v4099_v59  ;;  %v3855_v40 = vrot.slane %v3853_v1, 7  ;;  %v3838_v45 = vrot.slane %v3836_v21, 7  ;;  %v3862_v15 = vshrl.u32 %v7427_v63, 16  ;;  %v8127_v18 = vpop.f32.mrb[92].mxu0 }
 0x228   : > { %4101 = vst [vmem:[#allocation3 + $0x8] sm:$0x1] %v4100_v33  ;;  %v9594_v24 = vrot.slane %v3879_v28, 7  ;;  %v3882_v17 = vshll.u32 %v7429_v49, 16  ;;  %v3721_v41 = vmax.f32 %v3675_v61, 0.0  ;;  %v3679_v48 = vpop.f32.mrb[93].mxu0  ;;  %v3688_v2 = vadd.f32 %v8127_v18, %v9511_v52 }
 0x229   : > { %v3858_v55 = vor.u32 %v3856_v25, %v3855_v40  ;;  %v3860_v50 = vrot.slane %v3855_v40, 4  ;;  %v3841_v51 = vor.u32 %v3839_v30, %v3838_v45  ;;  %v3843_v34 = vrot.slane %v3838_v45, 4  ;;  %v8128_v44 = vpop.f32.mrb[94].mxu0  ;;  %v4026_v31 = vld [vmem:[#allocation3 + $0x30] sm:$0xf] }
 0x22a   : > { %v3884_v56 = vor.u32 %v3882_v17, %v9594_v24  ;;  %v9598_v62 = vrot.slane %v3862_v15, 7  ;;  %v3865_v0 = vshll.u32 %v7427_v63, 16  ;;  %v7430_v3 = vpack.c.bf16 %v3721_v41, %v3721_v41  ;;  %v3682_v4 = vpop.f32.mrb[95].mxu0  ;;  %v4077_v39 = vld [vmem:[#allocation3 + $0x24] sm:$0x1] }
 0x22b   : > { %v3859_v5 = vsel %vm9547_vm2, %v3851_v36, %v3858_v55  ;;  %v4024_v60 = vsel %vm9541_vm1, %v3860_v50, %v4023_v26  ;;  %v3842_v43 = vsel %vm9547_vm2, %v3834_v11, %v3841_v51  ;;  %v4017_v58 = vsel %vm9541_vm1, %v3843_v34, %v4016_v47  ;;  %v4037_v59 = vld [vmem:[#allocation3 + $0x44] sm:$0x1]  ;;  %v4030_v15 = vld [vmem:[#allocation3 + $0x38] sm:$0x1] }
 0x22c   : > { %v4078_v6 = vsel %vm9541_vm1, 0, %v4077_v39  ;;  %v4074_v16 = vld [vmem:[#allocation3 + $0x18] sm:$0x1]  ;;  %4022 = vst [vmem:[#allocation3 + $0x28] sm:$0xf] %v3859_v5  ;;  %v3885_v36 = vrot.slane %v9594_v24, 4  ;;  %v4034_v37 = vsel %vm9534_vm0, %v3884_v56, %v4033_v29  ;;  %v3867_v53 = vor.u32 %v3865_v0, %v9598_v62 }
 0x22d   : > { %4025 = vst [vmem:[#allocation3 + $0x2c] sm:$0x1] %v4024_v60  ;;  %4015 = vst [vmem:[#allocation3 + $0x1c] sm:$0xf] %v3842_v43  ;;  %v4075_v8 = vsel %vm9541_vm1, 0, %v4074_v16  ;;  %v3887_v46 = vshrl.u32 %v7430_v3, 16  ;;  %v3680_v49 = vadd.f32 %v3679_v48, %v9505_v32  ;;  %v3691_v63 = vadd.f32 %v8128_v44, %v9513_v54 }
 0x22e   : > { %4018 = vst [vmem:[#allocation3 + $0x20] sm:$0x1] %v4017_v58  ;;  %4079 = vst [vmem:[#allocation3 + $0x24] sm:$0x1] %v4078_v6  ;;  %v3890_v61 = vshll.u32 %v7430_v3, 16  ;;  %v3719_v10 = vmax.f32 %v3667_v20, 0.0  ;;  %v4027_v19 = vsel %vm9534_vm0, %v3867_v53, %v4026_v31  ;;  %v3683_v1 = vadd.f32 %v3682_v4, %v9507_v42 }
 0x22f   : > { %4035 = vst [vmem:[#allocation3 + $0x3c] sm:$0xf] %v4034_v37  ;;  %4076 = vst [vmem:[#allocation3 + $0x18] sm:$0x1] %v4075_v8  ;;  %v8131_v57 = vpop.f32.mrb[96].mxu0  ;;  %v3889_v13 = vrot.slane %v3887_v46, 7 }
 0x230   : > { %4028 = vst [vmem:[#allocation3 + $0x30] sm:$0xf] %v4027_v19  ;;  %v7428_v11 = vpack.c.bf16 %v3719_v10, %v3719_v10  ;;  %v3704_v21 = vadd.f32 %v8131_v57, %v9523_v14  ;;  %v3695_v23 = vpop.f32.mrb[97].mxu0  ;;  %v3724_v25 = vmax.f32 %v3688_v2, 0.0  ;;  %v3722_v26 = vmax.f32 %v3680_v49, 0.0 }
 0x231   : > { %v3725_v30 = vmax.f32 %v3691_v63, 0.0  ;;  %v9624_v28 = vadd.f32 %v3695_v23, %v9517_v9  ;;  %v9626_v52 = vpop.f32.mrb[98].mxu0  ;;  %v3868_v32 = vrot.slane %v9598_v62, 4  ;;  %v3892_v54 = vor.u32 %v3890_v61, %v3889_v13  ;;  %v4047_v6 = vld [vmem:[#allocation3 + $0x54] sm:$0xf] }
 0x232   : > { %v3894_v33 = vrot.slane %v3889_v13, 4  ;;  %v3870_v40 = vshrl.u32 %v7428_v11, 16  ;;  %v9629_v45 = vpop.f32.mrb[99].mxu0  ;;  %v3873_v42 = vshll.u32 %v7428_v11, 16  ;;  %v7433_v14 = vpack.c.bf16 %v3724_v25, %v3724_v25  ;;  %v4040_v37 = vld [vmem:[#allocation3 + $0x48] sm:$0xf] }
 0x233   : > { %v7431_v18 = vpack.c.bf16 %v3722_v26, %v3722_v26  ;;  %v7434_v47 = vpack.c.bf16 %v3725_v30, %v3725_v30  ;;  %v3893_v9 = vsel %vm9547_vm2, %v3885_v36, %v3892_v54  ;;  %v3723_v48 = vmax.f32 %v3683_v1, 0.0  ;;  %v4051_v19 = vld [vmem:[#allocation3 + $0x5c] sm:$0x1]  ;;  %v4044_v54 = vld [vmem:[#allocation3 + $0x50] sm:$0x1] }
 0x234   : > { %v4108_v24 = vld [vmem:[#allocation3 + $0x2c] sm:$0x1]  ;;  %v4038_v41 = vsel %vm9541_vm1, %v3894_v33, %v4037_v59  ;;  %v3872_v20 = vrot.slane %v3870_v40, 7  ;;  %4036 = vst [vmem:[#allocation3 + $0x40] sm:$0xf] %v3893_v9  ;;  %v3913_v34 = vshrl.u32 %v7433_v14, 16 }
 0x235   : > { %v4105_v17 = vld [vmem:[#allocation3 + $0x20] sm:$0x1]  ;;  %v4109_v55 = vsel %vm9576_vm3, 0, %v4108_v24  ;;  %4039 = vst [vmem:[#allocation3 + $0x44] sm:$0x1] %v4038_v41  ;;  %v3728_v29 = vmax.f32 %v3704_v21, 0.0  ;;  %v7432_v46 = vpack.c.bf16 %v3723_v48, %v3723_v48 }
 0x236   : > { %v4106_v50 = vsel %vm9576_vm3, 0, %v4105_v17  ;;  %v4083_v51 = vld [vmem:[#allocation3 + $0x3c] sm:$0x1]  ;;  %4110 = vst [vmem:[#allocation3 + $0x2c] sm:$0x1] %v4109_v55  ;;  %v3875_v56 = vor.u32 %v3873_v42, %v3872_v20  ;;  %v3877_v62 = vrot.slane %v3872_v20, 4  ;;  %v3707_v42 = vadd.f32 %v9626_v52, %v9526_v38 }
 0x237   : > { %4107 = vst [vmem:[#allocation3 + $0x20] sm:$0x1] %v4106_v50  ;;  %v4084_v44 = vsel %vm9541_vm1, 0, %v4083_v51  ;;  %v3896_v0 = vshrl.u32 %v7431_v18, 16  ;;  %v4080_v3 = vld [vmem:[#allocation3 + $0x30] sm:$0x1]  ;;  %v7437_v2 = vpack.c.bf16 %v3728_v29, %v3728_v29 }
 0x238   : > { %4085 = vst [vmem:[#allocation3 + $0x3c] sm:$0x1] %v4084_v44  ;;  %v3915_v4 = vrot.slane %v3913_v34, 7  ;;  %v3916_v39 = vshll.u32 %v7433_v14, 16  ;;  %v3899_v5 = vshll.u32 %v7431_v18, 16  ;;  %v3921_v60 = vshrl.u32 %v7434_v47, 16 }
 0x239   : > { %v4081_v43 = vsel %vm9541_vm1, 0, %v4080_v3  ;;  %v3876_v58 = vsel %vm9547_vm2, %v3868_v32, %v3875_v56  ;;  %v4031_v31 = vsel %vm9541_vm1, %v3877_v62, %v4030_v15  ;;  %v3898_v16 = vrot.slane %v3896_v0, 7  ;;  %v4061_v24 = vld [vmem:[#allocation3 + $0x6c] sm:$0xf]  ;;  %v4054_v34 = vld [vmem:[#allocation3 + $0x60] sm:$0xf] }
 0x23a   : > { %4082 = vst [vmem:[#allocation3 + $0x30] sm:$0x1] %v4081_v43  ;;  %4029 = vst [vmem:[#allocation3 + $0x34] sm:$0xf] %v3876_v58  ;;  %v3918_v36 = vor.u32 %v3916_v39, %v3915_v4  ;;  %v3923_v53 = vrot.slane %v3921_v60, 7  ;;  %v3924_v8 = vshll.u32 %v7434_v47, 16  ;;  %v3699_v15 = vadd.f32 %v9629_v45, %v9519_v12 }
 0x23b   : > { %4032 = vst [vmem:[#allocation3 + $0x38] sm:$0x1] %v4031_v31  ;;  %v3919_v61 = vrot.slane %v3915_v4, 4  ;;  %v3901_v10 = vor.u32 %v3899_v5, %v3898_v16  ;;  %v3726_v49 = vmax.f32 %v9624_v28, 0.0  ;;  %v3904_v11 = vshrl.u32 %v7432_v46, 16 }
 0x23c   : > { %v4048_v63 = vsel %vm9534_vm0, %v3918_v36, %v4047_v6  ;;  %v3926_v57 = vor.u32 %v3924_v8, %v3923_v53  ;;  %v3928_v13 = vrot.slane %v3923_v53, 4  ;;  %v4114_v1 = vld [vmem:[#allocation3 + $0x44] sm:$0x1]  ;;  %v3907_v23 = vshll.u32 %v7432_v46, 16  ;;  %v4065_v6 = vld [vmem:[#allocation3 + $0x74] sm:$0x1] }
 0x23d   : > { %4049 = vst [vmem:[#allocation3 + $0x54] sm:$0xf] %v4048_v63  ;;  %v4041_v21 = vsel %vm9534_vm0, %v3901_v10, %v4040_v37  ;;  %v3947_v59 = vshrl.u32 %v7437_v2, 16  ;;  %v3950_v25 = vshll.u32 %v7437_v2, 16  ;;  %v4115_v26 = vsel %vm9576_vm3, 0, %v4114_v1 }
 0x23e   : > { %4042 = vst [vmem:[#allocation3 + $0x48] sm:$0xf] %v4041_v21  ;;  %v3927_v30 = vsel %vm9547_vm2, %v3919_v61, %v3926_v57  ;;  %v4052_v28 = vsel %vm9541_vm1, %v3928_v13, %v4051_v19  ;;  %v3906_v32 = vrot.slane %v3904_v11, 7  ;;  %4116 = vst [vmem:[#allocation3 + $0x44] sm:$0x1] %v4115_v26  ;;  %v7435_v40 = vpack.c.bf16 %v3726_v49, %v3726_v49 }
 0x23f   : > { %4050 = vst [vmem:[#allocation3 + $0x58] sm:$0xf] %v3927_v30  ;;  %4053 = vst [vmem:[#allocation3 + $0x5c] sm:$0x1] %v4052_v28  ;;  %v3949_v33 = vrot.slane %v3947_v59, 7  ;;  %v3902_v14 = vrot.slane %v3898_v16, 4 }
 0x240   : > { %v3909_v18 = vor.u32 %v3907_v23, %v3906_v32  ;;  %v3911_v47 = vrot.slane %v3906_v32, 4  ;;  %v3930_v41 = vshrl.u32 %v7435_v40, 16  ;;  %v3729_v38 = vmax.f32 %v3707_v42, 0.0  ;;  %v4058_v61 = vld [vmem:[#allocation3 + $0x68] sm:$0x1] }
 0x241   : > { %v3952_v9 = vor.u32 %v3950_v25, %v3949_v33  ;;  %v3933_v45 = vshll.u32 %v7435_v40, 16  ;;  %v3727_v50 = vmax.f32 %v3699_v15, 0.0  ;;  %v3953_v53 = vrot.slane %v3949_v33, 4 }
 0x242   : > { %v4111_v17 = vld [vmem:[#allocation3 + $0x38] sm:$0x1]  ;;  %v3910_v48 = vsel %vm9547_vm2, %v3902_v14, %v3909_v18  ;;  %v4045_v55 = vsel %vm9541_vm1, %v3911_v47, %v4044_v54  ;;  %v3932_v52 = vrot.slane %v3930_v41, 7  ;;  %v7438_v29 = vpack.c.bf16 %v3729_v38, %v3729_v38 }
 0x243   : > { %v4112_v20 = vsel %vm9576_vm3, 0, %v4111_v17  ;;  %4043 = vst [vmem:[#allocation3 + $0x4c] sm:$0xf] %v3910_v48  ;;  %4046 = vst [vmem:[#allocation3 + $0x50] sm:$0x1] %v4045_v55  ;;  %v4062_v12 = vsel %vm9534_vm0, %v3952_v9, %v4061_v24  ;;  %v7436_v0 = vpack.c.bf16 %v3727_v50, %v3727_v50  ;;  %v8663_v30 = vmov (!%p6728_p7), 0  }
 0x244   : > { %4113 = vst [vmem:[#allocation3 + $0x38] sm:$0x1] %v4112_v20  ;;  %v4089_v51 = vld [vmem:[#allocation3 + $0x54] sm:$0x1]  ;;  %4063 = vst [vmem:[#allocation3 + $0x6c] sm:$0xf] %v4062_v12  ;;  %v3935_v62 = vor.u32 %v3933_v45, %v3932_v52 }
 0x245   : > { %v4090_v44 = vsel %vm9541_vm1, 0, %v4089_v51  ;;  %v4086_v56 = vld [vmem:[#allocation3 + $0x48] sm:$0x1]  ;;  %v3955_v39 = vshrl.u32 %v7438_v29, 16  ;;  %v3938_v43 = vshrl.u32 %v7436_v0, 16  ;;  %v3958_v31 = vshll.u32 %v7438_v29, 16 }
 0x246   : > { %4091 = vst [vmem:[#allocation3 + $0x54] sm:$0x1] %v4090_v44  ;;  %v4087_v3 = vsel %vm9541_vm1, 0, %v4086_v56  ;;  %v4120_v4 = vld [vmem:[#allocation3 + $0x5c] sm:$0x1]  ;;  %v4055_v60 = vsel %vm9534_vm0, %v3935_v62, %v4054_v34  ;;  %v3941_v36 = vshll.u32 %v7436_v0, 16 }
 0x247   : > { %4088 = vst [vmem:[#allocation3 + $0x48] sm:$0x1] %v4087_v3  ;;  %v4121_v5 = vsel %vm9576_vm3, 0, %v4120_v4  ;;  %4056 = vst [vmem:[#allocation3 + $0x60] sm:$0xf] %v4055_v60  ;;  %v3957_v58 = vrot.slane %v3955_v39, 7 }
 0x248   : > { %4122 = vst [vmem:[#allocation3 + $0x5c] sm:$0x1] %v4121_v5  ;;  %v3940_v16 = vrot.slane %v3938_v43, 7  ;;  %v3936_v2 = vrot.slane %v3932_v52, 4  ;;  %4132 = vst [vmem:[#allocation3] sm:$0xf] (!%p6728_p7), %v8663_v30 }
 0x249   : > { %v3960_v8 = vor.u32 %v3958_v31, %v3957_v58  ;;  %v3962_v46 = vrot.slane %v3957_v58, 4  ;;  %4133 = vst [vmem:[#allocation3 + $0x4] sm:$0xf] (!%p6728_p7), %v8663_v30  ;;  %4134 = vst [vmem:[#allocation3 + $0x8] sm:$0x1] (!%p6728_p7), %v8663_v30 }
 0x24a   : > { %v4117_v37 = vld [vmem:[#allocation3 + $0x50] sm:$0x1]  ;;  %v3943_v35 = vor.u32 %v3941_v36, %v3940_v16  ;;  %v3945_v49 = vrot.slane %v3940_v16, 4 }
 0x24b   : > { %v4118_v10 = vsel %vm9576_vm3, 0, %v4117_v37  ;;  %v4095_v19 = vld [vmem:[#allocation3 + $0x6c] sm:$0x1]  ;;  %v3961_v57 = vsel %vm9547_vm2, %v3953_v53, %v3960_v8  ;;  %v4066_v13 = vsel %vm9541_vm1, %v3962_v46, %v4065_v6 }
 0x24c   : > { %4119 = vst [vmem:[#allocation3 + $0x50] sm:$0x1] %v4118_v10  ;;  %v4096_v63 = vsel %vm9541_vm1, 0, %v4095_v19  ;;  %4064 = vst [vmem:[#allocation3 + $0x70] sm:$0xf] %v3961_v57  ;;  %v3944_v11 = vsel %vm9547_vm2, %v3936_v2, %v3943_v35  ;;  %v4059_v1 = vsel %vm9541_vm1, %v3945_v49, %v4058_v61 }
 0x24d   : > { %4097 = vst [vmem:[#allocation3 + $0x6c] sm:$0x1] %v4096_v63  ;;  %4067 = vst [vmem:[#allocation3 + $0x74] sm:$0x1] %v4066_v13 }
 0x24e   : > { %4057 = vst [vmem:[#allocation3 + $0x64] sm:$0xf] %v3944_v11  ;;  %4060 = vst [vmem:[#allocation3 + $0x68] sm:$0x1] %v4059_v1  ;;  %v4092_v21 = vld [vmem:[#allocation3 + $0x60] sm:$0x1] }
 0x24f   : > { %v4093_v23 = vsel %vm9541_vm1, 0, %v4092_v21 }
 0x250   : > { %4094 = vst [vmem:[#allocation3 + $0x60] sm:$0x1] %v4093_v23 }
 0x251   : > { %4131 = sbr.rel (%p6728_p7) target bundleno = 600 (0x258), region = 48 }
 0x254   : > { %v4126_v59 = vld [vmem:[#allocation3 + $0x74] sm:$0x1] }
 0x255   : > { %v4127_v25 = vsel %vm9576_vm3, 0, %v4126_v59  ;;  %v4123_v26 = vld [vmem:[#allocation3 + $0x68] sm:$0x1] }
 0x256   : > { %4128 = vst [vmem:[#allocation3 + $0x74] sm:$0x1] %v4127_v25  ;;  %v4124_v22 = vsel %vm9576_vm3, 0, %v4123_v26 }
 0x257   : > { %4125 = vst [vmem:[#allocation3 + $0x68] sm:$0x1] %v4124_v22 }
 0x258 PF: > { %p7172_p8 = scmp.ne.s32.totalorder %s8644_s18, 1 }
 0x259   : > { %v8664_v27 = vmov (!%p7172_p8), 0  }
 0x25a   : > { %4138 = sbr.rel (%p7172_p8) target bundleno = 609 (0x261), region = 52  ;;  %4140 = vst [vmem:[#allocation3 + $0x6c] sm:$0xf] (!%p7172_p8), %v8664_v27  ;;  %4141 = vst [vmem:[#allocation3 + $0x70] sm:$0xf] (!%p7172_p8), %v8664_v27 }
 0x25b   : > { %4142 = vst [vmem:[#allocation3 + $0x74] sm:$0x1] (!%p7172_p8), %v8664_v27 }
 0x261 PF: > { %v8430_v7 = vld [vmem:[%s10126_s3 + $0x40] sm:$0xff]   ;;  %v8434_v33 = vld [vmem:[%s10126_s3 + $0x48] sm:$0xff]   ;;  %v8438_v14 = vld [vmem:[%s10126_s3 + $0x50] sm:$0xff]   ;;  %s7439_s27 = sshll.u32 %s8644_s18, 7 }
 0x262   : > { %v8431_v28 = vld [vmem:[%s10126_s3] sm:$0xff]   ;;  %7825 = vmatprep.subr.bf16.mxu1 %v8430_v7  ;;  %v8435_v40 = vld [vmem:[%s10126_s3 + $0x8] sm:$0xff]   ;;  %v8439_v18 = vld [vmem:[%s10126_s3 + $0x10] sm:$0xff]   ;;  %s10061_s28 = scalar_lea.vmem %s8731_s30, %s7439_s27 }
 0x263   : > { %v8432_v32 = vld [vmem:[%s10126_s3 + $0xc0] sm:$0xff]   ;;  %7826 = vmatpush3.bf16.msra.mxu1 %v8431_v28  ;;  %v8436_v42 = vld [vmem:[%s10126_s3 + $0xc8] sm:$0xff]   ;;  %v8440_v47 = vld [vmem:[%s10126_s3 + $0xd0] sm:$0xff]  }
 0x264   : > { %v8433_v54 = vld [vmem:[%s10126_s3 + $0x80] sm:$0xff]   ;;  %7889 = vmatprep.subr.bf16.mxu0 %v8432_v32  ;;  %7827 = vmatprep.subr.bf16.mxu1 %v8434_v33  ;;  %v8437_v15 = vld [vmem:[%s10126_s3 + $0x88] sm:$0xff]   ;;  %v8441_v24 = vld [vmem:[%s10126_s3 + $0x90] sm:$0xff]  }
 0x265   : > { %7890 = vmatpush3.bf16.msra.mxu0 %v8433_v54  ;;  %v8442_v17 = vld [vmem:[%s10126_s3 + $0x58] sm:$0xff]   ;;  %v8446_v48 = vld [vmem:[%s10126_s3 + $0x60] sm:$0xff]   ;;  %v8450_v52 = vld [vmem:[%s10126_s3 + $0x68] sm:$0xff]  }
 0x266   : > { %7891 = vmatprep.subr.bf16.mxu0 %v8436_v42  ;;  %v8443_v9 = vld [vmem:[%s10126_s3 + $0x18] sm:$0xff]   ;;  %v8447_v55 = vld [vmem:[%s10126_s3 + $0x20] sm:$0xff]   ;;  %v8451_v45 = vld [vmem:[%s10126_s3 + $0x28] sm:$0xff]  }
 0x267   : > { %7828 = vmatpush3.bf16.msra.mxu1 %v8435_v40  ;;  %v8444_v41 = vld [vmem:[%s10126_s3 + $0xd8] sm:$0xff]   ;;  %v8448_v38 = vld [vmem:[%s10126_s3 + $0xe0] sm:$0xff]   ;;  %v8452_v50 = vld [vmem:[%s10126_s3 + $0xe8] sm:$0xff]  }
 0x268   : > { %7829 = vmatprep.subr.bf16.mxu1 %v8438_v14  ;;  %v8445_v20 = vld [vmem:[%s10126_s3 + $0x98] sm:$0xff]   ;;  %v8449_v12 = vld [vmem:[%s10126_s3 + $0xa0] sm:$0xff]   ;;  %v8453_v51 = vld [vmem:[%s10126_s3 + $0xa8] sm:$0xff]  }
 0x269   : > { %7892 = vmatpush3.bf16.msra.mxu0 %v8437_v15  ;;  %v8454_v34 = vld [vmem:[%s10126_s3 + $0x70] sm:$0xff]   ;;  %v8458_v62 = vld [vmem:[%s10126_s3 + $0x78] sm:$0xff]   ;;  %v8465_v6 = vld [vmem:[%s10126_s3 + $0x140] sm:$0xff]  }
 0x26a   : > { %7893 = vmatprep.subr.bf16.mxu0 %v8440_v47  ;;  %v8455_v29 = vld [vmem:[%s10126_s3 + $0x30] sm:$0xff]   ;;  %v8459_v0 = vld [vmem:[%s10126_s3 + $0x38] sm:$0xff]   ;;  %v8467_v8 = vld [vmem:[%s10126_s3 + $0x100] sm:$0xff]  }
 0x26b   : > { %7830 = vmatpush3.bf16.msra.mxu1 %v8439_v18  ;;  %v8456_v44 = vld [vmem:[%s10126_s3 + $0xf0] sm:$0xff]   ;;  %v8460_v3 = vld [vmem:[%s10126_s3 + $0xf8] sm:$0xff]   ;;  %v8471_v35 = vld [vmem:[#allocation3 + $0x14] ss:$0 sps:$4 sm:$0x11]  }
 0x26c   : > { %7831 = vmatprep.subr.bf16.mxu1 %v8442_v17  ;;  %v8457_v56 = vld [vmem:[%s10126_s3 + $0xb0] sm:$0xff]   ;;  %v8462_v39 = vld [vmem:[#allocation3 + $0x8] ss:$0 sps:$4 sm:$0x11]   ;;  %v8466_v37 = vld [vmem:[#allocation3 + $0xc] sm:$0xff]   ;;  %v4323_v11 = vshll.u32 %v8471_v35, 16 }
 0x26d   : > { %7894 = vmatpush3.bf16.msra.mxu0 %v8441_v24  ;;  %v8461_v4 = vld [vmem:[#allocation3] sm:$0xff]   ;;  %v8463_v5 = vld [vmem:[%s10126_s3 + $0xb8] sm:$0xff]   ;;  %v4311_v58 = vshll.u32 %v8462_v39, 16  ;;  %6129 = vmatprep.mubr.bf16.mxu0 %v8466_v37  ;;  %v8473_v1 = vld [vmem:[%s10126_s3 + $0x148] sm:$0xff]  }
 0x26e   : > { %7895 = vmatprep.subr.bf16.mxu0 %v8444_v41  ;;  %v4304_v60 = vshrl.u32 %v8461_v4, 16  ;;  %v4306_v43 = vshll.u32 %v8461_v4, 16  ;;  %v8464_v31 = vld [vmem:[#allocation3] sm:$0xff]   ;;  %v8469_v10 = vld [vmem:[#allocation3 + $0x8] ss:$0 sps:$4 sm:$0x11]  }
 0x26f   : > { %7832 = vmatpush3.bf16.msra.mxu1 %v8443_v9  ;;  %v4313_v36 = vrot.slane %v4311_v58, 1  ;;  %v8468_v46 = vld [vmem:[#allocation3] sm:$0xfe]   ;;  %v8470_v19 = vld [vmem:[#allocation3 + $0xc] sm:$0xff]   ;;  %v4504_v49 = vrot.slane %v8469_v10, 1  ;;  %v8474_v59 = vld [vmem:[#allocation3 + $0x18] sm:$0xff]  }
 0x270   : > { %7833 = vmatprep.subr.bf16.mxu1 %v8446_v48  ;;  %v4308_v16 = vrot.slane %v4306_v43, 1  ;;  %v4503_v2 = vrot.slane %v8468_v46, 1  ;;  %v4316_v63 = vshrl.u32 %v8470_v19, 16  ;;  %v4318_v57 = vshll.u32 %v8470_v19, 16  ;;  %v8472_v13 = vld [vmem:[#allocation3 + $0xc] sm:$0xff]   ;;  %v8475_v26 = vld [vmem:[%s10126_s3 + $0x108] sm:$0xff]  }
 0x271   : > { %7896 = vmatpush3.bf16.msra.mxu0 %v8445_v20  ;;  %v4325_v25 = vrot.slane %v4323_v11, 1  ;;  %v8476_v30 = vld [vmem:[#allocation3 + $0xc] sm:$0xfe]   ;;  %v8477_v7 = vld [vmem:[#allocation3 + $0x14] ss:$0 sps:$4 sm:$0x11]  }
 0x272   : > { %7897 = vmatprep.subr.bf16.mxu0 %v8448_v38  ;;  %v4309_v53 = vor.u32 %v4308_v16, %v4304_v60  ;;  %v4505_v21 = vsel %vm1413_vm10, %v4503_v2, %v4504_v49  ;;  %v4320_v23 = vrot.slane %v4318_v57, 1  ;;  %v8478_v28 = vld [vmem:[#allocation3 + $0x18] sm:$0xff]   ;;  %v4506_v32 = vrot.slane %v8476_v30, 1  ;;  %v8479_v54 = vld [vmem:[#allocation3 + $0x20] ss:$0 sps:$4 sm:$0x11]  }
 0x273   : > { %7834 = vmatpush3.bf16.msra.mxu1 %v8447_v55  ;;  %v4507_v33 = vrot.slane %v8477_v7, 1  ;;  %v4328_v40 = vshrl.u32 %v8478_v28, 16  ;;  %v4330_v42 = vshll.u32 %v8478_v28, 16  ;;  %v8480_v15 = vld [vmem:[#allocation3 + $0x18] sm:$0xff]   ;;  %v4335_v14 = vshll.u32 %v8479_v54, 16  ;;  %v8481_v18 = vld [vmem:[%s10126_s3 + $0x150] sm:$0xff]  }
 0x274   : > { %7835 = vmatprep.subr.bf16.mxu1 %v8450_v52  ;;  %v4314_v61 = vsel %vm1162_vm9, %v4309_v53, %v4313_v36  ;;  %v4321_v22 = vor.u32 %v4320_v23, %v4316_v63  ;;  %v8482_v17 = vld [vmem:[#allocation3 + $0x24] sm:$0xff]   ;;  %v8484_v48 = vld [vmem:[#allocation3 + $0x18] sm:$0xfe]   ;;  %v8485_v38 = vld [vmem:[#allocation3 + $0x20] ss:$0 sps:$4 sm:$0x11]  }
 0x275   : > { %7898 = vmatpush3.bf16.msra.mxu0 %v8449_v12  ;;  %6032 = vmatprep.mubr.bf16.mxu1 %v4314_v61  ;;  %v4508_v47 = vsel %vm1413_vm10, %v4506_v32, %v4507_v33  ;;  %v4332_v24 = vrot.slane %v4330_v42, 1  ;;  %v4337_v9 = vrot.slane %v4335_v14, 1  ;;  %v8483_v41 = vld [vmem:[%s10126_s3 + $0x110] sm:$0xff]   ;;  %v4509_v52 = vrot.slane %v8484_v48, 1  ;;  %v8491_v39 = vld [vmem:[%s10126_s3 + $0x118] sm:$0xff]   ;;  %v8495_v16 = vld [vmem:[%s10126_s3 + $0x180] sm:$0xff]  }
 0x276   : > { %7899 = vmatprep.subr.bf16.mxu0 %v8452_v50  ;;  %v4326_v27 = vsel %vm1162_vm9, %v4321_v22, %v4325_v25  ;;  %v8486_v12 = vld [vmem:[#allocation3 + $0x24] sm:$0xff]   ;;  %v4510_v50 = vrot.slane %v8485_v38, 1  ;;  %v8493_v58 = vld [vmem:[#allocation3 + $0x2c] ss:$0 sps:$4 sm:$0x11]   ;;  %v8496_v37 = vld [vmem:[#allocation3 + $0x30] sm:$0xff]  }
 0x277   : > { %7836 = vmatpush3.bf16.msra.mxu1 %v8451_v45  ;;  %v4333_v20 = vor.u32 %v4332_v24, %v4328_v40  ;;  %v8487_v45 = vld [vmem:[#allocation3 + $0x2c] ss:$0 sps:$4 sm:$0x11]   ;;  %v8492_v60 = vld [vmem:[#allocation3 + $0x24] sm:$0xfe]   ;;  %v4513_v36 = vrot.slane %v8493_v58, 1 }
 0x278   : > { %7837 = vmatprep.subr.bf16.mxu1 %v8454_v34  ;;  %v4342_v34 = vshll.u32 %v8486_v12, 16  ;;  %v8497_v53 = vld [vmem:[#allocation3 + $0x38] ss:$0 sps:$4 sm:$0x11]   ;;  %v4352_v61 = vshrl.u32 %v8496_v37, 16  ;;  %v4354_v10 = vshll.u32 %v8496_v37, 16 }
 0x279   : > { %7900 = vmatpush3.bf16.msra.mxu0 %v8453_v51  ;;  %v4338_v55 = vsel %vm1162_vm9, %v4333_v20, %v4337_v9  ;;  %v4340_v51 = vshrl.u32 %v8486_v12, 16  ;;  %v4359_v19 = vshll.u32 %v8497_v53, 16  ;;  %v8499_v2 = vld [vmem:[%s10126_s3 + $0x160] sm:$0xff]   ;;  %v8500_v49 = vld [vmem:[#allocation3 + $0x3c] sm:$0xff]   ;;  %v8510_v42 = vld [vmem:[#allocation3 + $0x48] sm:$0xff]  }
 0x27a   : > { %7901 = vmatprep.subr.bf16.mxu0 %v8456_v44  ;;  %v4347_v44 = vshll.u32 %v8487_v45, 16  ;;  %v4356_v35 = vrot.slane %v4354_v10, 1  ;;  %v8501_v57 = vld [vmem:[%s10126_s3 + $0x120] sm:$0xff]   ;;  %v8506_v22 = vld [vmem:[#allocation3 + $0x3c] sm:$0xff]   ;;  %v8517_v12 = vld [vmem:[#allocation3 + $0x48] sm:$0xff]  }
 0x27b   : > { %7838 = vmatpush3.bf16.msra.mxu1 %v8455_v29  ;;  %v8488_v29 = vld [vmem:[#allocation3 + $0x24] sm:$0xff]   ;;  %v4361_v63 = vrot.slane %v4359_v19, 1  ;;  %v8502_v11 = vld [vmem:[#allocation3 + $0x30] sm:$0xfe]   ;;  %v4364_v7 = vshrl.u32 %v8506_v22, 16  ;;  %v4366_v28 = vshll.u32 %v8506_v22, 16 }
 0x27c   : > { %7839 = vmatprep.subr.bf16.mxu1 %v8458_v62  ;;  %v4511_v62 = vsel %vm1413_vm10, %v4509_v52, %v4510_v50  ;;  %v4349_v4 = vrot.slane %v4347_v44, 1  ;;  %v8508_v32 = vld [vmem:[#allocation3 + $0x3c] sm:$0xff]   ;;  %v8518_v52 = vld [vmem:[#allocation3 + $0x50] ss:$0 sps:$4 sm:$0x11]   ;;  %v8519_v45 = vld [vmem:[%s10126_s3 + $0x198] sm:$0xff]  }
 0x27d   : > { %7902 = vmatpush3.bf16.msra.mxu0 %v8457_v56  ;;  %v8489_v56 = vld [vmem:[%s10126_s3 + $0x158] sm:$0xff]   ;;  %v4368_v54 = vrot.slane %v4366_v28, 1  ;;  %v8509_v40 = vld [vmem:[%s10126_s3 + $0x168] sm:$0xff]   ;;  %v8514_v9 = vld [vmem:[%s10126_s3 + $0x1d0] sm:$0xff]   ;;  %v4376_v50 = vshrl.u32 %v8517_v12, 16 }
 0x27e   : > { %7903 = vmatprep.subr.bf16.mxu0 %v8460_v3  ;;  %v8490_v3 = vld [vmem:[#allocation3 + $0x30] sm:$0xff]   ;;  %v8515_v20 = vld [vmem:[%s10126_s3 + $0x190] sm:$0xff]   ;;  %v8530_v53 = vld [vmem:[#allocation3 + $0x5c] ss:$0 sps:$4 sm:$0x11]  }
 0x27f   : > { %7840 = vmatpush3.bf16.msra.mxu1 %v8459_v0  ;;  %v4344_v0 = vrot.slane %v4342_v34, 1  ;;  %v4383_v34 = vshll.u32 %v8518_v52, 16  ;;  %v8529_v37 = vld [vmem:[#allocation3 + $0x54] sm:$0xff]   ;;  %v4395_v10 = vshll.u32 %v8530_v53, 16  ;;  %v8540_v22 = vld [vmem:[%s10126_s3 + $0x1f8] sm:$0xff]  }
 0x280   : > { %7953 = vmatprep.subr.bf16.mxu1 %v8465_v6  ;;  %v4512_v6 = vrot.slane %v8492_v60, 1  ;;  %v8525_v60 = vld [vmem:[#allocation3 + $0x50] ss:$0 sps:$4 sm:$0x11]   ;;  %v8532_v19 = vld [vmem:[#allocation3 + $0x54] sm:$0xff]   ;;  %v8543_v28 = vld [vmem:[%s10126_s3 + $0x1b8] sm:$0xff]  }
 0x281   : > { %7904 = vmatpush3.bf16.msra.mxu0 %v8463_v5  ;;  %v4345_v5 = vor.u32 %v4344_v0, %v4340_v51  ;;  %v4378_v51 = vshll.u32 %v8517_v12, 16  ;;  %v8522_v0 = vld [vmem:[#allocation3 + $0x54] sm:$0xff]  }
 0x282   : > { %6033 = vmatmul.mubr.bf16.vlgmr.msra.gmra.mrb[80].mxu1 %v8464_v31  ;;  %v8494_v31 = vld [vmem:[%s10126_s3 + $0x1c0] sm:$0xff]   ;;  %v4514_v46 = vsel %vm1413_vm10, %v4512_v6, %v4513_v36  ;;  %v4522_v6 = vrot.slane %v8525_v60, 1  ;;  %v8552_v12 = vld [vmem:[#allocation3 + $0x18] sm:$0xff]   ;;  %v8555_v60 = vld [vmem:[#allocation3 + $0x24] sm:$0xff]  }
 0x283   : > { %7954 = vmatpush3.bf16.msra.mxu1 %v8467_v8  ;;  %6040 = vmatprep.mubr.bf16.mxu1 %v4326_v27  ;;  %v4350_v43 = vsel %vm1162_vm9, %v4345_v5, %v4349_v4  ;;  %v8498_v8 = vld [vmem:[#allocation3 + $0x30] sm:$0xff]   ;;  %v8507_v27 = vld [vmem:[#allocation3 + $0x44] ss:$0 sps:$4 sm:$0x11]   ;;  %v4380_v44 = vrot.slane %v4378_v51, 1  ;;  %v5120_v53 = vshll.u32 %v8555_v60, 16 }
 0x284   : > { %6130 = vmatmul.mubr.bf16.vlgmr.msra.gmra.mrb[100].mxu0 %v4505_v21  ;;  %7955 = vmatprep.subr.bf16.mxu1 %v8473_v1  ;;  %v8503_v1 = vld [vmem:[#allocation3 + $0x38] ss:$0 sps:$4 sm:$0x11]   ;;  %v4371_v33 = vshll.u32 %v8507_v27, 16  ;;  %v8523_v4 = vld [vmem:[%s10126_s3 + $0x130] sm:$0xff]  }
 0x285   : > { %6137 = vmatprep.mubr.bf16.mxu0 %v8474_v59  ;;  %8017 = vmatprep.subr.bf16.mxu0 %v8494_v31  ;;  %v8504_v21 = vld [vmem:[%s10126_s3 + $0x1c8] sm:$0xff]   ;;  %v4515_v59 = vrot.slane %v8502_v11, 1  ;;  %v4516_v25 = vrot.slane %v8503_v1, 1  ;;  %v8527_v31 = vld [vmem:[%s10126_s3 + $0x1a0] sm:$0xff]  }
 0x286   : > { %8018 = vmatpush3.bf16.msra.mxu0 %v8495_v16  ;;  %v4373_v14 = vrot.slane %v4371_v33, 1  ;;  %v8528_v16 = vld [vmem:[%s10126_s3 + $0x1e8] sm:$0xff]   ;;  %v8541_v27 = vld [vmem:[#allocation3 + $0xc] sm:$0xfe]  }
 0x287   : > { %7956 = vmatpush3.bf16.msra.mxu1 %v8475_v26  ;;  %8019 = vmatprep.subr.bf16.mxu0 %v8504_v21  ;;  %v8505_v26 = vld [vmem:[%s10126_s3 + $0x188] sm:$0xff]   ;;  %v4517_v30 = vsel %vm1413_vm10, %v4515_v59, %v4516_v25  ;;  %v8539_v25 = vld [vmem:[%s10126_s3 + $0x1b0] sm:$0xff]   ;;  %v8544_v33 = vld [vmem:[#allocation3 + $0xc] sm:$0xff]  }
 0x288   : > { %7957 = vmatprep.subr.bf16.mxu1 %v8481_v18  ;;  %v8511_v18 = vld [vmem:[%s10126_s3 + $0x128] sm:$0xff]  }
 0x289   : > { %v8536_v11 = vld [vmem:[#allocation3 + $0x54] sm:$0xfe]   ;;  %v8537_v21 = vld [vmem:[#allocation3 + $0x5c] ss:$0 sps:$4 sm:$0x11]  }
 0x28a   : > { %6041 = vmatmul.mubr.bf16.gmra.mrb[84].mxu1 %v8472_v13  ;;  %v4357_v13 = vor.u32 %v4356_v35, %v4352_v61  ;;  %8020 = vmatpush3.bf16.msra.mxu0 %v8505_v26  ;;  %v4390_v61 = vshll.u32 %v8529_v37, 16  ;;  %v4524_v59 = vrot.slane %v8536_v11, 1  ;;  %v4525_v26 = vrot.slane %v8537_v21, 1  ;;  %v8561_v21 = vld [vmem:[#allocation3 + $0x2c] ss:$0 sps:$4 sm:$0x11]  }
 0x28b   : > { %7958 = vmatpush3.bf16.msra.mxu1 %v8483_v41  ;;  %6048 = vmatprep.mubr.bf16.mxu1 %v4338_v55  ;;  %v8516_v55 = vld [vmem:[%s10126_s3 + $0x1d8] sm:$0xff]  }
 0x28c   : > { %6138 = vmatmul.mubr.bf16.gmra.mrb[104].mxu0 %v4508_v47  ;;  %7959 = vmatprep.subr.bf16.mxu1 %v8489_v56  ;;  %v4362_v23 = vsel %vm1162_vm9, %v4357_v13, %v4361_v63  ;;  %v8512_v47 = vld [vmem:[#allocation3 + $0x3c] sm:$0xfe]   ;;  %v4385_v56 = vrot.slane %v4383_v34, 1  ;;  %v4392_v35 = vrot.slane %v4390_v61, 1  ;;  %v8535_v13 = vld [vmem:[%s10126_s3 + $0x138] sm:$0xff]  }
 0x28d   : > { %6145 = vmatprep.mubr.bf16.mxu0 %v8482_v17  ;;  %v8513_v17 = vld [vmem:[#allocation3 + $0x44] ss:$0 sps:$4 sm:$0x11]   ;;  %v4518_v41 = vrot.slane %v8512_v47, 1  ;;  %8021 = vmatprep.subr.bf16.mxu0 %v8514_v9  ;;  %v8549_v9 = vld [vmem:[#allocation3 + $0x18] sm:$0xff]  }
 0x28e   : > { %v4519_v48 = vrot.slane %v8513_v17, 1  ;;  %8022 = vmatpush3.bf16.msra.mxu0 %v8515_v20  ;;  %v8534_v63 = vld [vmem:[#allocation3 + $0x60] sm:$0xff]   ;;  %v8550_v34 = vld [vmem:[#allocation3 + $0x18] sm:$0xfe]  }
 0x28f   : > { %7960 = vmatpush3.bf16.msra.mxu1 %v8491_v39  ;;  %8023 = vmatprep.subr.bf16.mxu0 %v8516_v55  ;;  %v8524_v39 = vld [vmem:[#allocation3 + $0x48] sm:$0xfe]   ;;  %v8548_v17 = vld [vmem:[#allocation3 + $0x20] ss:$0 sps:$4 sm:$0x11]  }
 0x290   : > { %7961 = vmatprep.subr.bf16.mxu1 %v8499_v2  ;;  %v4520_v38 = vsel %vm1413_vm10, %v4518_v41, %v4519_v48  ;;  %v4521_v58 = vrot.slane %v8524_v39, 1  ;;  %v8533_v2 = vld [vmem:[%s10126_s3 + $0x178] sm:$0xff]  }
 0x292   : > { %6049 = vmatmul.mubr.bf16.gmra.mrb[88].mxu1 %v8480_v15  ;;  %v4369_v15 = vor.u32 %v4368_v54, %v4364_v7  ;;  %8024 = vmatpush3.bf16.msra.mxu0 %v8519_v45  ;;  %v4523_v36 = vsel %vm1413_vm10, %v4521_v58, %v4522_v6  ;;  %v8542_v7 = vld [vmem:[#allocation3 + $0x14] ss:$0 sps:$4 sm:$0x11]  }
 0x293   : > { %6056 = vmatprep.mubr.bf16.mxu1 %v4350_v43  ;;  %7962 = vmatpush3.bf16.msra.mxu1 %v8501_v57  ;;  %v8526_v43 = vld [vmem:[%s10126_s3 + $0x1e0] sm:$0xff]   ;;  %v4905_v54 = vrot.slane %v8542_v7, 1 }
 0x294   : > { %6146 = vmatmul.mubr.bf16.gmra.mrb[108].mxu0 %v4511_v62  ;;  %7963 = vmatprep.subr.bf16.mxu1 %v8509_v40  ;;  %v4374_v24 = vsel %vm1162_vm9, %v4369_v15, %v4373_v14  ;;  %v8521_v62 = vld [vmem:[%s10126_s3 + $0x170] sm:$0xff]   ;;  %v8545_v40 = vld [vmem:[#allocation3 + $0x14] ss:$0 sps:$4 sm:$0x11]   ;;  %v4705_v14 = vshrl.u32 %v8544_v33, 16 }
 0x295   : > { %6153 = vmatprep.mubr.bf16.mxu0 %v8490_v3  ;;  %v4381_v3 = vor.u32 %v4380_v44, %v4376_v50  ;;  %8025 = vmatprep.subr.bf16.mxu0 %v8526_v43  ;;  %v8546_v15 = vld [vmem:[%s10126_s3 + $0x200] sm:$0xff]   ;;  %v4712_v47 = vshll.u32 %v8545_v40, 16  ;;  %v8554_v50 = vld [vmem:[%s10126_s3 + $0x208] sm:$0xff]  }
 0x296   : > { %8026 = vmatpush3.bf16.msra.mxu0 %v8527_v31  ;;  %v8557_v31 = vld [vmem:[#allocation3 + $0x24] sm:$0xff]  }
 0x297   : > { %7964 = vmatpush3.bf16.msra.mxu1 %v8511_v18  ;;  %v4386_v5 = vsel %vm1162_vm9, %v4381_v3, %v4385_v56  ;;  %8027 = vmatprep.subr.bf16.mxu0 %v8528_v16  ;;  %v4707_v18 = vshll.u32 %v8544_v33, 16  ;;  %v4714_v20 = vrot.slane %v4712_v47, 1  ;;  %v8553_v3 = vld [vmem:[#allocation3 + $0x20] ss:$0 sps:$4 sm:$0x11]  }
 0x298   : > { %7965 = vmatprep.subr.bf16.mxu1 %v8521_v62  ;;  %v4907_v62 = vrot.slane %v8550_v34, 1  ;;  %v4724_v58 = vshll.u32 %v8553_v3, 16  ;;  %v8556_v16 = vld [vmem:[#allocation3 + $0x2c] ss:$0 sps:$4 sm:$0x11]   ;;  %v8576_v3 = vld [vmem:[#allocation3 + $0x3c] sm:$0xff]  }
 0x299   : > { %v4709_v41 = vrot.slane %v4707_v18, 1  ;;  %v5125_v61 = vshll.u32 %v8556_v16, 16 }
 0x29a   : > { %6057 = vmatmul.mubr.bf16.gmra.mrb[92].mxu1 %v8488_v29  ;;  %v8520_v29 = vld [vmem:[#allocation3 + $0x48] sm:$0xff]  }
 0x29b   : > { %6064 = vmatprep.mubr.bf16.mxu1 %v4362_v23  ;;  %7966 = vmatpush3.bf16.msra.mxu1 %v8523_v4  ;;  %v8538_v23 = vld [vmem:[%s10126_s3 + $0x1f0] sm:$0xff]   ;;  %v4710_v52 = vor.u32 %v4709_v41, %v4705_v14  ;;  %v4717_v4 = vshrl.u32 %v8552_v12, 16  ;;  %v8566_v14 = vld [vmem:[#allocation3 + $0x30] sm:$0xfe]  }
 0x29c   : > { %6154 = vmatmul.mubr.bf16.gmra.mrb[112].mxu0 %v4514_v46  ;;  %v4388_v46 = vshrl.u32 %v8529_v37, 16  ;;  %7967 = vmatprep.subr.bf16.mxu1 %v8533_v2  ;;  %v5118_v37 = vshrl.u32 %v8555_v60, 16 }
 0x29d   : > { %6161 = vmatprep.mubr.bf16.mxu0 %v8500_v49  ;;  %v4397_v49 = vrot.slane %v4395_v10, 1  ;;  %v4715_v44 = vsel %vm1162_vm9, %v4710_v52, %v4714_v20  ;;  %v8562_v10 = vld [vmem:[%s10126_s3 + $0x210] sm:$0xff]  }
 0x29e   : > { %v4393_v57 = vor.u32 %v4392_v35, %v4388_v46 }
 0x29f   : > { %7968 = vmatpush3.bf16.msra.mxu1 %v8535_v13 }
 0x2a0   : > { %v4398_v1 = vsel %vm1162_vm9, %v4393_v57, %v4397_v49  ;;  %8133 = vmatprep.subr.bf16.mxu1 %v8546_v15  ;;  %v5127_v49 = vrot.slane %v5125_v61, 1  ;;  %v8559_v57 = vld [vmem:[#allocation3 + $0x2c] ss:$0 sps:$4 sm:$0x11]  }
 0x2a2   : > { %6065 = vmatmul.mubr.bf16.gmra.mrb[96].mxu1 %v8498_v8  ;;  %v8531_v8 = vld [vmem:[%s10126_s3 + $0x1a8] sm:$0xff]  }
 0x2a3   : > { %6072 = vmatprep.mubr.bf16.mxu1 %v4374_v24  ;;  %8028 = vmatpush3.bf16.msra.mxu0 %v8531_v8  ;;  %v8547_v24 = vld [vmem:[#allocation3 + $0x18] sm:$0xff]   ;;  %v8560_v8 = vld [vmem:[#allocation3 + $0x24] sm:$0xff]  }
 0x2a4   : > { %6162 = vmatmul.mubr.bf16.gmra.mrb[116].mxu0 %v4517_v30  ;;  %8029 = vmatprep.subr.bf16.mxu0 %v8538_v23  ;;  %v4526_v30 = vsel %vm1413_vm10, %v4524_v59, %v4525_v26  ;;  %v5106_v48 = vshrl.u32 %v8547_v24, 16  ;;  %v5108_v55 = vshll.u32 %v8547_v24, 16  ;;  %v4729_v2 = vshrl.u32 %v8560_v8, 16  ;;  %v8567_v24 = vld [vmem:[#allocation3 + $0x38] ss:$0 sps:$4 sm:$0x11]  }
 0x2a5   : > { %6169 = vmatprep.mubr.bf16.mxu0 %v8510_v42  ;;  %v4731_v23 = vshll.u32 %v8560_v8, 16  ;;  %v8577_v8 = vld [vmem:[#allocation3 + $0x44] ss:$0 sps:$4 sm:$0x11]  }
 0x2a6   : > { %v5110_v45 = vrot.slane %v5108_v55, 1  ;;  %v8569_v55 = vld [vmem:[#allocation3 + $0x38] ss:$0 sps:$4 sm:$0x11]  }
 0x2a7   : > { %8030 = vmatpush3.bf16.msra.mxu0 %v8539_v25  ;;  %v4733_v26 = vrot.slane %v4731_v23, 1 }
 0x2a8   : > { %8031 = vmatprep.subr.bf16.mxu0 %v8540_v22  ;;  %v5111_v56 = vor.u32 %v5110_v45, %v5106_v48  ;;  %v4736_v22 = vshll.u32 %v8561_v21, 16  ;;  %v4914_v48 = vrot.slane %v8567_v24, 1  ;;  %v8586_v21 = vld [vmem:[%s10126_s3 + $0x228] sm:$0xff]  }
 0x2a9   : > { %v4734_v7 = vor.u32 %v4733_v26, %v4729_v2  ;;  %v4760_v2 = vshll.u32 %v8577_v8, 16  ;;  %v8582_v26 = vld [vmem:[#allocation3 + $0x48] sm:$0xfe]  }
 0x2aa   : > { %6073 = vmatmul.mubr.bf16.gmra.mrb[100].mxu1 %v8508_v32  ;;  %v4904_v32 = vrot.slane %v8541_v27, 1  ;;  %v8564_v27 = vld [vmem:[#allocation3 + $0x38] ss:$0 sps:$4 sm:$0x11]   ;;  %v8602_v8 = vld [vmem:[%s10126_s3 + $0x238] sm:$0xff]  }
 0x2ab   : > { %6080 = vmatprep.mubr.bf16.mxu1 %v4386_v5  ;;  %8032 = vmatpush3.bf16.msra.mxu0 %v8543_v28  ;;  %v4719_v5 = vshll.u32 %v8552_v12, 16  ;;  %v4738_v28 = vrot.slane %v4736_v22, 1  ;;  %v5137_v40 = vshll.u32 %v8564_v27, 16  ;;  %v8570_v12 = vld [vmem:[%s10126_s3 + $0x218] sm:$0xff]  }
 0x2ac   : > { %6170 = vmatmul.mubr.bf16.gmra.mrb[120].mxu0 %v4520_v38  ;;  %v4906_v42 = vsel %vm1413_vm10, %v4904_v32, %v4905_v54  ;;  %v5113_v38 = vshll.u32 %v8548_v17, 16  ;;  %v8565_v32 = vld [vmem:[#allocation3 + $0x30] sm:$0xff]  }
 0x2ad   : > { %6177 = vmatprep.mubr.bf16.mxu0 %v8522_v0  ;;  %v4721_v6 = vrot.slane %v4719_v5, 1  ;;  %v5139_v47 = vrot.slane %v5137_v40, 1  ;;  %v8583_v27 = vld [vmem:[#allocation3 + $0x50] ss:$0 sps:$4 sm:$0x11]  }
 0x2ae   : > { %v5115_v51 = vrot.slane %v5113_v38, 1 }
 0x2af   : > { %v4722_v46 = vor.u32 %v4721_v6, %v4717_v4  ;;  %v8575_v6 = vld [vmem:[#allocation3 + $0x44] ss:$0 sps:$4 sm:$0x11]  }
 0x2b0   : > { %v5116_v39 = vsel %vm1162_vm9, %v5111_v56, %v5115_v51  ;;  %v8571_v51 = vld [vmem:[#allocation3 + $0x3c] sm:$0xff]  }
 0x2b2   : > { %6081 = vmatmul.mubr.bf16.gmra.mrb[104].mxu1 %v8520_v29  ;;  %v8551_v29 = vld [vmem:[#allocation3 + $0x20] ss:$0 sps:$4 sm:$0x11]  }
 0x2b3   : > { %6088 = vmatprep.mubr.bf16.mxu1 %v4398_v1  ;;  %v4908_v0 = vrot.slane %v8551_v29, 1  ;;  %v4911_v1 = vrot.slane %v8559_v57, 1  ;;  %v8572_v29 = vld [vmem:[#allocation3 + $0x44] ss:$0 sps:$4 sm:$0x11]  }
 0x2b4   : > { %6178 = vmatmul.mubr.bf16.gmra.mrb[124].mxu0 %v4523_v36  ;;  %v4726_v36 = vrot.slane %v4724_v58, 1  ;;  %v5149_v4 = vshll.u32 %v8572_v29, 16  ;;  %v4753_v58 = vshrl.u32 %v8576_v3, 16 }
 0x2b5   : > { %6185 = vmatprep.mubr.bf16.mxu0 %v8534_v63  ;;  %v4909_v43 = vsel %vm1413_vm10, %v4907_v62, %v4908_v0  ;;  %v8558_v63 = vld [vmem:[#allocation3 + $0x24] sm:$0xfe]   ;;  %v5142_v62 = vshrl.u32 %v8571_v51, 16  ;;  %v5144_v0 = vshll.u32 %v8571_v51, 16 }
 0x2b6   : > { %v4727_v35 = vsel %vm1162_vm9, %v4722_v46, %v4726_v36  ;;  %v4910_v11 = vrot.slane %v8558_v63, 1  ;;  %v8580_v63 = vld [vmem:[#allocation3 + $0x50] ss:$0 sps:$4 sm:$0x11]  }
 0x2b7   : > { %v5146_v60 = vrot.slane %v5144_v0, 1  ;;  %v8593_v0 = vld [vmem:[#allocation3 + $0x5c] ss:$0 sps:$4 sm:$0x11]  }
 0x2b8   : > { %v4912_v25 = vsel %vm1413_vm10, %v4910_v11, %v4911_v1  ;;  %v8584_v11 = vld [vmem:[#allocation3 + $0x48] sm:$0xff]   ;;  %v4762_v1 = vrot.slane %v4760_v2, 1 }
 0x2b9   : > { %v5147_v16 = vor.u32 %v5146_v60, %v5142_v62  ;;  %v4767_v40 = vshll.u32 %v8584_v11, 16  ;;  %v4784_v60 = vshll.u32 %v8593_v0, 16 }
 0x2ba   : > { %6089 = vmatmul.mubr.bf16.gmra.mrb[108].mxu1 %v8532_v19  ;;  %v5122_v19 = vrot.slane %v5120_v53, 1  ;;  %v4917_v53 = vrot.slane %v8575_v6, 1 }
 0x2bb   : > { %6226 = vmatprep.mubr.bf16.mxu1 %v4906_v42  ;;  %v8568_v42 = vld [vmem:[#allocation3 + $0x30] sm:$0xff]   ;;  %v4786_v6 = vrot.slane %v4784_v60, 1 }
 0x2bc   : > { %6186 = vmatmul.mubr.bf16.gmra.mrb[128].mxu0 %v4526_v30  ;;  %v5123_v13 = vor.u32 %v5122_v19, %v5118_v37  ;;  %v8563_v30 = vld [vmem:[#allocation3 + $0x30] sm:$0xff]   ;;  %v4741_v17 = vshrl.u32 %v8568_v42, 16  ;;  %v4743_v41 = vshll.u32 %v8568_v42, 16  ;;  %v4755_v37 = vshll.u32 %v8576_v3, 16 }
 0x2bd   : > { %6323 = vmatprep.mubr.bf16.mxu0 %v5116_v39  ;;  %v5130_v54 = vshrl.u32 %v8563_v30, 16  ;;  %v5132_v33 = vshll.u32 %v8563_v30, 16  ;;  %v8578_v39 = vld [vmem:[%s10126_s3 + $0x220] sm:$0xff]  }
 0x2be   : > { %v5128_v59 = vsel %vm1162_vm9, %v5123_v13, %v5127_v49  ;;  %v4745_v38 = vrot.slane %v4743_v41, 1  ;;  %v4757_v61 = vrot.slane %v4755_v37, 1  ;;  %v8587_v42 = vld [vmem:[#allocation3 + $0x54] sm:$0xff]   ;;  %v8600_v37 = vld [vmem:[#allocation3 + $0x60] sm:$0xff]  }
 0x2bf   : > { %v5134_v18 = vrot.slane %v5132_v33, 1  ;;  %v4765_v33 = vshrl.u32 %v8584_v11, 16  ;;  %v5166_v24 = vshrl.u32 %v8587_v42, 16  ;;  %v5168_v41 = vshll.u32 %v8587_v42, 16  ;;  %v8603_v11 = vld [vmem:[#allocation3 + $0x6c] sm:$0xff]  }
 0x2c0   : > { %v4746_v34 = vor.u32 %v4745_v38, %v4741_v17  ;;  %v4758_v49 = vor.u32 %v4757_v61, %v4753_v58  ;;  %v8596_v58 = vld [vmem:[#allocation3 + $0x68] ss:$0 sps:$4 sm:$0x11]   ;;  %v8606_v42 = vld [vmem:[#allocation3 + $0x18] sm:$0xfe]  }
 0x2c1   : > { %v5135_v20 = vor.u32 %v5134_v18, %v5130_v54  ;;  %v4920_v54 = vrot.slane %v8583_v27, 1 }
 0x2c2   : > { %6227 = vmatmul.mubr.bf16.vlgmr.msra.gmra.mrb[112].mxu1 %v4715_v44  ;;  %v8573_v44 = vld [vmem:[#allocation3 + $0x3c] sm:$0xff]  }
 0x2c3   : > { %8134 = vmatpush3.bf16.msra.mxu1 %v8546_v15  ;;  %6234 = vmatprep.mubr.bf16.mxu1 %v4909_v43  ;;  %v4739_v15 = vsel %vm1162_vm9, %v4734_v7, %v4738_v28  ;;  %v5140_v52 = vsel %vm1162_vm9, %v5135_v20, %v5139_v47  ;;  %v8574_v43 = vld [vmem:[#allocation3 + $0x3c] sm:$0xfe]   ;;  %v4919_v7 = vrot.slane %v8582_v26, 1  ;;  %v8585_v28 = vld [vmem:[#allocation3 + $0x50] ss:$0 sps:$4 sm:$0x11]  }
 0x2c4   : > { %8135 = vmatprep.subr.bf16.mxu1 %v8554_v50  ;;  %6324 = vmatmul.mubr.bf16.vlgmr.msra.gmra.mrb[132].mxu0 %v8549_v9  ;;  %v4913_v9 = vrot.slane %v8566_v14, 1  ;;  %v4916_v36 = vrot.slane %v8574_v43, 1  ;;  %v8589_v14 = vld [vmem:[#allocation3 + $0x54] sm:$0xff]   ;;  %v4769_v47 = vrot.slane %v4767_v40, 1  ;;  %v8595_v43 = vld [vmem:[#allocation3 + $0x60] sm:$0xff]   ;;  %v5190_v26 = vshrl.u32 %v8603_v11, 16 }
 0x2c5   : > { %6331 = vmatprep.mubr.bf16.mxu0 %v5128_v59  ;;  %v5161_v59 = vshll.u32 %v8580_v63, 16  ;;  %v4921_v18 = vsel %vm1413_vm10, %v4919_v7, %v4920_v54  ;;  %v8592_v20 = vld [vmem:[#allocation3 + $0x54] sm:$0xff]  }
 0x2c6   : > { %v4915_v45 = vsel %vm1413_vm10, %v4913_v9, %v4914_v48  ;;  %v4918_v19 = vsel %vm1413_vm10, %v4916_v36, %v4917_v53  ;;  %v8588_v9 = vld [vmem:[#allocation3 + $0x5c] ss:$0 sps:$4 sm:$0x11]   ;;  %v4770_v48 = vor.u32 %v4769_v47, %v4765_v33  ;;  %v4779_v29 = vshll.u32 %v8592_v20, 16 }
 0x2c7   : > { %8136 = vmatpush3.bf16.msra.mxu1 %v8554_v50  ;;  %v4748_v50 = vshll.u32 %v8569_v55, 16  ;;  %v5163_v30 = vrot.slane %v5161_v59, 1  ;;  %v5170_v55 = vrot.slane %v5168_v41, 1  ;;  %v5173_v38 = vshll.u32 %v8588_v9, 16 }
 0x2c8   : > { %8137 = vmatprep.subr.bf16.mxu1 %v8562_v10  ;;  %v4781_v3 = vrot.slane %v4779_v29, 1  ;;  %v5180_v36 = vshll.u32 %v8595_v43, 16  ;;  %v5185_v53 = vshll.u32 %v8596_v58, 16  ;;  %v8604_v7 = vld [vmem:[#allocation3 + $0x74] ss:$0 sps:$4 sm:$0x11]  }
 0x2c9   : > { %v4750_v56 = vrot.slane %v4748_v50, 1  ;;  %v4777_v50 = vshrl.u32 %v8592_v20, 16  ;;  %v5171_v51 = vor.u32 %v5170_v55, %v5166_v24  ;;  %v5197_v54 = vshll.u32 %v8604_v7, 16  ;;  %v8608_v24 = vld [vmem:[#allocation3 + $0x24] sm:$0xfe]  }
 0x2ca   : > { %6235 = vmatmul.mubr.bf16.gmra.mrb[116].mxu1 %v4727_v35  ;;  %v8581_v35 = vld [vmem:[#allocation3 + $0x48] sm:$0xff]   ;;  %v5182_v61 = vrot.slane %v5180_v36, 1  ;;  %v5187_v2 = vrot.slane %v5185_v53, 1  ;;  %v5308_v20 = vrot.slane %v8608_v24, 1  ;;  %v8610_v55 = vld [vmem:[#allocation3 + $0x30] sm:$0xfe]  }
 0x2cb   : > { %8138 = vmatpush3.bf16.msra.mxu1 %v8562_v10  ;;  %6242 = vmatprep.mubr.bf16.mxu1 %v4912_v25  ;;  %v4751_v5 = vsel %vm1162_vm9, %v4746_v34, %v4750_v56  ;;  %v8579_v10 = vld [vmem:[#allocation3 + $0x48] sm:$0xff]   ;;  %v4763_v25 = vsel %vm1162_vm9, %v4758_v49, %v4762_v1  ;;  %v5175_v34 = vrot.slane %v5173_v38, 1  ;;  %v8611_v38 = vld [vmem:[#allocation3 + $0x38] ss:$0 sps:$4 sm:$0x11]  }
 0x2cc   : > { %6332 = vmatmul.mubr.bf16.gmra.mrb[136].mxu0 %v8557_v31  ;;  %8139 = vmatprep.subr.bf16.mxu1 %v8570_v12  ;;  %v5151_v31 = vrot.slane %v5149_v4, 1  ;;  %v5154_v57 = vshrl.u32 %v8579_v10, 16  ;;  %v5156_v13 = vshll.u32 %v8579_v10, 16  ;;  %v8598_v10 = vld [vmem:[#allocation3 + $0x60] sm:$0xfe]  }
 0x2cd   : > { %6339 = vmatprep.mubr.bf16.mxu0 %v5140_v52  ;;  %v8590_v52 = vld [vmem:[#allocation3 + $0x54] sm:$0xfe]   ;;  %v5176_v62 = vsel %vm1162_vm9, %v5171_v51, %v5175_v34  ;;  %v4925_v63 = vrot.slane %v8598_v10, 1  ;;  %v8601_v1 = vld [vmem:[#allocation3 + $0x68] ss:$0 sps:$4 sm:$0x11]  }
 0x2ce   : > { %v5152_v46 = vsel %vm1162_vm9, %v5147_v16, %v5151_v31  ;;  %v5158_v23 = vrot.slane %v5156_v13, 1  ;;  %v8597_v31 = vld [vmem:[#allocation3 + $0x60] sm:$0xff]   ;;  %v5178_v16 = vshrl.u32 %v8595_v43, 16  ;;  %v4791_v13 = vshll.u32 %v8600_v37, 16 }
 0x2cf   : > { %8140 = vmatpush3.bf16.msra.mxu1 %v8570_v12  ;;  %v8609_v9 = vld [vmem:[#allocation3 + $0x2c] ss:$0 sps:$4 sm:$0x11]   ;;  %v8613_v51 = vld [vmem:[#allocation3 + $0x44] ss:$0 sps:$4 sm:$0x11]  }
 0x2d0   : > { %8141 = vmatprep.subr.bf16.mxu1 %v8578_v39  ;;  %v5159_v22 = vor.u32 %v5158_v23, %v5154_v57  ;;  %v5183_v49 = vor.u32 %v5182_v61, %v5178_v16 }
 0x2d2   : > { %6243 = vmatmul.mubr.bf16.gmra.mrb[120].mxu1 %v4739_v15  ;;  %v4772_v15 = vshll.u32 %v8585_v28, 16  ;;  %v5188_v23 = vsel %vm1162_vm9, %v5183_v49, %v5187_v2 }
 0x2d3   : > { %6250 = vmatprep.mubr.bf16.mxu1 %v4915_v45  ;;  %8142 = vmatpush3.bf16.msra.mxu1 %v8578_v39  ;;  %v8591_v45 = vld [vmem:[#allocation3 + $0x5c] ss:$0 sps:$4 sm:$0x11]   ;;  %v8594_v39 = vld [vmem:[%s10126_s3 + $0x230] sm:$0xff]  }
 0x2d4   : > { %6340 = vmatmul.mubr.bf16.gmra.mrb[140].mxu0 %v8565_v32  ;;  %8143 = vmatprep.subr.bf16.mxu1 %v8586_v21  ;;  %v5164_v32 = vsel %vm1162_vm9, %v5159_v22, %v5163_v30  ;;  %v4774_v17 = vrot.slane %v4772_v15, 1  ;;  %v4923_v56 = vrot.slane %v8591_v45, 1  ;;  %v4796_v22 = vshll.u32 %v8601_v1, 16  ;;  %v8607_v15 = vld [vmem:[#allocation3 + $0x20] ss:$0 sps:$4 sm:$0x11]  }
 0x2d5   : > { %6347 = vmatprep.mubr.bf16.mxu0 %v5152_v46  ;;  %v5192_v30 = vshll.u32 %v8603_v11, 16  ;;  %v5306_v47 = vrot.slane %v8607_v15, 1  ;;  %v5312_v45 = vrot.slane %v8611_v38, 1 }
 0x2d6   : > { %v4775_v12 = vsel %vm1162_vm9, %v4770_v48, %v4774_v17  ;;  %v4798_v28 = vrot.slane %v4796_v22, 1  ;;  %v5309_v48 = vrot.slane %v8609_v9, 1 }
 0x2d7   : > { %8144 = vmatpush3.bf16.msra.mxu1 %v8586_v21  ;;  %v8605_v21 = vld [vmem:[#allocation3 + $0x6c] sm:$0xff]  }
 0x2d8   : > { %8145 = vmatprep.subr.bf16.mxu1 %v8594_v39 }
 0x2da   : > { %6251 = vmatmul.mubr.bf16.gmra.mrb[124].mxu1 %v4751_v5  ;;  %v4782_v5 = vor.u32 %v4781_v3, %v4777_v50  ;;  %v8612_v50 = vld [vmem:[#allocation3 + $0x3c] sm:$0xfe]  }
 0x2db   : > { %6258 = vmatprep.mubr.bf16.mxu1 %v4918_v19  ;;  %8146 = vmatpush3.bf16.msra.mxu1 %v8594_v39  ;;  %v8599_v19 = vld [vmem:[#allocation3 + $0x68] ss:$0 sps:$4 sm:$0x11]   ;;  %v5314_v29 = vrot.slane %v8612_v50, 1  ;;  %v8616_v39 = vld [vmem:[#allocation3 + $0x54] sm:$0xfe]  }
 0x2dc   : > { %6348 = vmatmul.mubr.bf16.gmra.mrb[144].mxu0 %v8573_v44  ;;  %v4922_v44 = vrot.slane %v8590_v52, 1  ;;  %v4787_v46 = vsel %vm1162_vm9, %v4782_v5, %v4786_v6  ;;  %8147 = vmatprep.subr.bf16.mxu1 %v8602_v8  ;;  %v4926_v57 = vrot.slane %v8599_v19, 1  ;;  %v5311_v52 = vrot.slane %v8610_v55, 1  ;;  %v8617_v5 = vld [vmem:[#allocation3 + $0x5c] ss:$0 sps:$4 sm:$0x11]  }
 0x2dd   : > { %6355 = vmatprep.mubr.bf16.mxu0 %v5164_v32  ;;  %v5194_v32 = vrot.slane %v5192_v30, 1  ;;  %v5320_v43 = vrot.slane %v8616_v39, 1  ;;  %v5321_v58 = vrot.slane %v8617_v5, 1  ;;  %v8619_v6 = vld [vmem:[#allocation3 + $0x68] ss:$0 sps:$4 sm:$0x11]  }
 0x2de   : > { %v4924_v4 = vsel %vm1413_vm10, %v4922_v44, %v4923_v56  ;;  %v4927_v59 = vsel %vm1413_vm10, %v4925_v63, %v4926_v57  ;;  %v5313_v34 = vsel %vm1413_vm10, %v5311_v52, %v5312_v45  ;;  %v8614_v44 = vld [vmem:[#allocation3 + $0x48] sm:$0xfe]   ;;  %v5315_v56 = vrot.slane %v8613_v51, 1 }
 0x2df   : > { %8148 = vmatpush3.bf16.msra.mxu1 %v8602_v8  ;;  %v5195_v40 = vor.u32 %v5194_v32, %v5190_v26  ;;  %v5317_v0 = vrot.slane %v8614_v44, 1  ;;  %v5322_v16 = vsel %vm1413_vm10, %v5320_v43, %v5321_v58  ;;  %v5324_v53 = vrot.slane %v8619_v6, 1  ;;  %v8621_v8 = vld [vmem:[#allocation3 + $0x74] ss:$0 sps:$4 sm:$0x11]  }
 0x2e0   : > { %v5316_v3 = vsel %vm1413_vm10, %v5314_v29, %v5315_v56  ;;  %v5327_v10 = vrot.slane %v8621_v8, 1 }
 0x2e2   : > { %6259 = vmatmul.mubr.bf16.gmra.mrb[128].mxu1 %v4763_v25  ;;  %v4793_v25 = vrot.slane %v4791_v13, 1 }
 0x2e3   : > { %6266 = vmatprep.mubr.bf16.mxu1 %v4921_v18  ;;  %v5305_v18 = vrot.slane %v8606_v42, 1 }
 0x2e4   : > { %6356 = vmatmul.mubr.bf16.gmra.mrb[148].mxu0 %v8581_v35  ;;  %v4789_v35 = vshrl.u32 %v8600_v37, 16  ;;  %v8620_v37 = vld [vmem:[#allocation3 + $0x6c] sm:$0xfe]  }
 0x2e5   : > { %6363 = vmatprep.mubr.bf16.mxu0 %v5176_v62  ;;  %v5307_v41 = vsel %vm1413_vm10, %v5305_v18, %v5306_v47  ;;  %v8615_v62 = vld [vmem:[#allocation3 + $0x50] ss:$0 sps:$4 sm:$0x11]  }
 0x2e6   : > { %v4794_v27 = vor.u32 %v4793_v25, %v4789_v35  ;;  %v9966_v35 = vld [vmem:[%s10127_s4] ss:$0 sm:$0xff] }
 0x2e8   : > { %v4799_v33 = vsel %vm1162_vm9, %v4794_v27, %v4798_v28 }
 0x2ea   : > { %6267 = vmatmul.mubr.bf16.gmra.mrb[132].mxu1 %v4775_v12  ;;  %v5310_v12 = vsel %vm1413_vm10, %v5308_v20, %v5309_v48 }
 0x2eb   : > { %6274 = vmatprep.mubr.bf16.mxu1 %v4924_v4  ;;  %v5318_v4 = vrot.slane %v8615_v62, 1 }
 0x2ec   : > { %6364 = vmatmul.mubr.bf16.gmra.mrb[152].mxu0 %v8589_v14  ;;  %v5199_v14 = vrot.slane %v5197_v54, 1 }
 0x2ed   : > { %6371 = vmatprep.mubr.bf16.mxu0 %v5188_v23  ;;  %v5319_v60 = vsel %vm1413_vm10, %v5317_v0, %v5318_v4 }
 0x2ee   : > { %v5200_v17 = vsel %vm1162_vm9, %v5195_v40, %v5199_v14 }
 0x2f2   : > { %6275 = vmatmul.mubr.bf16.gmra.mrb[136].mxu1 %v4787_v46  ;;  %v5326_v46 = vrot.slane %v8620_v37, 1 }
 0x2f3   : > { %6282 = vmatprep.mubr.bf16.mxu1 %v4927_v59 }
 0x2f4   : > { %6372 = vmatmul.mubr.bf16.gmra.mrb[156].mxu0 %v8597_v31  ;;  %v8618_v31 = vld [vmem:[#allocation3 + $0x60] sm:$0xfe]   ;;  %v5328_v19 = vsel %vm1413_vm10, %v5326_v46, %v5327_v10 }
 0x2f5   : > { %6379 = vmatprep.mubr.bf16.mxu0 %v5200_v17  ;;  %v5323_v36 = vrot.slane %v8618_v31, 1 }
 0x2f7   : > { %v5325_v61 = vsel %vm1413_vm10, %v5323_v36, %v5324_v53 }
 0x2fa   : > { %6283 = vmatmul.mubr.bf16.gmra.mrb[140].mxu1 %v4799_v33 }
 0x2fb   : > { %8149 = vmatprep.mubr.bf16.mxu1 %v5307_v41 }
 0x2fc   : > { %6380 = vmatmul.mubr.bf16.gmra.mrb[160].mxu0 %v8605_v21 }
 0x302   : > { %8150 = vmatmul.mubr.bf16.vlgmr.msra.gmra.mrb[144].mxu1 %v5310_v12 }
 0x303   : > { %8153 = vmatprep.mubr.bf16.mxu1 %v5313_v34 }
 0x30a   : > { %8154 = vmatmul.mubr.bf16.gmra.mrb[148].mxu1 %v5316_v3 }
 0x30b   : > { %8157 = vmatprep.mubr.bf16.mxu1 %v5319_v60 }
 0x312   : > { %8158 = vmatmul.mubr.bf16.gmra.mrb[152].mxu1 %v5322_v16 }
 0x313   : > { %8161 = vmatprep.mubr.bf16.mxu1 %v5325_v61 }
 0x31a   : > { %8162 = vmatmul.mubr.bf16.gmra.mrb[156].mxu1 %v5328_v19 }
 0x355   : > { %v7841_v2 = vpop.f32.mrb[80].mxu1 }
 0x356   : > { %v7842_v49 = vpop.f32.mrb[81].mxu1 }
 0x357   : > { %v7843_v63 = vadd.f32 %v7842_v49, %v7841_v2  ;;  %v7844_v57 = vpop.f32.mrb[82].mxu1  ;;  %v7905_v13 = vpop.f32.mrb[100].mxu0 }
 0x358   : > { %v7845_v11 = vpop.f32.mrb[83].mxu1  ;;  %v7906_v23 = vpop.f32.mrb[101].mxu0 }
 0x359   : > { %v6035_v1 = vadd.f32 %v7843_v63, %v9966_v35  ;;  %v7846_v21 = vadd.f32 %v7845_v11, %v7844_v57  ;;  %v7907_v59 = vadd.f32 %v7906_v23, %v7905_v13  ;;  %v7908_v25 = vpop.f32.mrb[102].mxu0 }
 0x35a   : > { %v7909_v22 = vpop.f32.mrb[103].mxu0 }
 0x35b   : > { %v6038_v26 = vadd.f32 %v7846_v21, %v9966_v35  ;;  %v9970_v30 = vadd.f32 %v7907_v59, %v6035_v1  ;;  %v7910_v27 = vadd.f32 %v7909_v22, %v7908_v25 }
 0x35d   : > { %v7847_v7 = vpop.f32.mrb[84].mxu1  ;;  %v9972_v28 = vadd.f32 %v7910_v27, %v6038_v26 }
 0x35e   : > { %v7848_v32 = vpop.f32.mrb[85].mxu1 }
 0x35f   : > { %v7849_v54 = vadd.f32 %v7848_v32, %v7847_v7  ;;  %v7850_v33 = vpop.f32.mrb[86].mxu1  ;;  %v7911_v40 = vpop.f32.mrb[104].mxu0 }
 0x360   : > { %v7851_v42 = vpop.f32.mrb[87].mxu1  ;;  %v7912_v18 = vpop.f32.mrb[105].mxu0 }
 0x361   : > { %v6043_v15 = vadd.f32 %v7849_v54, %v9966_v35  ;;  %v7852_v14 = vadd.f32 %v7851_v42, %v7850_v33  ;;  %v7913_v47 = vadd.f32 %v7912_v18, %v7911_v40  ;;  %v7914_v24 = vpop.f32.mrb[106].mxu0 }
 0x362   : > { %v7915_v9 = vpop.f32.mrb[107].mxu0 }
 0x363   : > { %v6046_v17 = vadd.f32 %v7852_v14, %v9966_v35  ;;  %v9976_v41 = vadd.f32 %v7913_v47, %v6043_v15  ;;  %v7916_v20 = vadd.f32 %v7915_v9, %v7914_v24 }
 0x365   : > { %v7853_v48 = vpop.f32.mrb[88].mxu1  ;;  %v9978_v55 = vadd.f32 %v7916_v20, %v6046_v17 }
 0x366   : > { %v7854_v38 = vpop.f32.mrb[89].mxu1 }
 0x367   : > { %v7855_v12 = vadd.f32 %v7854_v38, %v7853_v48  ;;  %v7856_v52 = vpop.f32.mrb[90].mxu1  ;;  %v7917_v45 = vpop.f32.mrb[108].mxu0 }
 0x368   : > { %v7857_v50 = vpop.f32.mrb[91].mxu1  ;;  %v7918_v29 = vpop.f32.mrb[109].mxu0 }
 0x369   : > { %v6051_v51 = vadd.f32 %v7855_v12, %v9966_v35  ;;  %v7858_v34 = vadd.f32 %v7857_v50, %v7856_v52  ;;  %v7919_v44 = vadd.f32 %v7918_v29, %v7917_v45  ;;  %v7920_v56 = vpop.f32.mrb[110].mxu0 }
 0x36a   : > { %v7921_v0 = vpop.f32.mrb[111].mxu0 }
 0x36b   : > { %v6054_v62 = vadd.f32 %v7858_v34, %v9966_v35  ;;  %v9982_v3 = vadd.f32 %v7919_v44, %v6051_v51  ;;  %v7922_v4 = vadd.f32 %v7921_v0, %v7920_v56 }
 0x36d   : > { %v7859_v39 = vpop.f32.mrb[92].mxu1  ;;  %v9984_v5 = vadd.f32 %v7922_v4, %v6054_v62 }
 0x36e   : > { %v7860_v60 = vpop.f32.mrb[93].mxu1 }
 0x36f   : > { %v7861_v43 = vadd.f32 %v7860_v60, %v7859_v39  ;;  %v7862_v58 = vpop.f32.mrb[94].mxu1  ;;  %v7923_v31 = vpop.f32.mrb[112].mxu0 }
 0x370   : > { %v7863_v6 = vpop.f32.mrb[95].mxu1  ;;  %v7924_v37 = vpop.f32.mrb[113].mxu0 }
 0x371   : > { %v6059_v16 = vadd.f32 %v7861_v43, %v9966_v35  ;;  %v7864_v36 = vadd.f32 %v7863_v6, %v7862_v58  ;;  %v7925_v53 = vadd.f32 %v7924_v37, %v7923_v31  ;;  %v7926_v8 = vpop.f32.mrb[114].mxu0 }
 0x372   : > { %v7927_v61 = vpop.f32.mrb[115].mxu0 }
 0x373   : > { %v6062_v46 = vadd.f32 %v7864_v36, %v9966_v35  ;;  %v9988_v10 = vadd.f32 %v7925_v53, %v6059_v16  ;;  %v7928_v19 = vadd.f32 %v7927_v61, %v7926_v8 }
 0x375   : > { %v9990_v2 = vadd.f32 %v7928_v19, %v6062_v46  ;;  %v7865_v49 = vpop.f32.mrb[96].mxu1 }
 0x376   : > { %v7866_v63 = vpop.f32.mrb[97].mxu1 }
 0x377   : > { %v7867_v57 = vadd.f32 %v7866_v63, %v7865_v49  ;;  %v7868_v13 = vpop.f32.mrb[98].mxu1  ;;  %v7929_v11 = vpop.f32.mrb[116].mxu0 }
 0x378   : > { %v7869_v1 = vpop.f32.mrb[99].mxu1  ;;  %v7930_v21 = vpop.f32.mrb[117].mxu0 }
 0x379   : > { %v6067_v23 = vadd.f32 %v7867_v57, %v9966_v35  ;;  %v7870_v59 = vadd.f32 %v7869_v1, %v7868_v13  ;;  %v7931_v25 = vadd.f32 %v7930_v21, %v7929_v11  ;;  %v7932_v26 = vpop.f32.mrb[118].mxu0 }
 0x37a   : > { %v7933_v22 = vpop.f32.mrb[119].mxu0 }
 0x37b   : > { %v6070_v27 = vadd.f32 %v7870_v59, %v9966_v35  ;;  %v9994_v7 = vadd.f32 %v7931_v25, %v6067_v23  ;;  %v7934_v32 = vadd.f32 %v7933_v22, %v7932_v26 }
 0x37d   : > { %v9996_v54 = vadd.f32 %v7934_v32, %v6070_v27  ;;  %v7871_v33 = vpop.f32.mrb[100].mxu1 }
 0x37e   : > { %v7872_v40 = vpop.f32.mrb[101].mxu1 }
 0x37f   : > { %v7873_v42 = vadd.f32 %v7872_v40, %v7871_v33  ;;  %v7874_v15 = vpop.f32.mrb[102].mxu1  ;;  %v7935_v14 = vpop.f32.mrb[120].mxu0 }
 0x380   : > { %v7875_v18 = vpop.f32.mrb[103].mxu1  ;;  %v7936_v17 = vpop.f32.mrb[121].mxu0 }
 0x381   : > { %v6075_v47 = vadd.f32 %v7873_v42, %v9966_v35  ;;  %v7876_v24 = vadd.f32 %v7875_v18, %v7874_v15  ;;  %v7937_v9 = vadd.f32 %v7936_v17, %v7935_v14  ;;  %v7938_v20 = vpop.f32.mrb[122].mxu0 }
 0x382   : > { %v7939_v38 = vpop.f32.mrb[123].mxu0 }
 0x383   : > { %v6078_v48 = vadd.f32 %v7876_v24, %v9966_v35  ;;  %v10000_v12 = vadd.f32 %v7937_v9, %v6075_v47  ;;  %v7940_v52 = vadd.f32 %v7939_v38, %v7938_v20 }
 0x385   : > { %v10002_v45 = vadd.f32 %v7940_v52, %v6078_v48  ;;  %v7877_v50 = vpop.f32.mrb[104].mxu1 }
 0x386   : > { %v7878_v51 = vpop.f32.mrb[105].mxu1 }
 0x387   : > { %v7879_v34 = vadd.f32 %v7878_v51, %v7877_v50  ;;  %v7880_v29 = vpop.f32.mrb[106].mxu1  ;;  %v7941_v44 = vpop.f32.mrb[124].mxu0 }
 0x388   : > { %v7881_v56 = vpop.f32.mrb[107].mxu1  ;;  %v7942_v4 = vpop.f32.mrb[125].mxu0 }
 0x389   : > { %v6083_v62 = vadd.f32 %v7879_v34, %v9966_v35  ;;  %v7882_v0 = vadd.f32 %v7881_v56, %v7880_v29  ;;  %v7943_v39 = vadd.f32 %v7942_v4, %v7941_v44  ;;  %v7944_v60 = vpop.f32.mrb[126].mxu0 }
 0x38a   : > { %v7945_v58 = vpop.f32.mrb[127].mxu0 }
 0x38b   : > { %v6086_v43 = vadd.f32 %v7882_v0, %v9966_v35  ;;  %v10006_v31 = vadd.f32 %v7943_v39, %v6083_v62  ;;  %v7946_v6 = vadd.f32 %v7945_v58, %v7944_v60 }
 0x38d   : > { %v10008_v16 = vadd.f32 %v7946_v6, %v6086_v43  ;;  %v7883_v36 = vpop.f32.mrb[108].mxu1 }
 0x38e   : > { %v7884_v37 = vpop.f32.mrb[109].mxu1 }
 0x38f   : > { %v7885_v53 = vadd.f32 %v7884_v37, %v7883_v36  ;;  %v7886_v8 = vpop.f32.mrb[110].mxu1  ;;  %v7947_v46 = vpop.f32.mrb[128].mxu0 }
 0x390   : > { %v7887_v61 = vpop.f32.mrb[111].mxu1  ;;  %v7948_v63 = vpop.f32.mrb[129].mxu0 }
 0x391   : > { %v6091_v19 = vadd.f32 %v7885_v53, %v9966_v35  ;;  %v7888_v49 = vadd.f32 %v7887_v61, %v7886_v8  ;;  %v7949_v57 = vadd.f32 %v7948_v63, %v7947_v46  ;;  %v7950_v13 = vpop.f32.mrb[130].mxu0 }
 0x392   : > { %v7951_v1 = vpop.f32.mrb[131].mxu0 }
 0x393   : > { %v6094_v11 = vadd.f32 %v7888_v49, %v9966_v35  ;;  %v10012_v21 = vadd.f32 %v7949_v57, %v6091_v19  ;;  %v7952_v23 = vadd.f32 %v7951_v1, %v7950_v13 }
 0x395   : > { %v10014_v59 = vadd.f32 %v7952_v23, %v6094_v11  ;;  %v7969_v25 = vpop.f32.mrb[112].mxu1 }
 0x396   : > { %v7970_v26 = vpop.f32.mrb[113].mxu1 }
 0x397   : > { %v7971_v22 = vadd.f32 %v7970_v26, %v7969_v25  ;;  %v7972_v27 = vpop.f32.mrb[114].mxu1  ;;  %v8033_v32 = vpop.f32.mrb[132].mxu0 }
 0x398   : > { %v7973_v33 = vpop.f32.mrb[115].mxu1  ;;  %v8034_v15 = vpop.f32.mrb[133].mxu0 }
 0x399   : > { %v6229_v40 = vadd.f32 %v7971_v22, %v9970_v30  ;;  %v7974_v42 = vadd.f32 %v7973_v33, %v7972_v27  ;;  %v8035_v14 = vadd.f32 %v8034_v15, %v8033_v32  ;;  %v8036_v18 = vpop.f32.mrb[134].mxu0 }
 0x39a   : > { %v8037_v47 = vpop.f32.mrb[135].mxu0 }
 0x39b   : > { %v6232_v35 = vadd.f32 %v7974_v42, %v9972_v28  ;;  %v8038_v24 = vadd.f32 %v8037_v47, %v8036_v18  ;;  %v10018_v17 = vadd.f32 %v8035_v14, %v6229_v40 }
 0x39d   : > { %v7975_v9 = vpop.f32.mrb[116].mxu1  ;;  %v10020_v48 = vadd.f32 %v8038_v24, %v6232_v35 }
 0x39e   : > { %v7976_v20 = vpop.f32.mrb[117].mxu1 }
 0x39f   : > { %v7977_v38 = vadd.f32 %v7976_v20, %v7975_v9  ;;  %v7978_v52 = vpop.f32.mrb[118].mxu1  ;;  %v8039_v30 = vpop.f32.mrb[136].mxu0 }
 0x3a0   : > { %v7979_v50 = vpop.f32.mrb[119].mxu1  ;;  %v8040_v29 = vpop.f32.mrb[137].mxu0 }
 0x3a1   : > { %v6237_v51 = vadd.f32 %v7977_v38, %v9976_v41  ;;  %v7980_v34 = vadd.f32 %v7979_v50, %v7978_v52  ;;  %v8041_v56 = vadd.f32 %v8040_v29, %v8039_v30  ;;  %v8042_v28 = vpop.f32.mrb[138].mxu0 }
 0x3a2   : > { %v8043_v62 = vpop.f32.mrb[139].mxu0 }
 0x3a3   : > { %v6240_v44 = vadd.f32 %v7980_v34, %v9978_v55  ;;  %v8044_v0 = vadd.f32 %v8043_v62, %v8042_v28  ;;  %v10024_v39 = vadd.f32 %v8041_v56, %v6237_v51 }
 0x3a5   : > { %v7981_v4 = vpop.f32.mrb[120].mxu1  ;;  %v10026_v6 = vadd.f32 %v8044_v0, %v6240_v44 }
 0x3a6   : > { %v7982_v60 = vpop.f32.mrb[121].mxu1 }
 0x3a7   : > { %v7983_v43 = vadd.f32 %v7982_v60, %v7981_v4  ;;  %v7984_v58 = vpop.f32.mrb[122].mxu1  ;;  %v8045_v53 = vpop.f32.mrb[140].mxu0 }
 0x3a8   : > { %v7985_v36 = vpop.f32.mrb[123].mxu1  ;;  %v8046_v55 = vpop.f32.mrb[141].mxu0 }
 0x3a9   : > { %v6245_v41 = vadd.f32 %v7983_v43, %v9982_v3  ;;  %v7986_v37 = vadd.f32 %v7985_v36, %v7984_v58  ;;  %v8047_v46 = vadd.f32 %v8046_v55, %v8045_v53  ;;  %v8048_v61 = vpop.f32.mrb[142].mxu0 }
 0x3aa   : > { %v8049_v19 = vpop.f32.mrb[143].mxu0 }
 0x3ab   : > { %v6248_v8 = vadd.f32 %v7986_v37, %v9984_v5  ;;  %v8050_v63 = vadd.f32 %v8049_v19, %v8048_v61  ;;  %v10030_v13 = vadd.f32 %v8047_v46, %v6245_v41 }
 0x3ad   : > { %v7987_v49 = vpop.f32.mrb[124].mxu1  ;;  %v10032_v25 = vadd.f32 %v8050_v63, %v6248_v8 }
 0x3ae   : > { %v7988_v57 = vpop.f32.mrb[125].mxu1 }
 0x3af   : > { %v7989_v11 = vadd.f32 %v7988_v57, %v7987_v49  ;;  %v7990_v1 = vpop.f32.mrb[126].mxu1  ;;  %v8051_v22 = vpop.f32.mrb[144].mxu0 }
 0x3b0   : > { %v7991_v23 = vpop.f32.mrb[127].mxu1  ;;  %v8052_v27 = vpop.f32.mrb[145].mxu0 }
 0x3b1   : > { %v6253_v3 = vadd.f32 %v7989_v11, %v9988_v10  ;;  %v7992_v26 = vadd.f32 %v7991_v23, %v7990_v1  ;;  %v8053_v32 = vadd.f32 %v8052_v27, %v8051_v22  ;;  %v8054_v33 = vpop.f32.mrb[146].mxu0 }
 0x3b2   : > { %v8055_v40 = vpop.f32.mrb[147].mxu0 }
 0x3b3   : > { %v6256_v5 = vadd.f32 %v7992_v26, %v9990_v2  ;;  %v8056_v42 = vadd.f32 %v8055_v40, %v8054_v33  ;;  %v10036_v14 = vadd.f32 %v8053_v32, %v6253_v3 }
 0x3b5   : > { %v7993_v15 = vpop.f32.mrb[128].mxu1  ;;  %v10038_v24 = vadd.f32 %v8056_v42, %v6256_v5 }
 0x3b6   : > { %v7994_v18 = vpop.f32.mrb[129].mxu1 }
 0x3b7   : > { %v7995_v35 = vadd.f32 %v7994_v18, %v7993_v15  ;;  %v7996_v47 = vpop.f32.mrb[130].mxu1  ;;  %v8057_v20 = vpop.f32.mrb[148].mxu0 }
 0x3b8   : > { %v7997_v9 = vpop.f32.mrb[131].mxu1  ;;  %v8058_v52 = vpop.f32.mrb[149].mxu0 }
 0x3b9   : > { %v6261_v10 = vadd.f32 %v7995_v35, %v9994_v7  ;;  %v7998_v38 = vadd.f32 %v7997_v9, %v7996_v47  ;;  %v8059_v50 = vadd.f32 %v8058_v52, %v8057_v20  ;;  %v8060_v51 = vpop.f32.mrb[150].mxu0 }
 0x3ba   : > { %v8061_v30 = vpop.f32.mrb[151].mxu0 }
 0x3bb   : > { %v6264_v2 = vadd.f32 %v7998_v38, %v9996_v54  ;;  %v8062_v34 = vadd.f32 %v8061_v30, %v8060_v51  ;;  %v10042_v29 = vadd.f32 %v8059_v50, %v6261_v10  ;;  %v6487_v30 = vld [vmem:[%s10061_s28] sm:$0xff] }
 0x3bd   : > { %v7999_v44 = vpop.f32.mrb[132].mxu1  ;;  %v10044_v28 = vadd.f32 %v8062_v34, %v6264_v2  ;;  %v6489_v2 = vld [vmem:[%s10061_s28 + $0x10] sm:$0xff] }
 0x3be   : > { %v8000_v56 = vpop.f32.mrb[133].mxu1 }
 0x3bf   : > { %v8001_v62 = vadd.f32 %v8000_v56, %v7999_v44  ;;  %v8002_v0 = vpop.f32.mrb[134].mxu1  ;;  %v8063_v60 = vpop.f32.mrb[152].mxu0  ;;  %v6490_v56 = vld [vmem:[%s10061_s28 + $0x18] sm:$0xff] }
 0x3c0   : > { %v8003_v4 = vpop.f32.mrb[135].mxu1  ;;  %v8064_v58 = vpop.f32.mrb[153].mxu0 }
 0x3c1   : > { %v6269_v7 = vadd.f32 %v8001_v62, %v10000_v12  ;;  %v8004_v43 = vadd.f32 %v8003_v4, %v8002_v0  ;;  %v8065_v36 = vadd.f32 %v8064_v58, %v8063_v60  ;;  %v8066_v41 = vpop.f32.mrb[154].mxu0 }
 0x3c2   : > { %v8067_v37 = vpop.f32.mrb[155].mxu0 }
 0x3c3   : > { %v6272_v54 = vadd.f32 %v8004_v43, %v10002_v45  ;;  %v8068_v53 = vadd.f32 %v8067_v37, %v8066_v41  ;;  %v10048_v8 = vadd.f32 %v8065_v36, %v6269_v7  ;;  %v6488_v7 = vld [vmem:[%s10061_s28 + $0x8] sm:$0xff] }
 0x3c5   : > { %v8005_v55 = vpop.f32.mrb[136].mxu1  ;;  %v10050_v61 = vadd.f32 %v8068_v53, %v6272_v54  ;;  %v6493_v53 = vld [vmem:[%s10061_s28 + $0x30] sm:$0xff] }
 0x3c6   : > { %v8006_v46 = vpop.f32.mrb[137].mxu1 }
 0x3c7   : > { %v8007_v19 = vadd.f32 %v8006_v46, %v8005_v55  ;;  %v8008_v49 = vpop.f32.mrb[138].mxu1  ;;  %v8069_v11 = vpop.f32.mrb[156].mxu0 }
 0x3c8   : > { %v8009_v63 = vpop.f32.mrb[139].mxu1  ;;  %v8070_v1 = vpop.f32.mrb[157].mxu0 }
 0x3c9   : > { %v6277_v12 = vadd.f32 %v8007_v19, %v10006_v31  ;;  %v8010_v57 = vadd.f32 %v8009_v63, %v8008_v49  ;;  %v8071_v23 = vadd.f32 %v8070_v1, %v8069_v11  ;;  %v8072_v3 = vpop.f32.mrb[158].mxu0  ;;  %v6491_v19 = vld [vmem:[%s10061_s28 + $0x20] sm:$0xff]  ;;  %v6492_v1 = vld [vmem:[%s10061_s28 + $0x28] sm:$0xff] }
 0x3ca   : > { %v8073_v26 = vpop.f32.mrb[159].mxu0 }
 0x3cb   : > { %v6280_v45 = vadd.f32 %v8010_v57, %v10008_v16  ;;  %v8074_v22 = vadd.f32 %v8073_v26, %v8072_v3  ;;  %v10054_v27 = vadd.f32 %v8071_v23, %v6277_v12  ;;  %v6494_v12 = vld [vmem:[%s10061_s28 + $0x38] sm:$0xff] }
 0x3cd   : > { %v8011_v5 = vpop.f32.mrb[140].mxu1  ;;  %v10057_v42 = vadd.f32 %v8074_v22, %v6280_v45 }
 0x3ce   : > { %v8012_v32 = vpop.f32.mrb[141].mxu1 }
 0x3cf   : > { %v8013_v33 = vadd.f32 %v8012_v32, %v8011_v5  ;;  %v8014_v40 = vpop.f32.mrb[142].mxu1  ;;  %v8075_v18 = vpop.f32.mrb[160].mxu0 }
 0x3d0   : > { %v8015_v31 = vpop.f32.mrb[143].mxu1  ;;  %v8076_v35 = vpop.f32.mrb[161].mxu0 }
 0x3d1   : > { %v6285_v15 = vadd.f32 %v8013_v33, %v10012_v21  ;;  %v8016_v16 = vadd.f32 %v8015_v31, %v8014_v40  ;;  %v8077_v9 = vadd.f32 %v8076_v35, %v8075_v18  ;;  %v8078_v10 = vpop.f32.mrb[162].mxu0  ;;  %v6497_v40 = vld [vmem:[%s10061_s28 + $0x50] sm:$0xff]  ;;  %v6495_v18 = vld [vmem:[%s10061_s28 + $0x40] sm:$0xff] }
 0x3d2   : > { %v8079_v20 = vpop.f32.mrb[163].mxu0 }
 0x3d3   : > { %v6288_v47 = vadd.f32 %v8016_v16, %v10014_v59  ;;  %v8080_v38 = vadd.f32 %v8079_v20, %v8078_v10  ;;  %v10065_v50 = vadd.f32 %v8077_v9, %v6285_v15 }
 0x3d5   : > { %v8151_v52 = vpop.f32.mrb[144].mxu1  ;;  %v10071_v62 = vadd.f32 %v8080_v38, %v6288_v47  ;;  %v6498_v47 = vld [vmem:[%s10061_s28 + $0x58] sm:$0xff]  ;;  %v6496_v38 = vld [vmem:[%s10061_s28 + $0x48] sm:$0xff] }
 0x3d6   : > { %v6431_v21 = vadd.f32 %v8151_v52, %v10024_v39  ;;  %v6422_v51 = vpop.f32.mrb[145].mxu1 }
 0x3d7   : > { %v6423_v34 = vadd.f32 %v6422_v51, %v10018_v17  ;;  %v8152_v44 = vpop.f32.mrb[146].mxu1 }
 0x3d8   : > { %v6505_v59 = vadd.f32 %v6489_v2, %v6431_v21  ;;  %v6434_v0 = vadd.f32 %v8152_v44, %v10026_v6  ;;  %v6425_v4 = vpop.f32.mrb[147].mxu1 }
 0x3d9   : > { %v6503_v60 = vadd.f32 %v6487_v30, %v6423_v34  ;;  %v6426_v43 = vadd.f32 %v6425_v4, %v10020_v48  ;;  %v6499_v4 = vld [vmem:[%s10061_s28 + $0x60] sm:$0xff] }
 0x3da   : > { %v6506_v39 = vadd.f32 %v6490_v56, %v6434_v0  ;;  %v6521_v54 = vmax.f32 %v6505_v59, 0.0  ;;  %v6501_v56 = vld [vmem:[%s10061_s28 + $0x70] sm:$0xff] }
 0x3db   : > { %v6504_v58 = vadd.f32 %v6488_v7, %v6426_v43  ;;  %v6519_v36 = vmax.f32 %v6503_v60, 0.0  ;;  %v6502_v43 = vld [vmem:[%s10061_s28 + $0x78] sm:$0xff] }
 0x3dc   : > { %v6522_v17 = vmax.f32 %v6506_v39, 0.0 }
 0x3dd   : > { %v6520_v41 = vmax.f32 %v6504_v58, 0.0  ;;  %v8155_v37 = vpop.f32.mrb[148].mxu1 }
 0x3de   : > { %v7464_v55 = vpack.c.bf16 %v6522_v17, %v6521_v54  ;;  %v6447_v6 = vadd.f32 %v8155_v37, %v10036_v14  ;;  %v6438_v46 = vpop.f32.mrb[149].mxu1  ;;  %v6500_v17 = vld [vmem:[%s10061_s28 + $0x68] sm:$0xff] }
 0x3df   : > { %v7459_v49 = vpack.c.bf16 %v6520_v41, %v6519_v36  ;;  %v6439_v48 = vadd.f32 %v6438_v46, %v10030_v13  ;;  %v8156_v63 = vpop.f32.mrb[150].mxu1 }
 0x3e0   : > { %7496 = vst [vmem:[%s8736_s11 + $0x8] sm:$0xff] %v7464_v55   ;;  %v6509_v57 = vadd.f32 %v6493_v53, %v6447_v6  ;;  %v6450_v11 = vadd.f32 %v8156_v63, %v10038_v24  ;;  %v6441_v45 = vpop.f32.mrb[151].mxu1 }
 0x3e1   : > { %7460 = vst [vmem:[%s8736_s11] sm:$0xff] %v7459_v49   ;;  %v6507_v23 = vadd.f32 %v6491_v19, %v6439_v48  ;;  %v6442_v3 = vadd.f32 %v6441_v45, %v10032_v25 }
 0x3e2   : > { %v6510_v14 = vadd.f32 %v6494_v12, %v6450_v11  ;;  %v6525_v22 = vmax.f32 %v6509_v57, 0.0 }
 0x3e3   : > { %v6508_v26 = vadd.f32 %v6492_v1, %v6442_v3  ;;  %v6523_v5 = vmax.f32 %v6507_v23, 0.0 }
 0x3e4   : > { %v6526_v13 = vmax.f32 %v6510_v14, 0.0 }
 0x3e5   : > { %v6524_v32 = vmax.f32 %v6508_v26, 0.0  ;;  %v8159_v33 = vpop.f32.mrb[152].mxu1 }
 0x3e6   : > { %v7474_v24 = vpack.c.bf16 %v6526_v13, %v6525_v22  ;;  %v6463_v31 = vadd.f32 %v8159_v33, %v10048_v8  ;;  %v6454_v15 = vpop.f32.mrb[153].mxu1 }
 0x3e7   : > { %v7469_v16 = vpack.c.bf16 %v6524_v32, %v6523_v5  ;;  %v6455_v25 = vadd.f32 %v6454_v15, %v10042_v29  ;;  %v8160_v35 = vpop.f32.mrb[154].mxu1 }
 0x3e8   : > { %7498 = vst [vmem:[%s8736_s11 + $0x18] sm:$0xff] %v7474_v24   ;;  %v6513_v9 = vadd.f32 %v6497_v40, %v6463_v31  ;;  %v6466_v10 = vadd.f32 %v8160_v35, %v10050_v61  ;;  %v6457_v20 = vpop.f32.mrb[155].mxu1 }
 0x3e9   : > { %7497 = vst [vmem:[%s8736_s11 + $0x10] sm:$0xff] %v7469_v16   ;;  %v6511_v52 = vadd.f32 %v6495_v18, %v6455_v25  ;;  %v6458_v2 = vadd.f32 %v6457_v20, %v10044_v28 }
 0x3ea   : > { %v6514_v8 = vadd.f32 %v6498_v47, %v6466_v10  ;;  %v6529_v51 = vmax.f32 %v6513_v9, 0.0 }
 0x3eb   : > { %v6512_v21 = vadd.f32 %v6496_v38, %v6458_v2  ;;  %v6527_v30 = vmax.f32 %v6511_v52, 0.0 }
 0x3ec   : > { %v6530_v29 = vmax.f32 %v6514_v8, 0.0 }
 0x3ed   : > { %v6528_v34 = vmax.f32 %v6512_v21, 0.0  ;;  %v8163_v44 = vpop.f32.mrb[156].mxu1 }
 0x3ee   : > { %v7484_v61 = vpack.c.bf16 %v6530_v29, %v6529_v51  ;;  %v6479_v59 = vadd.f32 %v8163_v44, %v10065_v50  ;;  %v6470_v0 = vpop.f32.mrb[157].mxu1 }
 0x3ef   : > { %v7479_v7 = vpack.c.bf16 %v6528_v34, %v6527_v30  ;;  %v6471_v28 = vadd.f32 %v6470_v0, %v10054_v27  ;;  %v8164_v60 = vpop.f32.mrb[158].mxu1 }
 0x3f0   : > { %7500 = vst [vmem:[%s8736_s11 + $0x28] sm:$0xff] %v7484_v61   ;;  %v6517_v39 = vadd.f32 %v6501_v56, %v6479_v59  ;;  %v6482_v58 = vadd.f32 %v8164_v60, %v10071_v62  ;;  %v6473_v54 = vpop.f32.mrb[159].mxu1 }
 0x3f1   : > { %7499 = vst [vmem:[%s8736_s11 + $0x20] sm:$0xff] %v7479_v7   ;;  %v6515_v36 = vadd.f32 %v6499_v4, %v6471_v28  ;;  %v6474_v41 = vadd.f32 %v6473_v54, %v10057_v42 }
 0x3f2   : > { %v6518_v50 = vadd.f32 %v6502_v43, %v6482_v58  ;;  %v6533_v53 = vmax.f32 %v6517_v39, 0.0 }
 0x3f3   : > { %v6516_v37 = vadd.f32 %v6500_v17, %v6474_v41  ;;  %v6531_v6 = vmax.f32 %v6515_v36, 0.0 }
 0x3f4   : > { %v6534_v55 = vmax.f32 %v6518_v50, 0.0 }
 0x3f5   : > { %v6532_v27 = vmax.f32 %v6516_v37, 0.0 }
 0x3f6   : > { %v7494_v46 = vpack.c.bf16 %v6534_v55, %v6533_v53 }
 0x3f7   : > { %v7489_v19 = vpack.c.bf16 %v6532_v27, %v6531_v6 }
 0x3f8   : > { %7502 = vst [vmem:[%s8736_s11 + $0x38] sm:$0xff] %v7494_v46  }
 0x3f9   : > { %7501 = vst [vmem:[%s8736_s11 + $0x30] sm:$0xff] %v7489_v19  }
 0x3fa PF: > { %s15_s22 = sadd.s32 1, %s8660_s22   ;;  %s10145_s18 = smov %s8652_s20 }
 0x3fb   : > { %p12_p9 = scmp.ge.s32.totalorder %s15_s22, 6   ;;  %s10146_s19 = smov %s8656_s21 }
 0x3fc   : > { %s10147_s20 = smov %s10150_s23  ;;  %s10148_s21 = smov %s10154_s24 }
 0x3fd   :  { %14 = sbr.rel (!%p12_p9) target bundleno = 3 (0x3), region = 91 }

</bundles_post_ra>
